<compile_context>
chip_gen: v5e
topology: v5e:2x2
jax: 0.10.0
libtpu: 0.0.40
codegen_flags: <defaults>
</compile_context>

<pallas_src>
import functools

import numpy as np
import jax
import jax.numpy as jnp
from jax import lax
from jax.experimental import pallas as pl
from jax.experimental.pallas import tpu as pltpu


# ----------------------------------------------------------------------------
# Fully fused Q_C2 kernel
# ----------------------------------------------------------------------------
def _q_c2_kernel(x_ref, mask_ref, w1_ref, b1_ref, w3_ref, b3_ref,
                 w2_ref, b2_ref, o_ref, *, n, c, H, W):
    """One batch image per grid step.

    x_ref   : (1, c1, M)   activation, channel-in-sublane / spatial-in-lane
    mask_ref: (9, M)       per-tap validity mask for 3x3 "same" padding
    w1_ref  : (2c, c1)     cv1 weight (BN scale folded in)
    b1_ref  : (2c, 1)      cv1 BN bias
    w3_ref  : SMEM (n*2*9*c*c,)  all bottleneck 3x3 weights (BN folded), flat
    b3_ref  : SMEM (n*2*c,)      all bottleneck BN biases, flat
    w2_ref  : (c2, 2c)     cv2 weight (BN scale folded in)
    b2_ref  : (c2, 1)      cv2 BN bias
    o_ref   : (1, c2, M)   output
    """
    M = H * W

    # ---- cv1: 1x1 conv (+ folded BN) + ReLU --------------------------------
    y = jnp.dot(w1_ref[...], x_ref[0], preferred_element_type=jnp.float32)
    y = jnp.maximum(y + b1_ref[...], 0.0)            # (2c, M)
    a = y[:c, :]                                      # torch.chunk(2, dim=1)
    b = y[c:, :]                                      # (register slices only)

    mask = mask_ref[...]                              # (9, M), hoisted

    def conv3x3_relu(h, blk_conv):
        """3x3 same-padding conv + BN bias + ReLU, all on the VPU/XLU.

        Each of the 9 taps is a lane-roll of the (c, M) activation; the
        precomputed mask zeroes out-of-bounds neighbours.  Weights are read
        as scalars from SMEM and broadcast-FMA'd (c*c per tap).
        """
        wbase = blk_conv * 9 * c * c
        bbase = blk_conv * c
        acc = [jnp.zeros((1, M), jnp.float32) + b3_ref[bbase + co]
               for co in range(c)]
        for tap in range(9):
            kh, kw = divmod(tap, 3)
            off = (kh - 1) * W + (kw - 1)             # flat neighbour offset
            if off == 0:
                sh = h                                 # center tap: no shift
            else:
                sh = pltpu.roll(h, (-off) % M, axis=1) * mask[tap:tap + 1, :]
            for co in range(c):
                for ci in range(c):
                    w = w3_ref[wbase + tap * c * c + co * c + ci]
                    acc[co] = acc[co] + w * sh[ci:ci + 1, :]
        return jnp.concatenate([jnp.maximum(r, 0.0) for r in acc], axis=0)

    # ---- n bottlenecks (shortcut add); activations never leave VMEM --------
    for i in range(n):
        h = conv3x3_relu(a, 2 * i)
        h = conv3x3_relu(h, 2 * i + 1)
        a = a + h

    # ---- cv2 on concat([m(a), b]) : single K=2c matmul, one dense store ----
    cat = jnp.concatenate([a, b], axis=0)              # (2c, M), in registers
    out = jnp.dot(w2_ref[...], cat, preferred_element_type=jnp.float32)
    o_ref[0] = jnp.maximum(out + b2_ref[...], 0.0).astype(o_ref.dtype)


# ----------------------------------------------------------------------------
# Host-side prep (done once per (H, W) / per weight set)
# ----------------------------------------------------------------------------
@functools.lru_cache(maxsize=None)
def _tap_masks(H, W):
    """(9, H*W) f32: mask[tap, p] = 1 iff pixel p's (dh, dw) neighbour exists."""
    M = H * W
    pos = np.arange(M)
    r, col = pos // W, pos % W
    m = np.zeros((9, M), np.float32)
    for tap in range(9):
        kh, kw = divmod(tap, 3)
        dh, dw = kh - 1, kw - 1
        m[tap] = ((r + dh >= 0) & (r + dh < H) &
                  (col + dw >= 0) & (col + dw < W)).astype(np.float32)
    return jnp.asarray(m)


def _fold_1x1(w, scale, bias):
    """w: (Cout, Cin); fold BN scale into weight, bias stays as a column."""
    return ((w * scale[:, None]).astype(jnp.float32),
            bias[:, None].astype(jnp.float32))


def prepare_params(raw):
    """Fold BN into weights and pack the bottleneck weights/biases for SMEM."""
    c = raw["c"]
    n = len(raw["m"])
    w1, b1 = _fold_1x1(raw["cv1_w"], raw["cv1_s"], raw["cv1_b"])
    w2, b2 = _fold_1x1(raw["cv2_w"], raw["cv2_s"], raw["cv2_b"])
    w3_list, b3_list = [], []
    for blk in raw["m"]:
        for wkey, skey, bkey in (("cv1_w", "cv1_s", "cv1_b"),
                                 ("cv2_w", "cv2_s", "cv2_b")):
            wf = blk[wkey] * blk[skey][:, None, None, None]   # fold BN scale
            # (co, ci, kh, kw) -> (kh, kw, co, ci) flat == tap*c*c + co*c + ci
            w3_list.append(jnp.transpose(wf, (2, 3, 0, 1)).reshape(-1))
            b3_list.append(blk[bkey])
    return {
        "c": c, "n": n,
        "w1": w1, "b1": b1, "w2": w2, "b2": b2,
        "w3": jnp.concatenate(w3_list).astype(jnp.float32),
        "b3": jnp.concatenate(b3_list).astype(jnp.float32),
    }


# ----------------------------------------------------------------------------
# Q_C2 forward (single fused pallas_call)
# ----------------------------------------------------------------------------
def q_c2_forward(pp, x_nchw):
    N, c1, H, W = x_nchw.shape
    c, n = pp["c"], pp["n"]
    c2 = pp["w2"].shape[0]
    M = H * W                       # lane-dense when M % 128 == 0 (true here)

    x = x_nchw.reshape(N, c1, M)    # NCHW -> (N, C, H*W), free reshape
    mask = _tap_masks(H, W)

    flops = N * (2 * (2 * c) * c1 * M
                 + n * 2 * (2 * 9 * c * c * M)
                 + 2 * c2 * (2 * c) * M)
    bytes_accessed = 4 * (N * c1 * M + N * c2 * M + 9 * M
                          + pp["w1"].size + pp["b1"].size
                          + pp["w2"].size + pp["b2"].size
                          + pp["w3"].size + pp["b3"].size)

    kern = functools.partial(_q_c2_kernel, n=n, c=c, H=H, W=W)
    out = pl.pallas_call(
        kern,
        out_shape=jax.ShapeDtypeStruct((N, c2, M), x.dtype),
        grid=(N,),
        in_specs=[
            pl.BlockSpec((1, c1, M), lambda i: (i, 0, 0)),
            pl.BlockSpec((9, M), lambda i: (0, 0)),
            pl.BlockSpec((2 * c, c1), lambda i: (0, 0)),
            pl.BlockSpec((2 * c, 1), lambda i: (0, 0)),
            pl.BlockSpec(memory_space=pltpu.MemorySpace.SMEM),   # 3x3 weights
            pl.BlockSpec(memory_space=pltpu.MemorySpace.SMEM),   # 3x3 biases
            pl.BlockSpec((c2, 2 * c), lambda i: (0, 0)),
            pl.BlockSpec((c2, 1), lambda i: (0, 0)),
        ],
        out_specs=pl.BlockSpec((1, c2, M), lambda i: (i, 0, 0)),
        compiler_params=pltpu.CompilerParams(
            dimension_semantics=("parallel",)),
        cost_estimate=pl.CostEstimate(
            flops=flops, transcendentals=0, bytes_accessed=bytes_accessed),
    )(x, mask, pp["w1"], pp["b1"], pp["w3"], pp["b3"], pp["w2"], pp["b2"])
    return out.reshape(N, c2, H, W)


# ----------------------------------------------------------------------------
# Parameter initialization (deterministic, eval-mode BatchNorm stats)
# ----------------------------------------------------------------------------
def _init_bn(key, ch):
    k1, k2, k3, k4 = jax.random.split(key, 4)
    gamma = 1.0 + 0.1 * jax.random.normal(k1, (ch,), jnp.float32)
    beta = 0.1 * jax.random.normal(k2, (ch,), jnp.float32)
    mean = 0.1 * jax.random.normal(k3, (ch,), jnp.float32)
    var = jnp.abs(jax.random.normal(k4, (ch,), jnp.float32)) + 0.5
    scale = gamma / jnp.sqrt(var + 1e-5)
    bias = beta - mean * scale
    return scale, bias


def init_q_c2(key, c1, c2, n=1, e=0.5):
    c = int(c2 * e)
    keys = jax.random.split(key, 4 + 4 * n)
    p = {"c": c}
    p["cv1_w"] = 0.3 * jax.random.normal(keys[0], (2 * c, c1), jnp.float32)
    p["cv1_s"], p["cv1_b"] = _init_bn(keys[1], 2 * c)
    blocks = []
    for i in range(n):
        kw1, kb1, kw2, kb2 = keys[4 + 4 * i: 8 + 4 * i]
        blk = {
            "cv1_w": 0.2 * jax.random.normal(kw1, (c, c, 3, 3), jnp.float32),
            "cv2_w": 0.2 * jax.random.normal(kw2, (c, c, 3, 3), jnp.float32),
        }
        blk["cv1_s"], blk["cv1_b"] = _init_bn(kb1, c)
        blk["cv2_s"], blk["cv2_b"] = _init_bn(kb2, c)
        blocks.append(blk)
    p["m"] = blocks
    p["cv2_w"] = 0.3 * jax.random.normal(keys[2], (c2, 2 * c), jnp.float32)
    p["cv2_s"], p["cv2_b"] = _init_bn(keys[3], c2)
    return p


# ----------------------------------------------------------------------------
# Pure-JAX reference (for verification)
# ----------------------------------------------------------------------------
def _ref_conv_bn_relu(x_nchw, w_oihw, scale, bias, pad):
    y = lax.conv_general_dilated(
        x_nchw, w_oihw, window_strides=(1, 1),
        padding=[(pad, pad), (pad, pad)],
        dimension_numbers=("NCHW", "OIHW", "NCHW"))
    return jnp.maximum(
        y * scale[None, :, None, None] + bias[None, :, None, None], 0.0)


def q_c2_reference(params, x_nchw):
    c = params["c"]
    w1 = params["cv1_w"][:, :, None, None]
    y = _ref_conv_bn_relu(x_nchw, w1, params["cv1_s"], params["cv1_b"], 0)
    a, b = y[:, :c], y[:, c:]
    for blk in params["m"]:
        h = _ref_conv_bn_relu(a, blk["cv1_w"], blk["cv1_s"], blk["cv1_b"], 1)
        h = _ref_conv_bn_relu(h, blk["cv2_w"], blk["cv2_s"], blk["cv2_b"], 1)
        a = a + h
    yc = jnp.concatenate([a, b], axis=1)
    w2 = params["cv2_w"][:, :, None, None]
    return _ref_conv_bn_relu(yc, w2, params["cv2_s"], params["cv2_b"], 0)


if __name__ == "__main__":
    key = jax.random.PRNGKey(0)
    kx, kp = jax.random.split(key)

    # Q_C2(c1=4, c2=4, n=2, shortcut=True, e=0.5) -> hidden c = 2
    c1, c2, n = 4, 4, 2
    x = jax.random.normal(kx, (2, c1, 16, 16), jnp.float32)   # NCHW input
    raw = init_q_c2(kp, c1, c2, n=n, e=0.5)
    pp = prepare_params(raw)        # BN folding hoisted out of the forward

    out = jax.block_until_ready(q_c2_forward(pp, x))
    ref = jax.block_until_ready(q_c2_reference(raw, x))

    assert out.shape == (2, c2, 16, 16), out.shape
    max_err = float(jnp.max(jnp.abs(out - ref)))
    assert jnp.allclose(out, ref, atol=1e-3, rtol=1e-3), max_err

    print("KERNEL_OK")
</pallas_src>

<mosaic_0001>
module attributes {stable_mosaic.version = 11 : i64} {
  func.func @_q_c2_kernel(%arg0: i32, %arg1: memref<1x4x256xf32, #tpu.memory_space<vmem>>, %arg2: memref<9x256xf32, #tpu.memory_space<vmem>>, %arg3: memref<4x4xf32, #tpu.memory_space<vmem>>, %arg4: memref<4x1xf32, #tpu.memory_space<vmem>>, %arg5: memref<144xf32, #tpu.memory_space<smem>>, %arg6: memref<8xf32, #tpu.memory_space<smem>>, %arg7: memref<4x4xf32, #tpu.memory_space<vmem>>, %arg8: memref<4x1xf32, #tpu.memory_space<vmem>>, %arg9: memref<1x4x256xf32, #tpu.memory_space<vmem>>) attributes {dimension_semantics = [#tpu.dimension_semantics<parallel>], iteration_bounds = array<i64: 2>, scalar_prefetch = 0 : i64, scratch_operands = 0 : i64, tpu.core_type = #tpu.core_type<tc>, window_params = [{transform_indices = @transform_0, window_bounds = array<i64: 1, 4, 256>}, {pipeline_mode = #tpu.pipeline_mode<synchronous>, transform_indices = @transform_1, window_bounds = array<i64: 9, 256>}, {pipeline_mode = #tpu.pipeline_mode<synchronous>, transform_indices = @transform_2, window_bounds = array<i64: 4, 4>}, {pipeline_mode = #tpu.pipeline_mode<synchronous>, transform_indices = @transform_3, window_bounds = array<i64: 4, 1>}, {transform_indices = @transform_4, window_bounds = array<i64: 144>}, {transform_indices = @transform_5, window_bounds = array<i64: 8>}, {pipeline_mode = #tpu.pipeline_mode<synchronous>, transform_indices = @transform_6, window_bounds = array<i64: 4, 4>}, {pipeline_mode = #tpu.pipeline_mode<synchronous>, transform_indices = @transform_7, window_bounds = array<i64: 4, 1>}, {transform_indices = @transform_8, window_bounds = array<i64: 1, 4, 256>}]} {
    %c0 = arith.constant 0 : index
    %c0_0 = arith.constant 0 : index
    %0 = vector.load %arg3[%c0, %c0_0] : memref<4x4xf32, #tpu.memory_space<vmem>>, vector<4x4xf32>
    %c0_1 = arith.constant 0 : index
    %c0_2 = arith.constant 0 : index
    %c0_3 = arith.constant 0 : index
    %1 = vector.load %arg1[%c0_1, %c0_2, %c0_3] : memref<1x4x256xf32, #tpu.memory_space<vmem>>, vector<1x4x256xf32>
    %2 = vector.shape_cast %1 : vector<1x4x256xf32> to vector<4x256xf32>
    %cst = arith.constant dense<0.000000e+00> : vector<4x256xf32>
    %3 = tpu.matmul %0, %2, %cst {dimension_numbers = #tpu.dot_dimension_numbers<[1], [0], [0], [1], [0, 0, 1, 1], [], []>} : vector<4x4xf32>, vector<4x256xf32>, vector<4x256xf32> -> vector<4x256xf32>
    %c0_4 = arith.constant 0 : index
    %c0_5 = arith.constant 0 : index
    %4 = vector.load %arg4[%c0_4, %c0_5] : memref<4x1xf32, #tpu.memory_space<vmem>>, vector<4x1xf32>
    %5 = vector.broadcast %4 : vector<4x1xf32> to vector<4x256xf32>
    %6 = arith.addf %3, %5 : vector<4x256xf32>
    %cst_6 = arith.constant 0.000000e+00 : f32
    %7 = vector.broadcast %cst_6 : f32 to vector<4x256xf32>
    %8 = arith.maximumf %6, %7 : vector<4x256xf32>
    %9 = vector.extract_strided_slice %8 {offsets = [0, 0], sizes = [2, 256], strides = [1, 1]} : vector<4x256xf32> to vector<2x256xf32>
    %10 = vector.extract_strided_slice %8 {offsets = [2, 0], sizes = [2, 256], strides = [1, 1]} : vector<4x256xf32> to vector<2x256xf32>
    %c0_7 = arith.constant 0 : index
    %c0_8 = arith.constant 0 : index
    %11 = vector.load %arg2[%c0_7, %c0_8] : memref<9x256xf32, #tpu.memory_space<vmem>>, vector<9x256xf32>
    %cst_9 = arith.constant 0.000000e+00 : f32
    %12 = vector.broadcast %cst_9 : f32 to vector<1x256xf32>
    %c0_10 = arith.constant 0 : index
    %13 = memref.load %arg6[%c0_10] : memref<8xf32, #tpu.memory_space<smem>>
    %14 = vector.broadcast %13 : f32 to vector<1x256xf32>
    %15 = arith.addf %12, %14 : vector<1x256xf32>
    %cst_11 = arith.constant 0.000000e+00 : f32
    %16 = vector.broadcast %cst_11 : f32 to vector<1x256xf32>
    %c1 = arith.constant 1 : index
    %17 = memref.load %arg6[%c1] : memref<8xf32, #tpu.memory_space<smem>>
    %18 = vector.broadcast %17 : f32 to vector<1x256xf32>
    %19 = arith.addf %16, %18 : vector<1x256xf32>
    %c17_i32 = arith.constant 17 : i32
    %20 = tpu.dynamic_rotate %9 by %c17_i32 dim 1 : vector<2x256xf32>, i32 -> vector<2x256xf32>
    %21 = vector.extract_strided_slice %11 {offsets = [0, 0], sizes = [1, 256], strides = [1, 1]} : vector<9x256xf32> to vector<1x256xf32>
    %22 = vector.broadcast %21 : vector<1x256xf32> to vector<2x256xf32>
    %23 = arith.mulf %20, %22 : vector<2x256xf32>
    %c0_12 = arith.constant 0 : index
    %24 = memref.load %arg5[%c0_12] : memref<144xf32, #tpu.memory_space<smem>>
    %25 = vector.extract_strided_slice %23 {offsets = [0, 0], sizes = [1, 256], strides = [1, 1]} : vector<2x256xf32> to vector<1x256xf32>
    %26 = vector.broadcast %24 : f32 to vector<1x256xf32>
    %27 = arith.mulf %26, %25 : vector<1x256xf32>
    %28 = arith.addf %15, %27 : vector<1x256xf32>
    %c1_13 = arith.constant 1 : index
    %29 = memref.load %arg5[%c1_13] : memref<144xf32, #tpu.memory_space<smem>>
    %30 = vector.extract_strided_slice %23 {offsets = [1, 0], sizes = [1, 256], strides = [1, 1]} : vector<2x256xf32> to vector<1x256xf32>
    %31 = vector.broadcast %29 : f32 to vector<1x256xf32>
    %32 = arith.mulf %31, %30 : vector<1x256xf32>
    %33 = arith.addf %28, %32 : vector<1x256xf32>
    %c2 = arith.constant 2 : index
    %34 = memref.load %arg5[%c2] : memref<144xf32, #tpu.memory_space<smem>>
    %35 = vector.extract_strided_slice %23 {offsets = [0, 0], sizes = [1, 256], strides = [1, 1]} : vector<2x256xf32> to vector<1x256xf32>
    %36 = vector.broadcast %34 : f32 to vector<1x256xf32>
    %37 = arith.mulf %36, %35 : vector<1x256xf32>
    %38 = arith.addf %19, %37 : vector<1x256xf32>
    %c3 = arith.constant 3 : index
    %39 = memref.load %arg5[%c3] : memref<144xf32, #tpu.memory_space<smem>>
    %40 = vector.extract_strided_slice %23 {offsets = [1, 0], sizes = [1, 256], strides = [1, 1]} : vector<2x256xf32> to vector<1x256xf32>
    %41 = vector.broadcast %39 : f32 to vector<1x256xf32>
    %42 = arith.mulf %41, %40 : vector<1x256xf32>
    %43 = arith.addf %38, %42 : vector<1x256xf32>
    %c16_i32 = arith.constant 16 : i32
    %44 = tpu.dynamic_rotate %9 by %c16_i32 dim 1 : vector<2x256xf32>, i32 -> vector<2x256xf32>
    %45 = vector.extract_strided_slice %11 {offsets = [1, 0], sizes = [1, 256], strides = [1, 1]} : vector<9x256xf32> to vector<1x256xf32>
    %46 = vector.broadcast %45 : vector<1x256xf32> to vector<2x256xf32>
    %47 = arith.mulf %44, %46 : vector<2x256xf32>
    %c4 = arith.constant 4 : index
    %48 = memref.load %arg5[%c4] : memref<144xf32, #tpu.memory_space<smem>>
    %49 = vector.extract_strided_slice %47 {offsets = [0, 0], sizes = [1, 256], strides = [1, 1]} : vector<2x256xf32> to vector<1x256xf32>
    %50 = vector.broadcast %48 : f32 to vector<1x256xf32>
    %51 = arith.mulf %50, %49 : vector<1x256xf32>
    %52 = arith.addf %33, %51 : vector<1x256xf32>
    %c5 = arith.constant 5 : index
    %53 = memref.load %arg5[%c5] : memref<144xf32, #tpu.memory_space<smem>>
    %54 = vector.extract_strided_slice %47 {offsets = [1, 0], sizes = [1, 256], strides = [1, 1]} : vector<2x256xf32> to vector<1x256xf32>
    %55 = vector.broadcast %53 : f32 to vector<1x256xf32>
    %56 = arith.mulf %55, %54 : vector<1x256xf32>
    %57 = arith.addf %52, %56 : vector<1x256xf32>
    %c6 = arith.constant 6 : index
    %58 = memref.load %arg5[%c6] : memref<144xf32, #tpu.memory_space<smem>>
    %59 = vector.extract_strided_slice %47 {offsets = [0, 0], sizes = [1, 256], strides = [1, 1]} : vector<2x256xf32> to vector<1x256xf32>
    %60 = vector.broadcast %58 : f32 to vector<1x256xf32>
    %61 = arith.mulf %60, %59 : vector<1x256xf32>
    %62 = arith.addf %43, %61 : vector<1x256xf32>
    %c7 = arith.constant 7 : index
    %63 = memref.load %arg5[%c7] : memref<144xf32, #tpu.memory_space<smem>>
    %64 = vector.extract_strided_slice %47 {offsets = [1, 0], sizes = [1, 256], strides = [1, 1]} : vector<2x256xf32> to vector<1x256xf32>
    %65 = vector.broadcast %63 : f32 to vector<1x256xf32>
    %66 = arith.mulf %65, %64 : vector<1x256xf32>
    %67 = arith.addf %62, %66 : vector<1x256xf32>
    %c15_i32 = arith.constant 15 : i32
    %68 = tpu.dynamic_rotate %9 by %c15_i32 dim 1 : vector<2x256xf32>, i32 -> vector<2x256xf32>
    %69 = vector.extract_strided_slice %11 {offsets = [2, 0], sizes = [1, 256], strides = [1, 1]} : vector<9x256xf32> to vector<1x256xf32>
    %70 = vector.broadcast %69 : vector<1x256xf32> to vector<2x256xf32>
    %71 = arith.mulf %68, %70 : vector<2x256xf32>
    %c8 = arith.constant 8 : index
    %72 = memref.load %arg5[%c8] : memref<144xf32, #tpu.memory_space<smem>>
    %73 = vector.extract_strided_slice %71 {offsets = [0, 0], sizes = [1, 256], strides = [1, 1]} : vector<2x256xf32> to vector<1x256xf32>
    %74 = vector.broadcast %72 : f32 to vector<1x256xf32>
    %75 = arith.mulf %74, %73 : vector<1x256xf32>
    %76 = arith.addf %57, %75 : vector<1x256xf32>
    %c9 = arith.constant 9 : index
    %77 = memref.load %arg5[%c9] : memref<144xf32, #tpu.memory_space<smem>>
    %78 = vector.extract_strided_slice %71 {offsets = [1, 0], sizes = [1, 256], strides = [1, 1]} : vector<2x256xf32> to vector<1x256xf32>
    %79 = vector.broadcast %77 : f32 to vector<1x256xf32>
    %80 = arith.mulf %79, %78 : vector<1x256xf32>
    %81 = arith.addf %76, %80 : vector<1x256xf32>
    %c10 = arith.constant 10 : index
    %82 = memref.load %arg5[%c10] : memref<144xf32, #tpu.memory_space<smem>>
    %83 = vector.extract_strided_slice %71 {offsets = [0, 0], sizes = [1, 256], strides = [1, 1]} : vector<2x256xf32> to vector<1x256xf32>
    %84 = vector.broadcast %82 : f32 to vector<1x256xf32>
    %85 = arith.mulf %84, %83 : vector<1x256xf32>
    %86 = arith.addf %67, %85 : vector<1x256xf32>
    %c11 = arith.constant 11 : index
    %87 = memref.load %arg5[%c11] : memref<144xf32, #tpu.memory_space<smem>>
    %88 = vector.extract_strided_slice %71 {offsets = [1, 0], sizes = [1, 256], strides = [1, 1]} : vector<2x256xf32> to vector<1x256xf32>
    %89 = vector.broadcast %87 : f32 to vector<1x256xf32>
    %90 = arith.mulf %89, %88 : vector<1x256xf32>
    %91 = arith.addf %86, %90 : vector<1x256xf32>
    %c1_i32 = arith.constant 1 : i32
    %92 = tpu.dynamic_rotate %9 by %c1_i32 dim 1 : vector<2x256xf32>, i32 -> vector<2x256xf32>
    %93 = vector.extract_strided_slice %11 {offsets = [3, 0], sizes = [1, 256], strides = [1, 1]} : vector<9x256xf32> to vector<1x256xf32>
    %94 = vector.broadcast %93 : vector<1x256xf32> to vector<2x256xf32>
    %95 = arith.mulf %92, %94 : vector<2x256xf32>
    %c12 = arith.constant 12 : index
    %96 = memref.load %arg5[%c12] : memref<144xf32, #tpu.memory_space<smem>>
    %97 = vector.extract_strided_slice %95 {offsets = [0, 0], sizes = [1, 256], strides = [1, 1]} : vector<2x256xf32> to vector<1x256xf32>
    %98 = vector.broadcast %96 : f32 to vector<1x256xf32>
    %99 = arith.mulf %98, %97 : vector<1x256xf32>
    %100 = arith.addf %81, %99 : vector<1x256xf32>
    %c13 = arith.constant 13 : index
    %101 = memref.load %arg5[%c13] : memref<144xf32, #tpu.memory_space<smem>>
    %102 = vector.extract_strided_slice %95 {offsets = [1, 0], sizes = [1, 256], strides = [1, 1]} : vector<2x256xf32> to vector<1x256xf32>
    %103 = vector.broadcast %101 : f32 to vector<1x256xf32>
    %104 = arith.mulf %103, %102 : vector<1x256xf32>
    %105 = arith.addf %100, %104 : vector<1x256xf32>
    %c14 = arith.constant 14 : index
    %106 = memref.load %arg5[%c14] : memref<144xf32, #tpu.memory_space<smem>>
    %107 = vector.extract_strided_slice %95 {offsets = [0, 0], sizes = [1, 256], strides = [1, 1]} : vector<2x256xf32> to vector<1x256xf32>
    %108 = vector.broadcast %106 : f32 to vector<1x256xf32>
    %109 = arith.mulf %108, %107 : vector<1x256xf32>
    %110 = arith.addf %91, %109 : vector<1x256xf32>
    %c15 = arith.constant 15 : index
    %111 = memref.load %arg5[%c15] : memref<144xf32, #tpu.memory_space<smem>>
    %112 = vector.extract_strided_slice %95 {offsets = [1, 0], sizes = [1, 256], strides = [1, 1]} : vector<2x256xf32> to vector<1x256xf32>
    %113 = vector.broadcast %111 : f32 to vector<1x256xf32>
    %114 = arith.mulf %113, %112 : vector<1x256xf32>
    %115 = arith.addf %110, %114 : vector<1x256xf32>
    %c16 = arith.constant 16 : index
    %116 = memref.load %arg5[%c16] : memref<144xf32, #tpu.memory_space<smem>>
    %117 = vector.extract_strided_slice %9 {offsets = [0, 0], sizes = [1, 256], strides = [1, 1]} : vector<2x256xf32> to vector<1x256xf32>
    %118 = vector.broadcast %116 : f32 to vector<1x256xf32>
    %119 = arith.mulf %118, %117 : vector<1x256xf32>
    %120 = arith.addf %105, %119 : vector<1x256xf32>
    %c17 = arith.constant 17 : index
    %121 = memref.load %arg5[%c17] : memref<144xf32, #tpu.memory_space<smem>>
    %122 = vector.extract_strided_slice %9 {offsets = [1, 0], sizes = [1, 256], strides = [1, 1]} : vector<2x256xf32> to vector<1x256xf32>
    %123 = vector.broadcast %121 : f32 to vector<1x256xf32>
    %124 = arith.mulf %123, %122 : vector<1x256xf32>
    %125 = arith.addf %120, %124 : vector<1x256xf32>
    %c18 = arith.constant 18 : index
    %126 = memref.load %arg5[%c18] : memref<144xf32, #tpu.memory_space<smem>>
    %127 = vector.extract_strided_slice %9 {offsets = [0, 0], sizes = [1, 256], strides = [1, 1]} : vector<2x256xf32> to vector<1x256xf32>
    %128 = vector.broadcast %126 : f32 to vector<1x256xf32>
    %129 = arith.mulf %128, %127 : vector<1x256xf32>
    %130 = arith.addf %115, %129 : vector<1x256xf32>
    %c19 = arith.constant 19 : index
    %131 = memref.load %arg5[%c19] : memref<144xf32, #tpu.memory_space<smem>>
    %132 = vector.extract_strided_slice %9 {offsets = [1, 0], sizes = [1, 256], strides = [1, 1]} : vector<2x256xf32> to vector<1x256xf32>
    %133 = vector.broadcast %131 : f32 to vector<1x256xf32>
    %134 = arith.mulf %133, %132 : vector<1x256xf32>
    %135 = arith.addf %130, %134 : vector<1x256xf32>
    %c255_i32 = arith.constant 255 : i32
    %136 = tpu.dynamic_rotate %9 by %c255_i32 dim 1 : vector<2x256xf32>, i32 -> vector<2x256xf32>
    %137 = vector.extract_strided_slice %11 {offsets = [5, 0], sizes = [1, 256], strides = [1, 1]} : vector<9x256xf32> to vector<1x256xf32>
    %138 = vector.broadcast %137 : vector<1x256xf32> to vector<2x256xf32>
    %139 = arith.mulf %136, %138 : vector<2x256xf32>
    %c20 = arith.constant 20 : index
    %140 = memref.load %arg5[%c20] : memref<144xf32, #tpu.memory_space<smem>>
    %141 = vector.extract_strided_slice %139 {offsets = [0, 0], sizes = [1, 256], strides = [1, 1]} : vector<2x256xf32> to vector<1x256xf32>
    %142 = vector.broadcast %140 : f32 to vector<1x256xf32>
    %143 = arith.mulf %142, %141 : vector<1x256xf32>
    %144 = arith.addf %125, %143 : vector<1x256xf32>
    %c21 = arith.constant 21 : index
    %145 = memref.load %arg5[%c21] : memref<144xf32, #tpu.memory_space<smem>>
    %146 = vector.extract_strided_slice %139 {offsets = [1, 0], sizes = [1, 256], strides = [1, 1]} : vector<2x256xf32> to vector<1x256xf32>
    %147 = vector.broadcast %145 : f32 to vector<1x256xf32>
    %148 = arith.mulf %147, %146 : vector<1x256xf32>
    %149 = arith.addf %144, %148 : vector<1x256xf32>
    %c22 = arith.constant 22 : index
    %150 = memref.load %arg5[%c22] : memref<144xf32, #tpu.memory_space<smem>>
    %151 = vector.extract_strided_slice %139 {offsets = [0, 0], sizes = [1, 256], strides = [1, 1]} : vector<2x256xf32> to vector<1x256xf32>
    %152 = vector.broadcast %150 : f32 to vector<1x256xf32>
    %153 = arith.mulf %152, %151 : vector<1x256xf32>
    %154 = arith.addf %135, %153 : vector<1x256xf32>
    %c23 = arith.constant 23 : index
    %155 = memref.load %arg5[%c23] : memref<144xf32, #tpu.memory_space<smem>>
    %156 = vector.extract_strided_slice %139 {offsets = [1, 0], sizes = [1, 256], strides = [1, 1]} : vector<2x256xf32> to vector<1x256xf32>
    %157 = vector.broadcast %155 : f32 to vector<1x256xf32>
    %158 = arith.mulf %157, %156 : vector<1x256xf32>
    %159 = arith.addf %154, %158 : vector<1x256xf32>
    %c241_i32 = arith.constant 241 : i32
    %160 = tpu.dynamic_rotate %9 by %c241_i32 dim 1 : vector<2x256xf32>, i32 -> vector<2x256xf32>
    %161 = vector.extract_strided_slice %11 {offsets = [6, 0], sizes = [1, 256], strides = [1, 1]} : vector<9x256xf32> to vector<1x256xf32>
    %162 = vector.broadcast %161 : vector<1x256xf32> to vector<2x256xf32>
    %163 = arith.mulf %160, %162 : vector<2x256xf32>
    %c24 = arith.constant 24 : index
    %164 = memref.load %arg5[%c24] : memref<144xf32, #tpu.memory_space<smem>>
    %165 = vector.extract_strided_slice %163 {offsets = [0, 0], sizes = [1, 256], strides = [1, 1]} : vector<2x256xf32> to vector<1x256xf32>
    %166 = vector.broadcast %164 : f32 to vector<1x256xf32>
    %167 = arith.mulf %166, %165 : vector<1x256xf32>
    %168 = arith.addf %149, %167 : vector<1x256xf32>
    %c25 = arith.constant 25 : index
    %169 = memref.load %arg5[%c25] : memref<144xf32, #tpu.memory_space<smem>>
    %170 = vector.extract_strided_slice %163 {offsets = [1, 0], sizes = [1, 256], strides = [1, 1]} : vector<2x256xf32> to vector<1x256xf32>
    %171 = vector.broadcast %169 : f32 to vector<1x256xf32>
    %172 = arith.mulf %171, %170 : vector<1x256xf32>
    %173 = arith.addf %168, %172 : vector<1x256xf32>
    %c26 = arith.constant 26 : index
    %174 = memref.load %arg5[%c26] : memref<144xf32, #tpu.memory_space<smem>>
    %175 = vector.extract_strided_slice %163 {offsets = [0, 0], sizes = [1, 256], strides = [1, 1]} : vector<2x256xf32> to vector<1x256xf32>
    %176 = vector.broadcast %174 : f32 to vector<1x256xf32>
    %177 = arith.mulf %176, %175 : vector<1x256xf32>
    %178 = arith.addf %159, %177 : vector<1x256xf32>
    %c27 = arith.constant 27 : index
    %179 = memref.load %arg5[%c27] : memref<144xf32, #tpu.memory_space<smem>>
    %180 = vector.extract_strided_slice %163 {offsets = [1, 0], sizes = [1, 256], strides = [1, 1]} : vector<2x256xf32> to vector<1x256xf32>
    %181 = vector.broadcast %179 : f32 to vector<1x256xf32>
    %182 = arith.mulf %181, %180 : vector<1x256xf32>
    %183 = arith.addf %178, %182 : vector<1x256xf32>
    %c240_i32 = arith.constant 240 : i32
    %184 = tpu.dynamic_rotate %9 by %c240_i32 dim 1 : vector<2x256xf32>, i32 -> vector<2x256xf32>
    %185 = vector.extract_strided_slice %11 {offsets = [7, 0], sizes = [1, 256], strides = [1, 1]} : vector<9x256xf32> to vector<1x256xf32>
    %186 = vector.broadcast %185 : vector<1x256xf32> to vector<2x256xf32>
    %187 = arith.mulf %184, %186 : vector<2x256xf32>
    %c28 = arith.constant 28 : index
    %188 = memref.load %arg5[%c28] : memref<144xf32, #tpu.memory_space<smem>>
    %189 = vector.extract_strided_slice %187 {offsets = [0, 0], sizes = [1, 256], strides = [1, 1]} : vector<2x256xf32> to vector<1x256xf32>
    %190 = vector.broadcast %188 : f32 to vector<1x256xf32>
    %191 = arith.mulf %190, %189 : vector<1x256xf32>
    %192 = arith.addf %173, %191 : vector<1x256xf32>
    %c29 = arith.constant 29 : index
    %193 = memref.load %arg5[%c29] : memref<144xf32, #tpu.memory_space<smem>>
    %194 = vector.extract_strided_slice %187 {offsets = [1, 0], sizes = [1, 256], strides = [1, 1]} : vector<2x256xf32> to vector<1x256xf32>
    %195 = vector.broadcast %193 : f32 to vector<1x256xf32>
    %196 = arith.mulf %195, %194 : vector<1x256xf32>
    %197 = arith.addf %192, %196 : vector<1x256xf32>
    %c30 = arith.constant 30 : index
    %198 = memref.load %arg5[%c30] : memref<144xf32, #tpu.memory_space<smem>>
    %199 = vector.extract_strided_slice %187 {offsets = [0, 0], sizes = [1, 256], strides = [1, 1]} : vector<2x256xf32> to vector<1x256xf32>
    %200 = vector.broadcast %198 : f32 to vector<1x256xf32>
    %201 = arith.mulf %200, %199 : vector<1x256xf32>
    %202 = arith.addf %183, %201 : vector<1x256xf32>
    %c31 = arith.constant 31 : index
    %203 = memref.load %arg5[%c31] : memref<144xf32, #tpu.memory_space<smem>>
    %204 = vector.extract_strided_slice %187 {offsets = [1, 0], sizes = [1, 256], strides = [1, 1]} : vector<2x256xf32> to vector<1x256xf32>
    %205 = vector.broadcast %203 : f32 to vector<1x256xf32>
    %206 = arith.mulf %205, %204 : vector<1x256xf32>
    %207 = arith.addf %202, %206 : vector<1x256xf32>
    %c239_i32 = arith.constant 239 : i32
    %208 = tpu.dynamic_rotate %9 by %c239_i32 dim 1 : vector<2x256xf32>, i32 -> vector<2x256xf32>
    %209 = vector.extract_strided_slice %11 {offsets = [8, 0], sizes = [1, 256], strides = [1, 1]} : vector<9x256xf32> to vector<1x256xf32>
    %210 = vector.broadcast %209 : vector<1x256xf32> to vector<2x256xf32>
    %211 = arith.mulf %208, %210 : vector<2x256xf32>
    %c32 = arith.constant 32 : index
    %212 = memref.load %arg5[%c32] : memref<144xf32, #tpu.memory_space<smem>>
    %213 = vector.extract_strided_slice %211 {offsets = [0, 0], sizes = [1, 256], strides = [1, 1]} : vector<2x256xf32> to vector<1x256xf32>
    %214 = vector.broadcast %212 : f32 to vector<1x256xf32>
    %215 = arith.mulf %214, %213 : vector<1x256xf32>
    %216 = arith.addf %197, %215 : vector<1x256xf32>
    %c33 = arith.constant 33 : index
    %217 = memref.load %arg5[%c33] : memref<144xf32, #tpu.memory_space<smem>>
    %218 = vector.extract_strided_slice %211 {offsets = [1, 0], sizes = [1, 256], strides = [1, 1]} : vector<2x256xf32> to vector<1x256xf32>
    %219 = vector.broadcast %217 : f32 to vector<1x256xf32>
    %220 = arith.mulf %219, %218 : vector<1x256xf32>
    %221 = arith.addf %216, %220 : vector<1x256xf32>
    %c34 = arith.constant 34 : index
    %222 = memref.load %arg5[%c34] : memref<144xf32, #tpu.memory_space<smem>>
    %223 = vector.extract_strided_slice %211 {offsets = [0, 0], sizes = [1, 256], strides = [1, 1]} : vector<2x256xf32> to vector<1x256xf32>
    %224 = vector.broadcast %222 : f32 to vector<1x256xf32>
    %225 = arith.mulf %224, %223 : vector<1x256xf32>
    %226 = arith.addf %207, %225 : vector<1x256xf32>
    %c35 = arith.constant 35 : index
    %227 = memref.load %arg5[%c35] : memref<144xf32, #tpu.memory_space<smem>>
    %228 = vector.extract_strided_slice %211 {offsets = [1, 0], sizes = [1, 256], strides = [1, 1]} : vector<2x256xf32> to vector<1x256xf32>
    %229 = vector.broadcast %227 : f32 to vector<1x256xf32>
    %230 = arith.mulf %229, %228 : vector<1x256xf32>
    %231 = arith.addf %226, %230 : vector<1x256xf32>
    %cst_14 = arith.constant 0.000000e+00 : f32
    %232 = vector.broadcast %cst_14 : f32 to vector<1x256xf32>
    %233 = arith.maximumf %221, %232 : vector<1x256xf32>
    %cst_15 = arith.constant 0.000000e+00 : f32
    %234 = vector.broadcast %cst_15 : f32 to vector<1x256xf32>
    %235 = arith.maximumf %231, %234 : vector<1x256xf32>
    %236 = tpu.concatenate %233, %235 in 0 : vector<1x256xf32>, vector<1x256xf32> -> vector<2x256xf32>
    %cst_16 = arith.constant 0.000000e+00 : f32
    %237 = vector.broadcast %cst_16 : f32 to vector<1x256xf32>
    %c2_17 = arith.constant 2 : index
    %238 = memref.load %arg6[%c2_17] : memref<8xf32, #tpu.memory_space<smem>>
    %239 = vector.broadcast %238 : f32 to vector<1x256xf32>
    %240 = arith.addf %237, %239 : vector<1x256xf32>
    %cst_18 = arith.constant 0.000000e+00 : f32
    %241 = vector.broadcast %cst_18 : f32 to vector<1x256xf32>
    %c3_19 = arith.constant 3 : index
    %242 = memref.load %arg6[%c3_19] : memref<8xf32, #tpu.memory_space<smem>>
    %243 = vector.broadcast %242 : f32 to vector<1x256xf32>
    %244 = arith.addf %241, %243 : vector<1x256xf32>
    %c17_i32_20 = arith.constant 17 : i32
    %245 = tpu.dynamic_rotate %236 by %c17_i32_20 dim 1 : vector<2x256xf32>, i32 -> vector<2x256xf32>
    %246 = vector.extract_strided_slice %11 {offsets = [0, 0], sizes = [1, 256], strides = [1, 1]} : vector<9x256xf32> to vector<1x256xf32>
    %247 = vector.broadcast %246 : vector<1x256xf32> to vector<2x256xf32>
    %248 = arith.mulf %245, %247 : vector<2x256xf32>
    %c36 = arith.constant 36 : index
    %249 = memref.load %arg5[%c36] : memref<144xf32, #tpu.memory_space<smem>>
    %250 = vector.extract_strided_slice %248 {offsets = [0, 0], sizes = [1, 256], strides = [1, 1]} : vector<2x256xf32> to vector<1x256xf32>
    %251 = vector.broadcast %249 : f32 to vector<1x256xf32>
    %252 = arith.mulf %251, %250 : vector<1x256xf32>
    %253 = arith.addf %240, %252 : vector<1x256xf32>
    %c37 = arith.constant 37 : index
    %254 = memref.load %arg5[%c37] : memref<144xf32, #tpu.memory_space<smem>>
    %255 = vector.extract_strided_slice %248 {offsets = [1, 0], sizes = [1, 256], strides = [1, 1]} : vector<2x256xf32> to vector<1x256xf32>
    %256 = vector.broadcast %254 : f32 to vector<1x256xf32>
    %257 = arith.mulf %256, %255 : vector<1x256xf32>
    %258 = arith.addf %253, %257 : vector<1x256xf32>
    %c38 = arith.constant 38 : index
    %259 = memref.load %arg5[%c38] : memref<144xf32, #tpu.memory_space<smem>>
    %260 = vector.extract_strided_slice %248 {offsets = [0, 0], sizes = [1, 256], strides = [1, 1]} : vector<2x256xf32> to vector<1x256xf32>
    %261 = vector.broadcast %259 : f32 to vector<1x256xf32>
    %262 = arith.mulf %261, %260 : vector<1x256xf32>
    %263 = arith.addf %244, %262 : vector<1x256xf32>
    %c39 = arith.constant 39 : index
    %264 = memref.load %arg5[%c39] : memref<144xf32, #tpu.memory_space<smem>>
    %265 = vector.extract_strided_slice %248 {offsets = [1, 0], sizes = [1, 256], strides = [1, 1]} : vector<2x256xf32> to vector<1x256xf32>
    %266 = vector.broadcast %264 : f32 to vector<1x256xf32>
    %267 = arith.mulf %266, %265 : vector<1x256xf32>
    %268 = arith.addf %263, %267 : vector<1x256xf32>
    %c16_i32_21 = arith.constant 16 : i32
    %269 = tpu.dynamic_rotate %236 by %c16_i32_21 dim 1 : vector<2x256xf32>, i32 -> vector<2x256xf32>
    %270 = vector.extract_strided_slice %11 {offsets = [1, 0], sizes = [1, 256], strides = [1, 1]} : vector<9x256xf32> to vector<1x256xf32>
    %271 = vector.broadcast %270 : vector<1x256xf32> to vector<2x256xf32>
    %272 = arith.mulf %269, %271 : vector<2x256xf32>
    %c40 = arith.constant 40 : index
    %273 = memref.load %arg5[%c40] : memref<144xf32, #tpu.memory_space<smem>>
    %274 = vector.extract_strided_slice %272 {offsets = [0, 0], sizes = [1, 256], strides = [1, 1]} : vector<2x256xf32> to vector<1x256xf32>
    %275 = vector.broadcast %273 : f32 to vector<1x256xf32>
    %276 = arith.mulf %275, %274 : vector<1x256xf32>
    %277 = arith.addf %258, %276 : vector<1x256xf32>
    %c41 = arith.constant 41 : index
    %278 = memref.load %arg5[%c41] : memref<144xf32, #tpu.memory_space<smem>>
    %279 = vector.extract_strided_slice %272 {offsets = [1, 0], sizes = [1, 256], strides = [1, 1]} : vector<2x256xf32> to vector<1x256xf32>
    %280 = vector.broadcast %278 : f32 to vector<1x256xf32>
    %281 = arith.mulf %280, %279 : vector<1x256xf32>
    %282 = arith.addf %277, %281 : vector<1x256xf32>
    %c42 = arith.constant 42 : index
    %283 = memref.load %arg5[%c42] : memref<144xf32, #tpu.memory_space<smem>>
    %284 = vector.extract_strided_slice %272 {offsets = [0, 0], sizes = [1, 256], strides = [1, 1]} : vector<2x256xf32> to vector<1x256xf32>
    %285 = vector.broadcast %283 : f32 to vector<1x256xf32>
    %286 = arith.mulf %285, %284 : vector<1x256xf32>
    %287 = arith.addf %268, %286 : vector<1x256xf32>
    %c43 = arith.constant 43 : index
    %288 = memref.load %arg5[%c43] : memref<144xf32, #tpu.memory_space<smem>>
    %289 = vector.extract_strided_slice %272 {offsets = [1, 0], sizes = [1, 256], strides = [1, 1]} : vector<2x256xf32> to vector<1x256xf32>
    %290 = vector.broadcast %288 : f32 to vector<1x256xf32>
    %291 = arith.mulf %290, %289 : vector<1x256xf32>
    %292 = arith.addf %287, %291 : vector<1x256xf32>
    %c15_i32_22 = arith.constant 15 : i32
    %293 = tpu.dynamic_rotate %236 by %c15_i32_22 dim 1 : vector<2x256xf32>, i32 -> vector<2x256xf32>
    %294 = vector.extract_strided_slice %11 {offsets = [2, 0], sizes = [1, 256], strides = [1, 1]} : vector<9x256xf32> to vector<1x256xf32>
    %295 = vector.broadcast %294 : vector<1x256xf32> to vector<2x256xf32>
    %296 = arith.mulf %293, %295 : vector<2x256xf32>
    %c44 = arith.constant 44 : index
    %297 = memref.load %arg5[%c44] : memref<144xf32, #tpu.memory_space<smem>>
    %298 = vector.extract_strided_slice %296 {offsets = [0, 0], sizes = [1, 256], strides = [1, 1]} : vector<2x256xf32> to vector<1x256xf32>
    %299 = vector.broadcast %297 : f32 to vector<1x256xf32>
    %300 = arith.mulf %299, %298 : vector<1x256xf32>
    %301 = arith.addf %282, %300 : vector<1x256xf32>
    %c45 = arith.constant 45 : index
    %302 = memref.load %arg5[%c45] : memref<144xf32, #tpu.memory_space<smem>>
    %303 = vector.extract_strided_slice %296 {offsets = [1, 0], sizes = [1, 256], strides = [1, 1]} : vector<2x256xf32> to vector<1x256xf32>
    %304 = vector.broadcast %302 : f32 to vector<1x256xf32>
    %305 = arith.mulf %304, %303 : vector<1x256xf32>
    %306 = arith.addf %301, %305 : vector<1x256xf32>
    %c46 = arith.constant 46 : index
    %307 = memref.load %arg5[%c46] : memref<144xf32, #tpu.memory_space<smem>>
    %308 = vector.extract_strided_slice %296 {offsets = [0, 0], sizes = [1, 256], strides = [1, 1]} : vector<2x256xf32> to vector<1x256xf32>
    %309 = vector.broadcast %307 : f32 to vector<1x256xf32>
    %310 = arith.mulf %309, %308 : vector<1x256xf32>
    %311 = arith.addf %292, %310 : vector<1x256xf32>
    %c47 = arith.constant 47 : index
    %312 = memref.load %arg5[%c47] : memref<144xf32, #tpu.memory_space<smem>>
    %313 = vector.extract_strided_slice %296 {offsets = [1, 0], sizes = [1, 256], strides = [1, 1]} : vector<2x256xf32> to vector<1x256xf32>
    %314 = vector.broadcast %312 : f32 to vector<1x256xf32>
    %315 = arith.mulf %314, %313 : vector<1x256xf32>
    %316 = arith.addf %311, %315 : vector<1x256xf32>
    %c1_i32_23 = arith.constant 1 : i32
    %317 = tpu.dynamic_rotate %236 by %c1_i32_23 dim 1 : vector<2x256xf32>, i32 -> vector<2x256xf32>
    %318 = vector.extract_strided_slice %11 {offsets = [3, 0], sizes = [1, 256], strides = [1, 1]} : vector<9x256xf32> to vector<1x256xf32>
    %319 = vector.broadcast %318 : vector<1x256xf32> to vector<2x256xf32>
    %320 = arith.mulf %317, %319 : vector<2x256xf32>
    %c48 = arith.constant 48 : index
    %321 = memref.load %arg5[%c48] : memref<144xf32, #tpu.memory_space<smem>>
    %322 = vector.extract_strided_slice %320 {offsets = [0, 0], sizes = [1, 256], strides = [1, 1]} : vector<2x256xf32> to vector<1x256xf32>
    %323 = vector.broadcast %321 : f32 to vector<1x256xf32>
    %324 = arith.mulf %323, %322 : vector<1x256xf32>
    %325 = arith.addf %306, %324 : vector<1x256xf32>
    %c49 = arith.constant 49 : index
    %326 = memref.load %arg5[%c49] : memref<144xf32, #tpu.memory_space<smem>>
    %327 = vector.extract_strided_slice %320 {offsets = [1, 0], sizes = [1, 256], strides = [1, 1]} : vector<2x256xf32> to vector<1x256xf32>
    %328 = vector.broadcast %326 : f32 to vector<1x256xf32>
    %329 = arith.mulf %328, %327 : vector<1x256xf32>
    %330 = arith.addf %325, %329 : vector<1x256xf32>
    %c50 = arith.constant 50 : index
    %331 = memref.load %arg5[%c50] : memref<144xf32, #tpu.memory_space<smem>>
    %332 = vector.extract_strided_slice %320 {offsets = [0, 0], sizes = [1, 256], strides = [1, 1]} : vector<2x256xf32> to vector<1x256xf32>
    %333 = vector.broadcast %331 : f32 to vector<1x256xf32>
    %334 = arith.mulf %333, %332 : vector<1x256xf32>
    %335 = arith.addf %316, %334 : vector<1x256xf32>
    %c51 = arith.constant 51 : index
    %336 = memref.load %arg5[%c51] : memref<144xf32, #tpu.memory_space<smem>>
    %337 = vector.extract_strided_slice %320 {offsets = [1, 0], sizes = [1, 256], strides = [1, 1]} : vector<2x256xf32> to vector<1x256xf32>
    %338 = vector.broadcast %336 : f32 to vector<1x256xf32>
    %339 = arith.mulf %338, %337 : vector<1x256xf32>
    %340 = arith.addf %335, %339 : vector<1x256xf32>
    %c52 = arith.constant 52 : index
    %341 = memref.load %arg5[%c52] : memref<144xf32, #tpu.memory_space<smem>>
    %342 = vector.extract_strided_slice %236 {offsets = [0, 0], sizes = [1, 256], strides = [1, 1]} : vector<2x256xf32> to vector<1x256xf32>
    %343 = vector.broadcast %341 : f32 to vector<1x256xf32>
    %344 = arith.mulf %343, %342 : vector<1x256xf32>
    %345 = arith.addf %330, %344 : vector<1x256xf32>
    %c53 = arith.constant 53 : index
    %346 = memref.load %arg5[%c53] : memref<144xf32, #tpu.memory_space<smem>>
    %347 = vector.extract_strided_slice %236 {offsets = [1, 0], sizes = [1, 256], strides = [1, 1]} : vector<2x256xf32> to vector<1x256xf32>
    %348 = vector.broadcast %346 : f32 to vector<1x256xf32>
    %349 = arith.mulf %348, %347 : vector<1x256xf32>
    %350 = arith.addf %345, %349 : vector<1x256xf32>
    %c54 = arith.constant 54 : index
    %351 = memref.load %arg5[%c54] : memref<144xf32, #tpu.memory_space<smem>>
    %352 = vector.extract_strided_slice %236 {offsets = [0, 0], sizes = [1, 256], strides = [1, 1]} : vector<2x256xf32> to vector<1x256xf32>
    %353 = vector.broadcast %351 : f32 to vector<1x256xf32>
    %354 = arith.mulf %353, %352 : vector<1x256xf32>
    %355 = arith.addf %340, %354 : vector<1x256xf32>
    %c55 = arith.constant 55 : index
    %356 = memref.load %arg5[%c55] : memref<144xf32, #tpu.memory_space<smem>>
    %357 = vector.extract_strided_slice %236 {offsets = [1, 0], sizes = [1, 256], strides = [1, 1]} : vector<2x256xf32> to vector<1x256xf32>
    %358 = vector.broadcast %356 : f32 to vector<1x256xf32>
    %359 = arith.mulf %358, %357 : vector<1x256xf32>
    %360 = arith.addf %355, %359 : vector<1x256xf32>
    %c255_i32_24 = arith.constant 255 : i32
    %361 = tpu.dynamic_rotate %236 by %c255_i32_24 dim 1 : vector<2x256xf32>, i32 -> vector<2x256xf32>
    %362 = vector.extract_strided_slice %11 {offsets = [5, 0], sizes = [1, 256], strides = [1, 1]} : vector<9x256xf32> to vector<1x256xf32>
    %363 = vector.broadcast %362 : vector<1x256xf32> to vector<2x256xf32>
    %364 = arith.mulf %361, %363 : vector<2x256xf32>
    %c56 = arith.constant 56 : index
    %365 = memref.load %arg5[%c56] : memref<144xf32, #tpu.memory_space<smem>>
    %366 = vector.extract_strided_slice %364 {offsets = [0, 0], sizes = [1, 256], strides = [1, 1]} : vector<2x256xf32> to vector<1x256xf32>
    %367 = vector.broadcast %365 : f32 to vector<1x256xf32>
    %368 = arith.mulf %367, %366 : vector<1x256xf32>
    %369 = arith.addf %350, %368 : vector<1x256xf32>
    %c57 = arith.constant 57 : index
    %370 = memref.load %arg5[%c57] : memref<144xf32, #tpu.memory_space<smem>>
    %371 = vector.extract_strided_slice %364 {offsets = [1, 0], sizes = [1, 256], strides = [1, 1]} : vector<2x256xf32> to vector<1x256xf32>
    %372 = vector.broadcast %370 : f32 to vector<1x256xf32>
    %373 = arith.mulf %372, %371 : vector<1x256xf32>
    %374 = arith.addf %369, %373 : vector<1x256xf32>
    %c58 = arith.constant 58 : index
    %375 = memref.load %arg5[%c58] : memref<144xf32, #tpu.memory_space<smem>>
    %376 = vector.extract_strided_slice %364 {offsets = [0, 0], sizes = [1, 256], strides = [1, 1]} : vector<2x256xf32> to vector<1x256xf32>
    %377 = vector.broadcast %375 : f32 to vector<1x256xf32>
    %378 = arith.mulf %377, %376 : vector<1x256xf32>
    %379 = arith.addf %360, %378 : vector<1x256xf32>
    %c59 = arith.constant 59 : index
    %380 = memref.load %arg5[%c59] : memref<144xf32, #tpu.memory_space<smem>>
    %381 = vector.extract_strided_slice %364 {offsets = [1, 0], sizes = [1, 256], strides = [1, 1]} : vector<2x256xf32> to vector<1x256xf32>
    %382 = vector.broadcast %380 : f32 to vector<1x256xf32>
    %383 = arith.mulf %382, %381 : vector<1x256xf32>
    %384 = arith.addf %379, %383 : vector<1x256xf32>
    %c241_i32_25 = arith.constant 241 : i32
    %385 = tpu.dynamic_rotate %236 by %c241_i32_25 dim 1 : vector<2x256xf32>, i32 -> vector<2x256xf32>
    %386 = vector.extract_strided_slice %11 {offsets = [6, 0], sizes = [1, 256], strides = [1, 1]} : vector<9x256xf32> to vector<1x256xf32>
    %387 = vector.broadcast %386 : vector<1x256xf32> to vector<2x256xf32>
    %388 = arith.mulf %385, %387 : vector<2x256xf32>
    %c60 = arith.constant 60 : index
    %389 = memref.load %arg5[%c60] : memref<144xf32, #tpu.memory_space<smem>>
    %390 = vector.extract_strided_slice %388 {offsets = [0, 0], sizes = [1, 256], strides = [1, 1]} : vector<2x256xf32> to vector<1x256xf32>
    %391 = vector.broadcast %389 : f32 to vector<1x256xf32>
    %392 = arith.mulf %391, %390 : vector<1x256xf32>
    %393 = arith.addf %374, %392 : vector<1x256xf32>
    %c61 = arith.constant 61 : index
    %394 = memref.load %arg5[%c61] : memref<144xf32, #tpu.memory_space<smem>>
    %395 = vector.extract_strided_slice %388 {offsets = [1, 0], sizes = [1, 256], strides = [1, 1]} : vector<2x256xf32> to vector<1x256xf32>
    %396 = vector.broadcast %394 : f32 to vector<1x256xf32>
    %397 = arith.mulf %396, %395 : vector<1x256xf32>
    %398 = arith.addf %393, %397 : vector<1x256xf32>
    %c62 = arith.constant 62 : index
    %399 = memref.load %arg5[%c62] : memref<144xf32, #tpu.memory_space<smem>>
    %400 = vector.extract_strided_slice %388 {offsets = [0, 0], sizes = [1, 256], strides = [1, 1]} : vector<2x256xf32> to vector<1x256xf32>
    %401 = vector.broadcast %399 : f32 to vector<1x256xf32>
    %402 = arith.mulf %401, %400 : vector<1x256xf32>
    %403 = arith.addf %384, %402 : vector<1x256xf32>
    %c63 = arith.constant 63 : index
    %404 = memref.load %arg5[%c63] : memref<144xf32, #tpu.memory_space<smem>>
    %405 = vector.extract_strided_slice %388 {offsets = [1, 0], sizes = [1, 256], strides = [1, 1]} : vector<2x256xf32> to vector<1x256xf32>
    %406 = vector.broadcast %404 : f32 to vector<1x256xf32>
    %407 = arith.mulf %406, %405 : vector<1x256xf32>
    %408 = arith.addf %403, %407 : vector<1x256xf32>
    %c240_i32_26 = arith.constant 240 : i32
    %409 = tpu.dynamic_rotate %236 by %c240_i32_26 dim 1 : vector<2x256xf32>, i32 -> vector<2x256xf32>
    %410 = vector.extract_strided_slice %11 {offsets = [7, 0], sizes = [1, 256], strides = [1, 1]} : vector<9x256xf32> to vector<1x256xf32>
    %411 = vector.broadcast %410 : vector<1x256xf32> to vector<2x256xf32>
    %412 = arith.mulf %409, %411 : vector<2x256xf32>
    %c64 = arith.constant 64 : index
    %413 = memref.load %arg5[%c64] : memref<144xf32, #tpu.memory_space<smem>>
    %414 = vector.extract_strided_slice %412 {offsets = [0, 0], sizes = [1, 256], strides = [1, 1]} : vector<2x256xf32> to vector<1x256xf32>
    %415 = vector.broadcast %413 : f32 to vector<1x256xf32>
    %416 = arith.mulf %415, %414 : vector<1x256xf32>
    %417 = arith.addf %398, %416 : vector<1x256xf32>
    %c65 = arith.constant 65 : index
    %418 = memref.load %arg5[%c65] : memref<144xf32, #tpu.memory_space<smem>>
    %419 = vector.extract_strided_slice %412 {offsets = [1, 0], sizes = [1, 256], strides = [1, 1]} : vector<2x256xf32> to vector<1x256xf32>
    %420 = vector.broadcast %418 : f32 to vector<1x256xf32>
    %421 = arith.mulf %420, %419 : vector<1x256xf32>
    %422 = arith.addf %417, %421 : vector<1x256xf32>
    %c66 = arith.constant 66 : index
    %423 = memref.load %arg5[%c66] : memref<144xf32, #tpu.memory_space<smem>>
    %424 = vector.extract_strided_slice %412 {offsets = [0, 0], sizes = [1, 256], strides = [1, 1]} : vector<2x256xf32> to vector<1x256xf32>
    %425 = vector.broadcast %423 : f32 to vector<1x256xf32>
    %426 = arith.mulf %425, %424 : vector<1x256xf32>
    %427 = arith.addf %408, %426 : vector<1x256xf32>
    %c67 = arith.constant 67 : index
    %428 = memref.load %arg5[%c67] : memref<144xf32, #tpu.memory_space<smem>>
    %429 = vector.extract_strided_slice %412 {offsets = [1, 0], sizes = [1, 256], strides = [1, 1]} : vector<2x256xf32> to vector<1x256xf32>
    %430 = vector.broadcast %428 : f32 to vector<1x256xf32>
    %431 = arith.mulf %430, %429 : vector<1x256xf32>
    %432 = arith.addf %427, %431 : vector<1x256xf32>
    %c239_i32_27 = arith.constant 239 : i32
    %433 = tpu.dynamic_rotate %236 by %c239_i32_27 dim 1 : vector<2x256xf32>, i32 -> vector<2x256xf32>
    %434 = vector.extract_strided_slice %11 {offsets = [8, 0], sizes = [1, 256], strides = [1, 1]} : vector<9x256xf32> to vector<1x256xf32>
    %435 = vector.broadcast %434 : vector<1x256xf32> to vector<2x256xf32>
    %436 = arith.mulf %433, %435 : vector<2x256xf32>
    %c68 = arith.constant 68 : index
    %437 = memref.load %arg5[%c68] : memref<144xf32, #tpu.memory_space<smem>>
    %438 = vector.extract_strided_slice %436 {offsets = [0, 0], sizes = [1, 256], strides = [1, 1]} : vector<2x256xf32> to vector<1x256xf32>
    %439 = vector.broadcast %437 : f32 to vector<1x256xf32>
    %440 = arith.mulf %439, %438 : vector<1x256xf32>
    %441 = arith.addf %422, %440 : vector<1x256xf32>
    %c69 = arith.constant 69 : index
    %442 = memref.load %arg5[%c69] : memref<144xf32, #tpu.memory_space<smem>>
    %443 = vector.extract_strided_slice %436 {offsets = [1, 0], sizes = [1, 256], strides = [1, 1]} : vector<2x256xf32> to vector<1x256xf32>
    %444 = vector.broadcast %442 : f32 to vector<1x256xf32>
    %445 = arith.mulf %444, %443 : vector<1x256xf32>
    %446 = arith.addf %441, %445 : vector<1x256xf32>
    %c70 = arith.constant 70 : index
    %447 = memref.load %arg5[%c70] : memref<144xf32, #tpu.memory_space<smem>>
    %448 = vector.extract_strided_slice %436 {offsets = [0, 0], sizes = [1, 256], strides = [1, 1]} : vector<2x256xf32> to vector<1x256xf32>
    %449 = vector.broadcast %447 : f32 to vector<1x256xf32>
    %450 = arith.mulf %449, %448 : vector<1x256xf32>
    %451 = arith.addf %432, %450 : vector<1x256xf32>
    %c71 = arith.constant 71 : index
    %452 = memref.load %arg5[%c71] : memref<144xf32, #tpu.memory_space<smem>>
    %453 = vector.extract_strided_slice %436 {offsets = [1, 0], sizes = [1, 256], strides = [1, 1]} : vector<2x256xf32> to vector<1x256xf32>
    %454 = vector.broadcast %452 : f32 to vector<1x256xf32>
    %455 = arith.mulf %454, %453 : vector<1x256xf32>
    %456 = arith.addf %451, %455 : vector<1x256xf32>
    %cst_28 = arith.constant 0.000000e+00 : f32
    %457 = vector.broadcast %cst_28 : f32 to vector<1x256xf32>
    %458 = arith.maximumf %446, %457 : vector<1x256xf32>
    %cst_29 = arith.constant 0.000000e+00 : f32
    %459 = vector.broadcast %cst_29 : f32 to vector<1x256xf32>
    %460 = arith.maximumf %456, %459 : vector<1x256xf32>
    %461 = tpu.concatenate %458, %460 in 0 : vector<1x256xf32>, vector<1x256xf32> -> vector<2x256xf32>
    %462 = arith.addf %9, %461 : vector<2x256xf32>
    %cst_30 = arith.constant 0.000000e+00 : f32
    %463 = vector.broadcast %cst_30 : f32 to vector<1x256xf32>
    %c4_31 = arith.constant 4 : index
    %464 = memref.load %arg6[%c4_31] : memref<8xf32, #tpu.memory_space<smem>>
    %465 = vector.broadcast %464 : f32 to vector<1x256xf32>
    %466 = arith.addf %463, %465 : vector<1x256xf32>
    %cst_32 = arith.constant 0.000000e+00 : f32
    %467 = vector.broadcast %cst_32 : f32 to vector<1x256xf32>
    %c5_33 = arith.constant 5 : index
    %468 = memref.load %arg6[%c5_33] : memref<8xf32, #tpu.memory_space<smem>>
    %469 = vector.broadcast %468 : f32 to vector<1x256xf32>
    %470 = arith.addf %467, %469 : vector<1x256xf32>
    %c17_i32_34 = arith.constant 17 : i32
    %471 = tpu.dynamic_rotate %462 by %c17_i32_34 dim 1 : vector<2x256xf32>, i32 -> vector<2x256xf32>
    %472 = vector.extract_strided_slice %11 {offsets = [0, 0], sizes = [1, 256], strides = [1, 1]} : vector<9x256xf32> to vector<1x256xf32>
    %473 = vector.broadcast %472 : vector<1x256xf32> to vector<2x256xf32>
    %474 = arith.mulf %471, %473 : vector<2x256xf32>
    %c72 = arith.constant 72 : index
    %475 = memref.load %arg5[%c72] : memref<144xf32, #tpu.memory_space<smem>>
    %476 = vector.extract_strided_slice %474 {offsets = [0, 0], sizes = [1, 256], strides = [1, 1]} : vector<2x256xf32> to vector<1x256xf32>
    %477 = vector.broadcast %475 : f32 to vector<1x256xf32>
    %478 = arith.mulf %477, %476 : vector<1x256xf32>
    %479 = arith.addf %466, %478 : vector<1x256xf32>
    %c73 = arith.constant 73 : index
    %480 = memref.load %arg5[%c73] : memref<144xf32, #tpu.memory_space<smem>>
    %481 = vector.extract_strided_slice %474 {offsets = [1, 0], sizes = [1, 256], strides = [1, 1]} : vector<2x256xf32> to vector<1x256xf32>
    %482 = vector.broadcast %480 : f32 to vector<1x256xf32>
    %483 = arith.mulf %482, %481 : vector<1x256xf32>
    %484 = arith.addf %479, %483 : vector<1x256xf32>
    %c74 = arith.constant 74 : index
    %485 = memref.load %arg5[%c74] : memref<144xf32, #tpu.memory_space<smem>>
    %486 = vector.extract_strided_slice %474 {offsets = [0, 0], sizes = [1, 256], strides = [1, 1]} : vector<2x256xf32> to vector<1x256xf32>
    %487 = vector.broadcast %485 : f32 to vector<1x256xf32>
    %488 = arith.mulf %487, %486 : vector<1x256xf32>
    %489 = arith.addf %470, %488 : vector<1x256xf32>
    %c75 = arith.constant 75 : index
    %490 = memref.load %arg5[%c75] : memref<144xf32, #tpu.memory_space<smem>>
    %491 = vector.extract_strided_slice %474 {offsets = [1, 0], sizes = [1, 256], strides = [1, 1]} : vector<2x256xf32> to vector<1x256xf32>
    %492 = vector.broadcast %490 : f32 to vector<1x256xf32>
    %493 = arith.mulf %492, %491 : vector<1x256xf32>
    %494 = arith.addf %489, %493 : vector<1x256xf32>
    %c16_i32_35 = arith.constant 16 : i32
    %495 = tpu.dynamic_rotate %462 by %c16_i32_35 dim 1 : vector<2x256xf32>, i32 -> vector<2x256xf32>
    %496 = vector.extract_strided_slice %11 {offsets = [1, 0], sizes = [1, 256], strides = [1, 1]} : vector<9x256xf32> to vector<1x256xf32>
    %497 = vector.broadcast %496 : vector<1x256xf32> to vector<2x256xf32>
    %498 = arith.mulf %495, %497 : vector<2x256xf32>
    %c76 = arith.constant 76 : index
    %499 = memref.load %arg5[%c76] : memref<144xf32, #tpu.memory_space<smem>>
    %500 = vector.extract_strided_slice %498 {offsets = [0, 0], sizes = [1, 256], strides = [1, 1]} : vector<2x256xf32> to vector<1x256xf32>
    %501 = vector.broadcast %499 : f32 to vector<1x256xf32>
    %502 = arith.mulf %501, %500 : vector<1x256xf32>
    %503 = arith.addf %484, %502 : vector<1x256xf32>
    %c77 = arith.constant 77 : index
    %504 = memref.load %arg5[%c77] : memref<144xf32, #tpu.memory_space<smem>>
    %505 = vector.extract_strided_slice %498 {offsets = [1, 0], sizes = [1, 256], strides = [1, 1]} : vector<2x256xf32> to vector<1x256xf32>
    %506 = vector.broadcast %504 : f32 to vector<1x256xf32>
    %507 = arith.mulf %506, %505 : vector<1x256xf32>
    %508 = arith.addf %503, %507 : vector<1x256xf32>
    %c78 = arith.constant 78 : index
    %509 = memref.load %arg5[%c78] : memref<144xf32, #tpu.memory_space<smem>>
    %510 = vector.extract_strided_slice %498 {offsets = [0, 0], sizes = [1, 256], strides = [1, 1]} : vector<2x256xf32> to vector<1x256xf32>
    %511 = vector.broadcast %509 : f32 to vector<1x256xf32>
    %512 = arith.mulf %511, %510 : vector<1x256xf32>
    %513 = arith.addf %494, %512 : vector<1x256xf32>
    %c79 = arith.constant 79 : index
    %514 = memref.load %arg5[%c79] : memref<144xf32, #tpu.memory_space<smem>>
    %515 = vector.extract_strided_slice %498 {offsets = [1, 0], sizes = [1, 256], strides = [1, 1]} : vector<2x256xf32> to vector<1x256xf32>
    %516 = vector.broadcast %514 : f32 to vector<1x256xf32>
    %517 = arith.mulf %516, %515 : vector<1x256xf32>
    %518 = arith.addf %513, %517 : vector<1x256xf32>
    %c15_i32_36 = arith.constant 15 : i32
    %519 = tpu.dynamic_rotate %462 by %c15_i32_36 dim 1 : vector<2x256xf32>, i32 -> vector<2x256xf32>
    %520 = vector.extract_strided_slice %11 {offsets = [2, 0], sizes = [1, 256], strides = [1, 1]} : vector<9x256xf32> to vector<1x256xf32>
    %521 = vector.broadcast %520 : vector<1x256xf32> to vector<2x256xf32>
    %522 = arith.mulf %519, %521 : vector<2x256xf32>
    %c80 = arith.constant 80 : index
    %523 = memref.load %arg5[%c80] : memref<144xf32, #tpu.memory_space<smem>>
    %524 = vector.extract_strided_slice %522 {offsets = [0, 0], sizes = [1, 256], strides = [1, 1]} : vector<2x256xf32> to vector<1x256xf32>
    %525 = vector.broadcast %523 : f32 to vector<1x256xf32>
    %526 = arith.mulf %525, %524 : vector<1x256xf32>
    %527 = arith.addf %508, %526 : vector<1x256xf32>
    %c81 = arith.constant 81 : index
    %528 = memref.load %arg5[%c81] : memref<144xf32, #tpu.memory_space<smem>>
    %529 = vector.extract_strided_slice %522 {offsets = [1, 0], sizes = [1, 256], strides = [1, 1]} : vector<2x256xf32> to vector<1x256xf32>
    %530 = vector.broadcast %528 : f32 to vector<1x256xf32>
    %531 = arith.mulf %530, %529 : vector<1x256xf32>
    %532 = arith.addf %527, %531 : vector<1x256xf32>
    %c82 = arith.constant 82 : index
    %533 = memref.load %arg5[%c82] : memref<144xf32, #tpu.memory_space<smem>>
    %534 = vector.extract_strided_slice %522 {offsets = [0, 0], sizes = [1, 256], strides = [1, 1]} : vector<2x256xf32> to vector<1x256xf32>
    %535 = vector.broadcast %533 : f32 to vector<1x256xf32>
    %536 = arith.mulf %535, %534 : vector<1x256xf32>
    %537 = arith.addf %518, %536 : vector<1x256xf32>
    %c83 = arith.constant 83 : index
    %538 = memref.load %arg5[%c83] : memref<144xf32, #tpu.memory_space<smem>>
    %539 = vector.extract_strided_slice %522 {offsets = [1, 0], sizes = [1, 256], strides = [1, 1]} : vector<2x256xf32> to vector<1x256xf32>
    %540 = vector.broadcast %538 : f32 to vector<1x256xf32>
    %541 = arith.mulf %540, %539 : vector<1x256xf32>
    %542 = arith.addf %537, %541 : vector<1x256xf32>
    %c1_i32_37 = arith.constant 1 : i32
    %543 = tpu.dynamic_rotate %462 by %c1_i32_37 dim 1 : vector<2x256xf32>, i32 -> vector<2x256xf32>
    %544 = vector.extract_strided_slice %11 {offsets = [3, 0], sizes = [1, 256], strides = [1, 1]} : vector<9x256xf32> to vector<1x256xf32>
    %545 = vector.broadcast %544 : vector<1x256xf32> to vector<2x256xf32>
    %546 = arith.mulf %543, %545 : vector<2x256xf32>
    %c84 = arith.constant 84 : index
    %547 = memref.load %arg5[%c84] : memref<144xf32, #tpu.memory_space<smem>>
    %548 = vector.extract_strided_slice %546 {offsets = [0, 0], sizes = [1, 256], strides = [1, 1]} : vector<2x256xf32> to vector<1x256xf32>
    %549 = vector.broadcast %547 : f32 to vector<1x256xf32>
    %550 = arith.mulf %549, %548 : vector<1x256xf32>
    %551 = arith.addf %532, %550 : vector<1x256xf32>
    %c85 = arith.constant 85 : index
    %552 = memref.load %arg5[%c85] : memref<144xf32, #tpu.memory_space<smem>>
    %553 = vector.extract_strided_slice %546 {offsets = [1, 0], sizes = [1, 256], strides = [1, 1]} : vector<2x256xf32> to vector<1x256xf32>
    %554 = vector.broadcast %552 : f32 to vector<1x256xf32>
    %555 = arith.mulf %554, %553 : vector<1x256xf32>
    %556 = arith.addf %551, %555 : vector<1x256xf32>
    %c86 = arith.constant 86 : index
    %557 = memref.load %arg5[%c86] : memref<144xf32, #tpu.memory_space<smem>>
    %558 = vector.extract_strided_slice %546 {offsets = [0, 0], sizes = [1, 256], strides = [1, 1]} : vector<2x256xf32> to vector<1x256xf32>
    %559 = vector.broadcast %557 : f32 to vector<1x256xf32>
    %560 = arith.mulf %559, %558 : vector<1x256xf32>
    %561 = arith.addf %542, %560 : vector<1x256xf32>
    %c87 = arith.constant 87 : index
    %562 = memref.load %arg5[%c87] : memref<144xf32, #tpu.memory_space<smem>>
    %563 = vector.extract_strided_slice %546 {offsets = [1, 0], sizes = [1, 256], strides = [1, 1]} : vector<2x256xf32> to vector<1x256xf32>
    %564 = vector.broadcast %562 : f32 to vector<1x256xf32>
    %565 = arith.mulf %564, %563 : vector<1x256xf32>
    %566 = arith.addf %561, %565 : vector<1x256xf32>
    %c88 = arith.constant 88 : index
    %567 = memref.load %arg5[%c88] : memref<144xf32, #tpu.memory_space<smem>>
    %568 = vector.extract_strided_slice %462 {offsets = [0, 0], sizes = [1, 256], strides = [1, 1]} : vector<2x256xf32> to vector<1x256xf32>
    %569 = vector.broadcast %567 : f32 to vector<1x256xf32>
    %570 = arith.mulf %569, %568 : vector<1x256xf32>
    %571 = arith.addf %556, %570 : vector<1x256xf32>
    %c89 = arith.constant 89 : index
    %572 = memref.load %arg5[%c89] : memref<144xf32, #tpu.memory_space<smem>>
    %573 = vector.extract_strided_slice %462 {offsets = [1, 0], sizes = [1, 256], strides = [1, 1]} : vector<2x256xf32> to vector<1x256xf32>
    %574 = vector.broadcast %572 : f32 to vector<1x256xf32>
    %575 = arith.mulf %574, %573 : vector<1x256xf32>
    %576 = arith.addf %571, %575 : vector<1x256xf32>
    %c90 = arith.constant 90 : index
    %577 = memref.load %arg5[%c90] : memref<144xf32, #tpu.memory_space<smem>>
    %578 = vector.extract_strided_slice %462 {offsets = [0, 0], sizes = [1, 256], strides = [1, 1]} : vector<2x256xf32> to vector<1x256xf32>
    %579 = vector.broadcast %577 : f32 to vector<1x256xf32>
    %580 = arith.mulf %579, %578 : vector<1x256xf32>
    %581 = arith.addf %566, %580 : vector<1x256xf32>
    %c91 = arith.constant 91 : index
    %582 = memref.load %arg5[%c91] : memref<144xf32, #tpu.memory_space<smem>>
    %583 = vector.extract_strided_slice %462 {offsets = [1, 0], sizes = [1, 256], strides = [1, 1]} : vector<2x256xf32> to vector<1x256xf32>
    %584 = vector.broadcast %582 : f32 to vector<1x256xf32>
    %585 = arith.mulf %584, %583 : vector<1x256xf32>
    %586 = arith.addf %581, %585 : vector<1x256xf32>
    %c255_i32_38 = arith.constant 255 : i32
    %587 = tpu.dynamic_rotate %462 by %c255_i32_38 dim 1 : vector<2x256xf32>, i32 -> vector<2x256xf32>
    %588 = vector.extract_strided_slice %11 {offsets = [5, 0], sizes = [1, 256], strides = [1, 1]} : vector<9x256xf32> to vector<1x256xf32>
    %589 = vector.broadcast %588 : vector<1x256xf32> to vector<2x256xf32>
    %590 = arith.mulf %587, %589 : vector<2x256xf32>
    %c92 = arith.constant 92 : index
    %591 = memref.load %arg5[%c92] : memref<144xf32, #tpu.memory_space<smem>>
    %592 = vector.extract_strided_slice %590 {offsets = [0, 0], sizes = [1, 256], strides = [1, 1]} : vector<2x256xf32> to vector<1x256xf32>
    %593 = vector.broadcast %591 : f32 to vector<1x256xf32>
    %594 = arith.mulf %593, %592 : vector<1x256xf32>
    %595 = arith.addf %576, %594 : vector<1x256xf32>
    %c93 = arith.constant 93 : index
    %596 = memref.load %arg5[%c93] : memref<144xf32, #tpu.memory_space<smem>>
    %597 = vector.extract_strided_slice %590 {offsets = [1, 0], sizes = [1, 256], strides = [1, 1]} : vector<2x256xf32> to vector<1x256xf32>
    %598 = vector.broadcast %596 : f32 to vector<1x256xf32>
    %599 = arith.mulf %598, %597 : vector<1x256xf32>
    %600 = arith.addf %595, %599 : vector<1x256xf32>
    %c94 = arith.constant 94 : index
    %601 = memref.load %arg5[%c94] : memref<144xf32, #tpu.memory_space<smem>>
    %602 = vector.extract_strided_slice %590 {offsets = [0, 0], sizes = [1, 256], strides = [1, 1]} : vector<2x256xf32> to vector<1x256xf32>
    %603 = vector.broadcast %601 : f32 to vector<1x256xf32>
    %604 = arith.mulf %603, %602 : vector<1x256xf32>
    %605 = arith.addf %586, %604 : vector<1x256xf32>
    %c95 = arith.constant 95 : index
    %606 = memref.load %arg5[%c95] : memref<144xf32, #tpu.memory_space<smem>>
    %607 = vector.extract_strided_slice %590 {offsets = [1, 0], sizes = [1, 256], strides = [1, 1]} : vector<2x256xf32> to vector<1x256xf32>
    %608 = vector.broadcast %606 : f32 to vector<1x256xf32>
    %609 = arith.mulf %608, %607 : vector<1x256xf32>
    %610 = arith.addf %605, %609 : vector<1x256xf32>
    %c241_i32_39 = arith.constant 241 : i32
    %611 = tpu.dynamic_rotate %462 by %c241_i32_39 dim 1 : vector<2x256xf32>, i32 -> vector<2x256xf32>
    %612 = vector.extract_strided_slice %11 {offsets = [6, 0], sizes = [1, 256], strides = [1, 1]} : vector<9x256xf32> to vector<1x256xf32>
    %613 = vector.broadcast %612 : vector<1x256xf32> to vector<2x256xf32>
    %614 = arith.mulf %611, %613 : vector<2x256xf32>
    %c96 = arith.constant 96 : index
    %615 = memref.load %arg5[%c96] : memref<144xf32, #tpu.memory_space<smem>>
    %616 = vector.extract_strided_slice %614 {offsets = [0, 0], sizes = [1, 256], strides = [1, 1]} : vector<2x256xf32> to vector<1x256xf32>
    %617 = vector.broadcast %615 : f32 to vector<1x256xf32>
    %618 = arith.mulf %617, %616 : vector<1x256xf32>
    %619 = arith.addf %600, %618 : vector<1x256xf32>
    %c97 = arith.constant 97 : index
    %620 = memref.load %arg5[%c97] : memref<144xf32, #tpu.memory_space<smem>>
    %621 = vector.extract_strided_slice %614 {offsets = [1, 0], sizes = [1, 256], strides = [1, 1]} : vector<2x256xf32> to vector<1x256xf32>
    %622 = vector.broadcast %620 : f32 to vector<1x256xf32>
    %623 = arith.mulf %622, %621 : vector<1x256xf32>
    %624 = arith.addf %619, %623 : vector<1x256xf32>
    %c98 = arith.constant 98 : index
    %625 = memref.load %arg5[%c98] : memref<144xf32, #tpu.memory_space<smem>>
    %626 = vector.extract_strided_slice %614 {offsets = [0, 0], sizes = [1, 256], strides = [1, 1]} : vector<2x256xf32> to vector<1x256xf32>
    %627 = vector.broadcast %625 : f32 to vector<1x256xf32>
    %628 = arith.mulf %627, %626 : vector<1x256xf32>
    %629 = arith.addf %610, %628 : vector<1x256xf32>
    %c99 = arith.constant 99 : index
    %630 = memref.load %arg5[%c99] : memref<144xf32, #tpu.memory_space<smem>>
    %631 = vector.extract_strided_slice %614 {offsets = [1, 0], sizes = [1, 256], strides = [1, 1]} : vector<2x256xf32> to vector<1x256xf32>
    %632 = vector.broadcast %630 : f32 to vector<1x256xf32>
    %633 = arith.mulf %632, %631 : vector<1x256xf32>
    %634 = arith.addf %629, %633 : vector<1x256xf32>
    %c240_i32_40 = arith.constant 240 : i32
    %635 = tpu.dynamic_rotate %462 by %c240_i32_40 dim 1 : vector<2x256xf32>, i32 -> vector<2x256xf32>
    %636 = vector.extract_strided_slice %11 {offsets = [7, 0], sizes = [1, 256], strides = [1, 1]} : vector<9x256xf32> to vector<1x256xf32>
    %637 = vector.broadcast %636 : vector<1x256xf32> to vector<2x256xf32>
    %638 = arith.mulf %635, %637 : vector<2x256xf32>
    %c100 = arith.constant 100 : index
    %639 = memref.load %arg5[%c100] : memref<144xf32, #tpu.memory_space<smem>>
    %640 = vector.extract_strided_slice %638 {offsets = [0, 0], sizes = [1, 256], strides = [1, 1]} : vector<2x256xf32> to vector<1x256xf32>
    %641 = vector.broadcast %639 : f32 to vector<1x256xf32>
    %642 = arith.mulf %641, %640 : vector<1x256xf32>
    %643 = arith.addf %624, %642 : vector<1x256xf32>
    %c101 = arith.constant 101 : index
    %644 = memref.load %arg5[%c101] : memref<144xf32, #tpu.memory_space<smem>>
    %645 = vector.extract_strided_slice %638 {offsets = [1, 0], sizes = [1, 256], strides = [1, 1]} : vector<2x256xf32> to vector<1x256xf32>
    %646 = vector.broadcast %644 : f32 to vector<1x256xf32>
    %647 = arith.mulf %646, %645 : vector<1x256xf32>
    %648 = arith.addf %643, %647 : vector<1x256xf32>
    %c102 = arith.constant 102 : index
    %649 = memref.load %arg5[%c102] : memref<144xf32, #tpu.memory_space<smem>>
    %650 = vector.extract_strided_slice %638 {offsets = [0, 0], sizes = [1, 256], strides = [1, 1]} : vector<2x256xf32> to vector<1x256xf32>
    %651 = vector.broadcast %649 : f32 to vector<1x256xf32>
    %652 = arith.mulf %651, %650 : vector<1x256xf32>
    %653 = arith.addf %634, %652 : vector<1x256xf32>
    %c103 = arith.constant 103 : index
    %654 = memref.load %arg5[%c103] : memref<144xf32, #tpu.memory_space<smem>>
    %655 = vector.extract_strided_slice %638 {offsets = [1, 0], sizes = [1, 256], strides = [1, 1]} : vector<2x256xf32> to vector<1x256xf32>
    %656 = vector.broadcast %654 : f32 to vector<1x256xf32>
    %657 = arith.mulf %656, %655 : vector<1x256xf32>
    %658 = arith.addf %653, %657 : vector<1x256xf32>
    %c239_i32_41 = arith.constant 239 : i32
    %659 = tpu.dynamic_rotate %462 by %c239_i32_41 dim 1 : vector<2x256xf32>, i32 -> vector<2x256xf32>
    %660 = vector.extract_strided_slice %11 {offsets = [8, 0], sizes = [1, 256], strides = [1, 1]} : vector<9x256xf32> to vector<1x256xf32>
    %661 = vector.broadcast %660 : vector<1x256xf32> to vector<2x256xf32>
    %662 = arith.mulf %659, %661 : vector<2x256xf32>
    %c104 = arith.constant 104 : index
    %663 = memref.load %arg5[%c104] : memref<144xf32, #tpu.memory_space<smem>>
    %664 = vector.extract_strided_slice %662 {offsets = [0, 0], sizes = [1, 256], strides = [1, 1]} : vector<2x256xf32> to vector<1x256xf32>
    %665 = vector.broadcast %663 : f32 to vector<1x256xf32>
    %666 = arith.mulf %665, %664 : vector<1x256xf32>
    %667 = arith.addf %648, %666 : vector<1x256xf32>
    %c105 = arith.constant 105 : index
    %668 = memref.load %arg5[%c105] : memref<144xf32, #tpu.memory_space<smem>>
    %669 = vector.extract_strided_slice %662 {offsets = [1, 0], sizes = [1, 256], strides = [1, 1]} : vector<2x256xf32> to vector<1x256xf32>
    %670 = vector.broadcast %668 : f32 to vector<1x256xf32>
    %671 = arith.mulf %670, %669 : vector<1x256xf32>
    %672 = arith.addf %667, %671 : vector<1x256xf32>
    %c106 = arith.constant 106 : index
    %673 = memref.load %arg5[%c106] : memref<144xf32, #tpu.memory_space<smem>>
    %674 = vector.extract_strided_slice %662 {offsets = [0, 0], sizes = [1, 256], strides = [1, 1]} : vector<2x256xf32> to vector<1x256xf32>
    %675 = vector.broadcast %673 : f32 to vector<1x256xf32>
    %676 = arith.mulf %675, %674 : vector<1x256xf32>
    %677 = arith.addf %658, %676 : vector<1x256xf32>
    %c107 = arith.constant 107 : index
    %678 = memref.load %arg5[%c107] : memref<144xf32, #tpu.memory_space<smem>>
    %679 = vector.extract_strided_slice %662 {offsets = [1, 0], sizes = [1, 256], strides = [1, 1]} : vector<2x256xf32> to vector<1x256xf32>
    %680 = vector.broadcast %678 : f32 to vector<1x256xf32>
    %681 = arith.mulf %680, %679 : vector<1x256xf32>
    %682 = arith.addf %677, %681 : vector<1x256xf32>
    %cst_42 = arith.constant 0.000000e+00 : f32
    %683 = vector.broadcast %cst_42 : f32 to vector<1x256xf32>
    %684 = arith.maximumf %672, %683 : vector<1x256xf32>
    %cst_43 = arith.constant 0.000000e+00 : f32
    %685 = vector.broadcast %cst_43 : f32 to vector<1x256xf32>
    %686 = arith.maximumf %682, %685 : vector<1x256xf32>
    %687 = tpu.concatenate %684, %686 in 0 : vector<1x256xf32>, vector<1x256xf32> -> vector<2x256xf32>
    %cst_44 = arith.constant 0.000000e+00 : f32
    %688 = vector.broadcast %cst_44 : f32 to vector<1x256xf32>
    %c6_45 = arith.constant 6 : index
    %689 = memref.load %arg6[%c6_45] : memref<8xf32, #tpu.memory_space<smem>>
    %690 = vector.broadcast %689 : f32 to vector<1x256xf32>
    %691 = arith.addf %688, %690 : vector<1x256xf32>
    %cst_46 = arith.constant 0.000000e+00 : f32
    %692 = vector.broadcast %cst_46 : f32 to vector<1x256xf32>
    %c7_47 = arith.constant 7 : index
    %693 = memref.load %arg6[%c7_47] : memref<8xf32, #tpu.memory_space<smem>>
    %694 = vector.broadcast %693 : f32 to vector<1x256xf32>
    %695 = arith.addf %692, %694 : vector<1x256xf32>
    %c17_i32_48 = arith.constant 17 : i32
    %696 = tpu.dynamic_rotate %687 by %c17_i32_48 dim 1 : vector<2x256xf32>, i32 -> vector<2x256xf32>
    %697 = vector.extract_strided_slice %11 {offsets = [0, 0], sizes = [1, 256], strides = [1, 1]} : vector<9x256xf32> to vector<1x256xf32>
    %698 = vector.broadcast %697 : vector<1x256xf32> to vector<2x256xf32>
    %699 = arith.mulf %696, %698 : vector<2x256xf32>
    %c108 = arith.constant 108 : index
    %700 = memref.load %arg5[%c108] : memref<144xf32, #tpu.memory_space<smem>>
    %701 = vector.extract_strided_slice %699 {offsets = [0, 0], sizes = [1, 256], strides = [1, 1]} : vector<2x256xf32> to vector<1x256xf32>
    %702 = vector.broadcast %700 : f32 to vector<1x256xf32>
    %703 = arith.mulf %702, %701 : vector<1x256xf32>
    %704 = arith.addf %691, %703 : vector<1x256xf32>
    %c109 = arith.constant 109 : index
    %705 = memref.load %arg5[%c109] : memref<144xf32, #tpu.memory_space<smem>>
    %706 = vector.extract_strided_slice %699 {offsets = [1, 0], sizes = [1, 256], strides = [1, 1]} : vector<2x256xf32> to vector<1x256xf32>
    %707 = vector.broadcast %705 : f32 to vector<1x256xf32>
    %708 = arith.mulf %707, %706 : vector<1x256xf32>
    %709 = arith.addf %704, %708 : vector<1x256xf32>
    %c110 = arith.constant 110 : index
    %710 = memref.load %arg5[%c110] : memref<144xf32, #tpu.memory_space<smem>>
    %711 = vector.extract_strided_slice %699 {offsets = [0, 0], sizes = [1, 256], strides = [1, 1]} : vector<2x256xf32> to vector<1x256xf32>
    %712 = vector.broadcast %710 : f32 to vector<1x256xf32>
    %713 = arith.mulf %712, %711 : vector<1x256xf32>
    %714 = arith.addf %695, %713 : vector<1x256xf32>
    %c111 = arith.constant 111 : index
    %715 = memref.load %arg5[%c111] : memref<144xf32, #tpu.memory_space<smem>>
    %716 = vector.extract_strided_slice %699 {offsets = [1, 0], sizes = [1, 256], strides = [1, 1]} : vector<2x256xf32> to vector<1x256xf32>
    %717 = vector.broadcast %715 : f32 to vector<1x256xf32>
    %718 = arith.mulf %717, %716 : vector<1x256xf32>
    %719 = arith.addf %714, %718 : vector<1x256xf32>
    %c16_i32_49 = arith.constant 16 : i32
    %720 = tpu.dynamic_rotate %687 by %c16_i32_49 dim 1 : vector<2x256xf32>, i32 -> vector<2x256xf32>
    %721 = vector.extract_strided_slice %11 {offsets = [1, 0], sizes = [1, 256], strides = [1, 1]} : vector<9x256xf32> to vector<1x256xf32>
    %722 = vector.broadcast %721 : vector<1x256xf32> to vector<2x256xf32>
    %723 = arith.mulf %720, %722 : vector<2x256xf32>
    %c112 = arith.constant 112 : index
    %724 = memref.load %arg5[%c112] : memref<144xf32, #tpu.memory_space<smem>>
    %725 = vector.extract_strided_slice %723 {offsets = [0, 0], sizes = [1, 256], strides = [1, 1]} : vector<2x256xf32> to vector<1x256xf32>
    %726 = vector.broadcast %724 : f32 to vector<1x256xf32>
    %727 = arith.mulf %726, %725 : vector<1x256xf32>
    %728 = arith.addf %709, %727 : vector<1x256xf32>
    %c113 = arith.constant 113 : index
    %729 = memref.load %arg5[%c113] : memref<144xf32, #tpu.memory_space<smem>>
    %730 = vector.extract_strided_slice %723 {offsets = [1, 0], sizes = [1, 256], strides = [1, 1]} : vector<2x256xf32> to vector<1x256xf32>
    %731 = vector.broadcast %729 : f32 to vector<1x256xf32>
    %732 = arith.mulf %731, %730 : vector<1x256xf32>
    %733 = arith.addf %728, %732 : vector<1x256xf32>
    %c114 = arith.constant 114 : index
    %734 = memref.load %arg5[%c114] : memref<144xf32, #tpu.memory_space<smem>>
    %735 = vector.extract_strided_slice %723 {offsets = [0, 0], sizes = [1, 256], strides = [1, 1]} : vector<2x256xf32> to vector<1x256xf32>
    %736 = vector.broadcast %734 : f32 to vector<1x256xf32>
    %737 = arith.mulf %736, %735 : vector<1x256xf32>
    %738 = arith.addf %719, %737 : vector<1x256xf32>
    %c115 = arith.constant 115 : index
    %739 = memref.load %arg5[%c115] : memref<144xf32, #tpu.memory_space<smem>>
    %740 = vector.extract_strided_slice %723 {offsets = [1, 0], sizes = [1, 256], strides = [1, 1]} : vector<2x256xf32> to vector<1x256xf32>
    %741 = vector.broadcast %739 : f32 to vector<1x256xf32>
    %742 = arith.mulf %741, %740 : vector<1x256xf32>
    %743 = arith.addf %738, %742 : vector<1x256xf32>
    %c15_i32_50 = arith.constant 15 : i32
    %744 = tpu.dynamic_rotate %687 by %c15_i32_50 dim 1 : vector<2x256xf32>, i32 -> vector<2x256xf32>
    %745 = vector.extract_strided_slice %11 {offsets = [2, 0], sizes = [1, 256], strides = [1, 1]} : vector<9x256xf32> to vector<1x256xf32>
    %746 = vector.broadcast %745 : vector<1x256xf32> to vector<2x256xf32>
    %747 = arith.mulf %744, %746 : vector<2x256xf32>
    %c116 = arith.constant 116 : index
    %748 = memref.load %arg5[%c116] : memref<144xf32, #tpu.memory_space<smem>>
    %749 = vector.extract_strided_slice %747 {offsets = [0, 0], sizes = [1, 256], strides = [1, 1]} : vector<2x256xf32> to vector<1x256xf32>
    %750 = vector.broadcast %748 : f32 to vector<1x256xf32>
    %751 = arith.mulf %750, %749 : vector<1x256xf32>
    %752 = arith.addf %733, %751 : vector<1x256xf32>
    %c117 = arith.constant 117 : index
    %753 = memref.load %arg5[%c117] : memref<144xf32, #tpu.memory_space<smem>>
    %754 = vector.extract_strided_slice %747 {offsets = [1, 0], sizes = [1, 256], strides = [1, 1]} : vector<2x256xf32> to vector<1x256xf32>
    %755 = vector.broadcast %753 : f32 to vector<1x256xf32>
    %756 = arith.mulf %755, %754 : vector<1x256xf32>
    %757 = arith.addf %752, %756 : vector<1x256xf32>
    %c118 = arith.constant 118 : index
    %758 = memref.load %arg5[%c118] : memref<144xf32, #tpu.memory_space<smem>>
    %759 = vector.extract_strided_slice %747 {offsets = [0, 0], sizes = [1, 256], strides = [1, 1]} : vector<2x256xf32> to vector<1x256xf32>
    %760 = vector.broadcast %758 : f32 to vector<1x256xf32>
    %761 = arith.mulf %760, %759 : vector<1x256xf32>
    %762 = arith.addf %743, %761 : vector<1x256xf32>
    %c119 = arith.constant 119 : index
    %763 = memref.load %arg5[%c119] : memref<144xf32, #tpu.memory_space<smem>>
    %764 = vector.extract_strided_slice %747 {offsets = [1, 0], sizes = [1, 256], strides = [1, 1]} : vector<2x256xf32> to vector<1x256xf32>
    %765 = vector.broadcast %763 : f32 to vector<1x256xf32>
    %766 = arith.mulf %765, %764 : vector<1x256xf32>
    %767 = arith.addf %762, %766 : vector<1x256xf32>
    %c1_i32_51 = arith.constant 1 : i32
    %768 = tpu.dynamic_rotate %687 by %c1_i32_51 dim 1 : vector<2x256xf32>, i32 -> vector<2x256xf32>
    %769 = vector.extract_strided_slice %11 {offsets = [3, 0], sizes = [1, 256], strides = [1, 1]} : vector<9x256xf32> to vector<1x256xf32>
    %770 = vector.broadcast %769 : vector<1x256xf32> to vector<2x256xf32>
    %771 = arith.mulf %768, %770 : vector<2x256xf32>
    %c120 = arith.constant 120 : index
    %772 = memref.load %arg5[%c120] : memref<144xf32, #tpu.memory_space<smem>>
    %773 = vector.extract_strided_slice %771 {offsets = [0, 0], sizes = [1, 256], strides = [1, 1]} : vector<2x256xf32> to vector<1x256xf32>
    %774 = vector.broadcast %772 : f32 to vector<1x256xf32>
    %775 = arith.mulf %774, %773 : vector<1x256xf32>
    %776 = arith.addf %757, %775 : vector<1x256xf32>
    %c121 = arith.constant 121 : index
    %777 = memref.load %arg5[%c121] : memref<144xf32, #tpu.memory_space<smem>>
    %778 = vector.extract_strided_slice %771 {offsets = [1, 0], sizes = [1, 256], strides = [1, 1]} : vector<2x256xf32> to vector<1x256xf32>
    %779 = vector.broadcast %777 : f32 to vector<1x256xf32>
    %780 = arith.mulf %779, %778 : vector<1x256xf32>
    %781 = arith.addf %776, %780 : vector<1x256xf32>
    %c122 = arith.constant 122 : index
    %782 = memref.load %arg5[%c122] : memref<144xf32, #tpu.memory_space<smem>>
    %783 = vector.extract_strided_slice %771 {offsets = [0, 0], sizes = [1, 256], strides = [1, 1]} : vector<2x256xf32> to vector<1x256xf32>
    %784 = vector.broadcast %782 : f32 to vector<1x256xf32>
    %785 = arith.mulf %784, %783 : vector<1x256xf32>
    %786 = arith.addf %767, %785 : vector<1x256xf32>
    %c123 = arith.constant 123 : index
    %787 = memref.load %arg5[%c123] : memref<144xf32, #tpu.memory_space<smem>>
    %788 = vector.extract_strided_slice %771 {offsets = [1, 0], sizes = [1, 256], strides = [1, 1]} : vector<2x256xf32> to vector<1x256xf32>
    %789 = vector.broadcast %787 : f32 to vector<1x256xf32>
    %790 = arith.mulf %789, %788 : vector<1x256xf32>
    %791 = arith.addf %786, %790 : vector<1x256xf32>
    %c124 = arith.constant 124 : index
    %792 = memref.load %arg5[%c124] : memref<144xf32, #tpu.memory_space<smem>>
    %793 = vector.extract_strided_slice %687 {offsets = [0, 0], sizes = [1, 256], strides = [1, 1]} : vector<2x256xf32> to vector<1x256xf32>
    %794 = vector.broadcast %792 : f32 to vector<1x256xf32>
    %795 = arith.mulf %794, %793 : vector<1x256xf32>
    %796 = arith.addf %781, %795 : vector<1x256xf32>
    %c125 = arith.constant 125 : index
    %797 = memref.load %arg5[%c125] : memref<144xf32, #tpu.memory_space<smem>>
    %798 = vector.extract_strided_slice %687 {offsets = [1, 0], sizes = [1, 256], strides = [1, 1]} : vector<2x256xf32> to vector<1x256xf32>
    %799 = vector.broadcast %797 : f32 to vector<1x256xf32>
    %800 = arith.mulf %799, %798 : vector<1x256xf32>
    %801 = arith.addf %796, %800 : vector<1x256xf32>
    %c126 = arith.constant 126 : index
    %802 = memref.load %arg5[%c126] : memref<144xf32, #tpu.memory_space<smem>>
    %803 = vector.extract_strided_slice %687 {offsets = [0, 0], sizes = [1, 256], strides = [1, 1]} : vector<2x256xf32> to vector<1x256xf32>
    %804 = vector.broadcast %802 : f32 to vector<1x256xf32>
    %805 = arith.mulf %804, %803 : vector<1x256xf32>
    %806 = arith.addf %791, %805 : vector<1x256xf32>
    %c127 = arith.constant 127 : index
    %807 = memref.load %arg5[%c127] : memref<144xf32, #tpu.memory_space<smem>>
    %808 = vector.extract_strided_slice %687 {offsets = [1, 0], sizes = [1, 256], strides = [1, 1]} : vector<2x256xf32> to vector<1x256xf32>
    %809 = vector.broadcast %807 : f32 to vector<1x256xf32>
    %810 = arith.mulf %809, %808 : vector<1x256xf32>
    %811 = arith.addf %806, %810 : vector<1x256xf32>
    %c255_i32_52 = arith.constant 255 : i32
    %812 = tpu.dynamic_rotate %687 by %c255_i32_52 dim 1 : vector<2x256xf32>, i32 -> vector<2x256xf32>
    %813 = vector.extract_strided_slice %11 {offsets = [5, 0], sizes = [1, 256], strides = [1, 1]} : vector<9x256xf32> to vector<1x256xf32>
    %814 = vector.broadcast %813 : vector<1x256xf32> to vector<2x256xf32>
    %815 = arith.mulf %812, %814 : vector<2x256xf32>
    %c128 = arith.constant 128 : index
    %816 = memref.load %arg5[%c128] : memref<144xf32, #tpu.memory_space<smem>>
    %817 = vector.extract_strided_slice %815 {offsets = [0, 0], sizes = [1, 256], strides = [1, 1]} : vector<2x256xf32> to vector<1x256xf32>
    %818 = vector.broadcast %816 : f32 to vector<1x256xf32>
    %819 = arith.mulf %818, %817 : vector<1x256xf32>
    %820 = arith.addf %801, %819 : vector<1x256xf32>
    %c129 = arith.constant 129 : index
    %821 = memref.load %arg5[%c129] : memref<144xf32, #tpu.memory_space<smem>>
    %822 = vector.extract_strided_slice %815 {offsets = [1, 0], sizes = [1, 256], strides = [1, 1]} : vector<2x256xf32> to vector<1x256xf32>
    %823 = vector.broadcast %821 : f32 to vector<1x256xf32>
    %824 = arith.mulf %823, %822 : vector<1x256xf32>
    %825 = arith.addf %820, %824 : vector<1x256xf32>
    %c130 = arith.constant 130 : index
    %826 = memref.load %arg5[%c130] : memref<144xf32, #tpu.memory_space<smem>>
    %827 = vector.extract_strided_slice %815 {offsets = [0, 0], sizes = [1, 256], strides = [1, 1]} : vector<2x256xf32> to vector<1x256xf32>
    %828 = vector.broadcast %826 : f32 to vector<1x256xf32>
    %829 = arith.mulf %828, %827 : vector<1x256xf32>
    %830 = arith.addf %811, %829 : vector<1x256xf32>
    %c131 = arith.constant 131 : index
    %831 = memref.load %arg5[%c131] : memref<144xf32, #tpu.memory_space<smem>>
    %832 = vector.extract_strided_slice %815 {offsets = [1, 0], sizes = [1, 256], strides = [1, 1]} : vector<2x256xf32> to vector<1x256xf32>
    %833 = vector.broadcast %831 : f32 to vector<1x256xf32>
    %834 = arith.mulf %833, %832 : vector<1x256xf32>
    %835 = arith.addf %830, %834 : vector<1x256xf32>
    %c241_i32_53 = arith.constant 241 : i32
    %836 = tpu.dynamic_rotate %687 by %c241_i32_53 dim 1 : vector<2x256xf32>, i32 -> vector<2x256xf32>
    %837 = vector.extract_strided_slice %11 {offsets = [6, 0], sizes = [1, 256], strides = [1, 1]} : vector<9x256xf32> to vector<1x256xf32>
    %838 = vector.broadcast %837 : vector<1x256xf32> to vector<2x256xf32>
    %839 = arith.mulf %836, %838 : vector<2x256xf32>
    %c132 = arith.constant 132 : index
    %840 = memref.load %arg5[%c132] : memref<144xf32, #tpu.memory_space<smem>>
    %841 = vector.extract_strided_slice %839 {offsets = [0, 0], sizes = [1, 256], strides = [1, 1]} : vector<2x256xf32> to vector<1x256xf32>
    %842 = vector.broadcast %840 : f32 to vector<1x256xf32>
    %843 = arith.mulf %842, %841 : vector<1x256xf32>
    %844 = arith.addf %825, %843 : vector<1x256xf32>
    %c133 = arith.constant 133 : index
    %845 = memref.load %arg5[%c133] : memref<144xf32, #tpu.memory_space<smem>>
    %846 = vector.extract_strided_slice %839 {offsets = [1, 0], sizes = [1, 256], strides = [1, 1]} : vector<2x256xf32> to vector<1x256xf32>
    %847 = vector.broadcast %845 : f32 to vector<1x256xf32>
    %848 = arith.mulf %847, %846 : vector<1x256xf32>
    %849 = arith.addf %844, %848 : vector<1x256xf32>
    %c134 = arith.constant 134 : index
    %850 = memref.load %arg5[%c134] : memref<144xf32, #tpu.memory_space<smem>>
    %851 = vector.extract_strided_slice %839 {offsets = [0, 0], sizes = [1, 256], strides = [1, 1]} : vector<2x256xf32> to vector<1x256xf32>
    %852 = vector.broadcast %850 : f32 to vector<1x256xf32>
    %853 = arith.mulf %852, %851 : vector<1x256xf32>
    %854 = arith.addf %835, %853 : vector<1x256xf32>
    %c135 = arith.constant 135 : index
    %855 = memref.load %arg5[%c135] : memref<144xf32, #tpu.memory_space<smem>>
    %856 = vector.extract_strided_slice %839 {offsets = [1, 0], sizes = [1, 256], strides = [1, 1]} : vector<2x256xf32> to vector<1x256xf32>
    %857 = vector.broadcast %855 : f32 to vector<1x256xf32>
    %858 = arith.mulf %857, %856 : vector<1x256xf32>
    %859 = arith.addf %854, %858 : vector<1x256xf32>
    %c240_i32_54 = arith.constant 240 : i32
    %860 = tpu.dynamic_rotate %687 by %c240_i32_54 dim 1 : vector<2x256xf32>, i32 -> vector<2x256xf32>
    %861 = vector.extract_strided_slice %11 {offsets = [7, 0], sizes = [1, 256], strides = [1, 1]} : vector<9x256xf32> to vector<1x256xf32>
    %862 = vector.broadcast %861 : vector<1x256xf32> to vector<2x256xf32>
    %863 = arith.mulf %860, %862 : vector<2x256xf32>
    %c136 = arith.constant 136 : index
    %864 = memref.load %arg5[%c136] : memref<144xf32, #tpu.memory_space<smem>>
    %865 = vector.extract_strided_slice %863 {offsets = [0, 0], sizes = [1, 256], strides = [1, 1]} : vector<2x256xf32> to vector<1x256xf32>
    %866 = vector.broadcast %864 : f32 to vector<1x256xf32>
    %867 = arith.mulf %866, %865 : vector<1x256xf32>
    %868 = arith.addf %849, %867 : vector<1x256xf32>
    %c137 = arith.constant 137 : index
    %869 = memref.load %arg5[%c137] : memref<144xf32, #tpu.memory_space<smem>>
    %870 = vector.extract_strided_slice %863 {offsets = [1, 0], sizes = [1, 256], strides = [1, 1]} : vector<2x256xf32> to vector<1x256xf32>
    %871 = vector.broadcast %869 : f32 to vector<1x256xf32>
    %872 = arith.mulf %871, %870 : vector<1x256xf32>
    %873 = arith.addf %868, %872 : vector<1x256xf32>
    %c138 = arith.constant 138 : index
    %874 = memref.load %arg5[%c138] : memref<144xf32, #tpu.memory_space<smem>>
    %875 = vector.extract_strided_slice %863 {offsets = [0, 0], sizes = [1, 256], strides = [1, 1]} : vector<2x256xf32> to vector<1x256xf32>
    %876 = vector.broadcast %874 : f32 to vector<1x256xf32>
    %877 = arith.mulf %876, %875 : vector<1x256xf32>
    %878 = arith.addf %859, %877 : vector<1x256xf32>
    %c139 = arith.constant 139 : index
    %879 = memref.load %arg5[%c139] : memref<144xf32, #tpu.memory_space<smem>>
    %880 = vector.extract_strided_slice %863 {offsets = [1, 0], sizes = [1, 256], strides = [1, 1]} : vector<2x256xf32> to vector<1x256xf32>
    %881 = vector.broadcast %879 : f32 to vector<1x256xf32>
    %882 = arith.mulf %881, %880 : vector<1x256xf32>
    %883 = arith.addf %878, %882 : vector<1x256xf32>
    %c239_i32_55 = arith.constant 239 : i32
    %884 = tpu.dynamic_rotate %687 by %c239_i32_55 dim 1 : vector<2x256xf32>, i32 -> vector<2x256xf32>
    %885 = vector.extract_strided_slice %11 {offsets = [8, 0], sizes = [1, 256], strides = [1, 1]} : vector<9x256xf32> to vector<1x256xf32>
    %886 = vector.broadcast %885 : vector<1x256xf32> to vector<2x256xf32>
    %887 = arith.mulf %884, %886 : vector<2x256xf32>
    %c140 = arith.constant 140 : index
    %888 = memref.load %arg5[%c140] : memref<144xf32, #tpu.memory_space<smem>>
    %889 = vector.extract_strided_slice %887 {offsets = [0, 0], sizes = [1, 256], strides = [1, 1]} : vector<2x256xf32> to vector<1x256xf32>
    %890 = vector.broadcast %888 : f32 to vector<1x256xf32>
    %891 = arith.mulf %890, %889 : vector<1x256xf32>
    %892 = arith.addf %873, %891 : vector<1x256xf32>
    %c141 = arith.constant 141 : index
    %893 = memref.load %arg5[%c141] : memref<144xf32, #tpu.memory_space<smem>>
    %894 = vector.extract_strided_slice %887 {offsets = [1, 0], sizes = [1, 256], strides = [1, 1]} : vector<2x256xf32> to vector<1x256xf32>
    %895 = vector.broadcast %893 : f32 to vector<1x256xf32>
    %896 = arith.mulf %895, %894 : vector<1x256xf32>
    %897 = arith.addf %892, %896 : vector<1x256xf32>
    %c142 = arith.constant 142 : index
    %898 = memref.load %arg5[%c142] : memref<144xf32, #tpu.memory_space<smem>>
    %899 = vector.extract_strided_slice %887 {offsets = [0, 0], sizes = [1, 256], strides = [1, 1]} : vector<2x256xf32> to vector<1x256xf32>
    %900 = vector.broadcast %898 : f32 to vector<1x256xf32>
    %901 = arith.mulf %900, %899 : vector<1x256xf32>
    %902 = arith.addf %883, %901 : vector<1x256xf32>
    %c143 = arith.constant 143 : index
    %903 = memref.load %arg5[%c143] : memref<144xf32, #tpu.memory_space<smem>>
    %904 = vector.extract_strided_slice %887 {offsets = [1, 0], sizes = [1, 256], strides = [1, 1]} : vector<2x256xf32> to vector<1x256xf32>
    %905 = vector.broadcast %903 : f32 to vector<1x256xf32>
    %906 = arith.mulf %905, %904 : vector<1x256xf32>
    %907 = arith.addf %902, %906 : vector<1x256xf32>
    %cst_56 = arith.constant 0.000000e+00 : f32
    %908 = vector.broadcast %cst_56 : f32 to vector<1x256xf32>
    %909 = arith.maximumf %897, %908 : vector<1x256xf32>
    %cst_57 = arith.constant 0.000000e+00 : f32
    %910 = vector.broadcast %cst_57 : f32 to vector<1x256xf32>
    %911 = arith.maximumf %907, %910 : vector<1x256xf32>
    %912 = tpu.concatenate %909, %911 in 0 : vector<1x256xf32>, vector<1x256xf32> -> vector<2x256xf32>
    %913 = arith.addf %462, %912 : vector<2x256xf32>
    %914 = tpu.concatenate %913, %10 in 0 : vector<2x256xf32>, vector<2x256xf32> -> vector<4x256xf32>
    %c0_58 = arith.constant 0 : index
    %c0_59 = arith.constant 0 : index
    %915 = vector.load %arg7[%c0_58, %c0_59] : memref<4x4xf32, #tpu.memory_space<vmem>>, vector<4x4xf32>
    %cst_60 = arith.constant dense<0.000000e+00> : vector<4x256xf32>
    %916 = tpu.matmul %915, %914, %cst_60 {dimension_numbers = #tpu.dot_dimension_numbers<[1], [0], [0], [1], [0, 0, 1, 1], [], []>} : vector<4x4xf32>, vector<4x256xf32>, vector<4x256xf32> -> vector<4x256xf32>
    %c0_61 = arith.constant 0 : index
    %c0_62 = arith.constant 0 : index
    %917 = vector.load %arg8[%c0_61, %c0_62] : memref<4x1xf32, #tpu.memory_space<vmem>>, vector<4x1xf32>
    %918 = vector.broadcast %917 : vector<4x1xf32> to vector<4x256xf32>
    %919 = arith.addf %916, %918 : vector<4x256xf32>
    %cst_63 = arith.constant 0.000000e+00 : f32
    %920 = vector.broadcast %cst_63 : f32 to vector<4x256xf32>
    %921 = arith.maximumf %919, %920 : vector<4x256xf32>
    %c0_64 = arith.constant 0 : index
    %c0_65 = arith.constant 0 : index
    %c0_66 = arith.constant 0 : index
    %922 = vector.load %arg9[%c0_64, %c0_65, %c0_66] : memref<1x4x256xf32, #tpu.memory_space<vmem>>, vector<1x4x256xf32>
    %923 = vector.shape_cast %922 : vector<1x4x256xf32> to vector<4x256xf32>
    %924 = vector.shape_cast %921 : vector<4x256xf32> to vector<1x4x256xf32>
    tpu.vector_store %arg9[%c0_64, %c0_65, %c0_66], %924 {strides = array<i32>} : memref<1x4x256xf32, #tpu.memory_space<vmem>>, vector<1x4x256xf32>,
    return
  }
  func.func @transform_0(%arg0: i32) -> (i32, i32, i32) {
    %c0_i32 = arith.constant 0 : i32
    %c0_i32_0 = arith.constant 0 : i32
    %c0_i32_1 = arith.constant 0 : i32
    return %arg0, %c0_i32, %c0_i32_0 : i32, i32, i32
  }
  func.func @transform_1(%arg0: i32) -> (i32, i32) {
    %c0_i32 = arith.constant 0 : i32
    %c0_i32_0 = arith.constant 0 : i32
    %c0_i32_1 = arith.constant 0 : i32
    return %c0_i32, %c0_i32_0 : i32, i32
  }
  func.func @transform_2(%arg0: i32) -> (i32, i32) {
    %c0_i32 = arith.constant 0 : i32
    %c0_i32_0 = arith.constant 0 : i32
    %c0_i32_1 = arith.constant 0 : i32
    return %c0_i32, %c0_i32_0 : i32, i32
  }
  func.func @transform_3(%arg0: i32) -> (i32, i32) {
    %c0_i32 = arith.constant 0 : i32
    %c0_i32_0 = arith.constant 0 : i32
    %c0_i32_1 = arith.constant 0 : i32
    return %c0_i32, %c0_i32_0 : i32, i32
  }
  func.func @transform_4(%arg0: i32) -> i32 {
    %c0_i32 = arith.constant 0 : i32
    %c0_i32_0 = arith.constant 0 : i32
    return %c0_i32 : i32
  }
  func.func @transform_5(%arg0: i32) -> i32 {
    %c0_i32 = arith.constant 0 : i32
    %c0_i32_0 = arith.constant 0 : i32
    return %c0_i32 : i32
  }
  func.func @transform_6(%arg0: i32) -> (i32, i32) {
    %c0_i32 = arith.constant 0 : i32
    %c0_i32_0 = arith.constant 0 : i32
    %c0_i32_1 = arith.constant 0 : i32
    return %c0_i32, %c0_i32_0 : i32, i32
  }
  func.func @transform_7(%arg0: i32) -> (i32, i32) {
    %c0_i32 = arith.constant 0 : i32
    %c0_i32_0 = arith.constant 0 : i32
    %c0_i32_1 = arith.constant 0 : i32
    return %c0_i32, %c0_i32_0 : i32, i32
  }
  func.func @transform_8(%arg0: i32) -> (i32, i32, i32) {
    %c0_i32 = arith.constant 0 : i32
    %c0_i32_0 = arith.constant 0 : i32
    %c0_i32_1 = arith.constant 0 : i32
    return %arg0, %c0_i32, %c0_i32_0 : i32, i32, i32
  }
}

</mosaic_0001>

<bundles_post_ra>
// kernel: tpu_custom_call.1
= control target key start
LH: loop header
LB: loop body
LE: loop exit
PB: predicated region body
PF: predicated region fallthrough
CT: control target
= control target key end

     0   :  { %s4248_s0 = inlined_call_operand.hbm [shape: f32[2,4,256], index: 0, kind: input, shape index: {}]   ;;  %s4249_s1 = inlined_call_operand.hbm [shape: f32[9,256], index: 1, kind: input, shape index: {}]   ;;  %s4250_s2 = inlined_call_operand.vmem [shape: f32[4,4], index: 2, kind: input, shape index: {}]   ;;  %s4251_s3 = inlined_call_operand.vmem [shape: f32[4,1], index: 3, kind: input, shape index: {}]   ;;  %s4252_s4 = inlined_call_operand.vmem [shape: f32[144], index: 4, kind: input, shape index: {}]   ;;  %s4253_s5 = inlined_call_operand.vmem [shape: f32[8], index: 5, kind: input, shape index: {}]   ;;  %s4254_s6 = inlined_call_operand.vmem [shape: f32[4,4], index: 6, kind: input, shape index: {}]   ;;  %s4255_s7 = inlined_call_operand.vmem [shape: f32[4,1], index: 7, kind: input, shape index: {}]   ;;  %s4256_s8 = inlined_call_operand.hbm [shape: f32[2,4,256], index: 8, kind: output, shape index: {}]  }
   0x1   :  { %4288 = sst [smem:[#allocation27_spill]] %s4248_s0 }
   0x2   :  { %4289 = sst [smem:[#allocation28_spill]] %s4249_s1 }
   0x3   :  { %4290 = sst [smem:[#allocation29_spill]] %s4250_s2 }
   0x4   :  { %4291 = sst [smem:[#allocation30_spill]] %s4251_s3 }
   0x5   :  { %4292 = sst [smem:[#allocation31_spill]] %s4252_s4 }
   0x6   :  { %4293 = sst [smem:[#allocation32_spill]] %s4253_s5 }
   0x7   :  { %4294 = sst [smem:[#allocation33_spill]] %s4254_s6 }
   0x8   :  { %4295 = sst [smem:[#allocation34_spill]] %s4255_s7 }
   0x9   :  { %4296 = sst [smem:[#allocation35_spill]] %s4256_s8 }
   0xa   :  { %13 = vsyncpa [#allocation3], 0 }
   0xb   :  { %15 = vsyncpa [#allocation3 + $0x1], 0 }
   0xc   :  { %16 = vsyncpa [#allocation7], 0 }
   0xd   :  { %17 = vsyncpa [#allocation5], 0 }
   0xe   :  { %18 = vsyncpa [#allocation10], 0 }
   0xf   :  { %19 = vsyncpa [#allocation4], 0 }
  0x10   :  { %21 = vsyncpa [#allocation4 + $0x1], 0  ;;  %s2779_s27 = smov 0   ;;  %s2781_s28 = smov 0  }
  0x11   :  { %s2783_s29 = smov 0   ;;  %s2785_s30 = smov 0  }
  0x12 LB: > { %4297 = sst [smem:[#allocation17_spill]] %s2706_s27  ;;  %s2803_s12 = sadd.s32 4294967295, %s2718_s30   ;;  %s2718_s30 = sphi %s2785_s30, %s4415_s30   ;;  %s2714_s29 = sphi %s2783_s29, %s4418_s29   ;;  %s2710_s28 = sphi %s2781_s28, %s4417_s28   ;;  %s2706_s27 = sphi %s2779_s27, %s4416_s27  }
  0x13   : > { %4298 = sst [smem:[#allocation18_spill]] %s2710_s28  ;;  %p2277_p0 = scmp.ge.s32.totalorder %s2718_s30, 1 }
  0x14   : > { %4299 = sst [smem:[#allocation19_spill]] %s2714_s29  ;;  %p48_p1 = scmp.eq.s32.totalorder %s2803_s12, 0 }
  0x15   : > { %4300 = sst [smem:[#allocation20_spill]] %s2718_s30  ;;  %p231_p2 = scmp.lt.s32.totalorder %s2718_s30, 3 }
  0x16   : > { %s4301_s1 = sld [smem:[#allocation28_spill]]  ;;  %s2720_s14 = smov [#allocation6]  }
  0x17   : > { %4302 = sst [smem:[#allocation21_spill]] %s2803_s12  ;;  %p2808_p3 = pnand %p2277_p0, %p231_p2 }
  0x18   : > { %s244_s15 = sshll.u32 %s2720_s14, 4  ;;  %s4304_s4 = sld [smem:[#allocation31_spill]]  ;;  %s245_s15 = int_to_ptr.vmem [resolvable:$true] %s244_s15 }
  0x19   : > { %p2472_p4 = pneg %p2808_p3  ;;  %s4305_s5 = sld [smem:[#allocation32_spill]] }
  0x1a   : > { %s2721_s22 = smov 256   ;;  %s2722_s23 = smov 16  }
  0x1b   : > { %p2473_p6 = pnand %p2472_p4, %p48_p1  ;;  %s2723_s24 = smov [#allocation8]  }
  0x1c   : > { %s242_s11 = sshll.u32 %s4301_s1, 4  ;;  %s2724_s25 = smov [#allocation9]   ;;  %s243_s11 = int_to_ptr.hbm [resolvable:$true] %s242_s11 }
  0x1d   : > { %2475 = dma.hbm_to_vmem [thread:$0]  (!%p2473_p6), %s243_s11, 512, %s245_s15, [#allocation7], %s2721_s22, %s2721_s22, %s2722_s23  }
  0x1e   : > { %s263_s18 = sshll.u32 %s4304_s4, 4  ;;  %s2276_s26 = sadd.s32 4294967294, %s2718_s30   ;;  %s264_s18 = int_to_ptr.vmem [resolvable:$true] %s263_s18 }
  0x1f   : > { %s273_s21 = sshll.u32 %s4305_s5, 4  ;;  %s2825_s9 = sadd.s32 1, %s2718_s30   ;;  %s274_s21 = int_to_ptr.vmem [resolvable:$true] %s273_s21 }
  0x20   : > { %2478 = dma.vmem_to_smem (!%p2473_p6), %s264_s18, 32, %s2723_s24, [#allocation5]  }
  0x21   : > { %2481 = dma.vmem_to_smem (!%p2473_p6), %s274_s21, 16, %s2724_s25, [#allocation10]  }
  0x22   : > { %4306 = sst [smem:[#allocation22_spill]] %s2825_s9  ;;  %s34_s10 = sadd.s32 1, %s2714_s29 }
  0x23   : > { %s31_s14 = ssub.s32 %s2718_s30, %s2825_s9  ;;  %p41_p7 = scmp.ne.s32.totalorder %s2714_s29, %s2710_s28 }
  0x24   : > { %p32_p8 = scmp.eq.s32.totalorder %s31_s14, 0  ;;  %p42_p9 = scmp.eq.s32.totalorder %s2718_s30, 0 }
  0x25   : > { %p47_p10 = scmp.ne.s32.totalorder %s2710_s28, %s2706_s27  ;;  %p218_p11 = scmp.eq.s32.totalorder %s2803_s12, 1 }
  0x26   : > { %s2837_s16 = scalar_select %p32_p8, %s2714_s29, %s34_s10  }
  0x27   : > { %p2841_p12 = por %p48_p1, %p47_p10  ;;  %p2845_p13 = por %p218_p11, %p41_p7 }
  0x28   : > { %4307 = sst [smem:[#allocation23_spill]] %s2837_s16  ;;  %p224_p0 = scmp.eq.s32.totalorder %s2276_s26, 1 }
  0x29   : > { %s4309_s15 = scalar_select %p2845_p13, 1, 0 }
  0x2a   : > { %p43_p2 = por %p42_p9, %p41_p7  ;;  %s290_s17 = sand.u32 1, %s2714_s29  }
  0x2b   : > { %4310 = sst [smem:[#allocation24_spill]] %s4309_s15  ;;  %p2850_p4 = por %p224_p0, %p47_p10 }
  0x2c   : > { %p2493_p6 = scmp.lt.s32.totalorder %s2718_s30, 2  ;;  %s2282_s19 = sshll.u32 %s290_s17, 3 }
  0x2d   : > { %s4311_s18 = scalar_select %p2850_p4, 1, 0 }
  0x2e   : > { %s2454_s20 = sshll.u32 %s2718_s30, 3  ;;  %s4313_s0 = sld [smem:[#allocation27_spill]] }
  0x2f   : > { %4312 = sst [smem:[#allocation25_spill]] %s4311_s18  ;;  %s294_s25 = scalar_lea.vmem [#allocation2], %s2282_s19 }
  0x30   : > { %s303_s10 = sshll.u32 %s294_s25, 4  ;;  %p2859_p8 = pnand %p2493_p6, %p43_p2  ;;  %s304_s10 = int_to_ptr.vmem [resolvable:$true] %s303_s10 }
  0x31   : > { %s291_s14 = scalar_lea.sflag [#allocation3], %s290_s17 }
  0x32   : > { %p2614_p9 = pneg %p2859_p8 }
  0x34   : > { %s299_s23 = scalar_lea.hbm %s4313_s0, %s2454_s20  ;;  %s2617_s19 = scalar_lea.hbm %s4313_s0, 16 }
  0x35   : > { %s301_s24 = sshll.u32 %s299_s23, 4  ;;  %s302_s24 = int_to_ptr.hbm [resolvable:$true] %s301_s24 }
  0x36   : > { %s2610_s1 = sshra.s32 %s302_s24, 4  ;;  %s2611_s1 = int_to_ptr.hbm [resolvable:$true] %s2610_s1 }
  0x37   : > { %s2612_s4 = scalar_lea.hbm %s2611_s1, 8  ;;  %p2618_p0 = scmp.lt.s32.totalorder %s2611_s1, %s4313_s0 }
  0x38   : > { %p2613_p7 = scmp.ne.s32.totalorder %s2611_s1, %s2612_s4  ;;  %p2619_p2 = scmp.lt.s32.totalorder %s2617_s19, %s2612_s4 }
  0x3a   : > { %p2615_p10 = pnand %p2614_p9, %p2613_p7  ;;  %p2620_p6 = por %p2619_p2, %p2618_p0 }
  0x3c   : > { %p2616_p11 = pneg %p2615_p10 }
  0x3e   : > { %p2621_p5 = pnand %p2620_p6, %p2616_p11 }
  0x40   : > { %2624 = shalt.err (!%p2621_p5)
}
  0x41   : > { %2485 = dma.hbm_to_vmem [thread:$0]  (!%p2859_p8), %s302_s24, 128, %s304_s10, %s291_s14  }
  0x42   : > { %312 = sbr.rel (%p2808_p3) target bundleno = 1100 (0x44c), region = 52 }
  0x47   : > { %s2876_s17 = sand.u32 1, %s2710_s28  }
  0x48   : > { %4315 = sst [smem:[#allocation26_spill]] %s2876_s17  ;;  %s4257_s25 = sshll.u32 %s2876_s17, 3 }
  0x49   : > { %s315_s20 = scalar_lea.sflag [#allocation3], %s2876_s17  ;;  %s318_s1 = scalar_lea.vmem [#allocation2], %s4257_s25 }
  0x4a   : > { %2685 = dma.done.wait (%p2841_p12), %s315_s20, 128  }
  0x4b   : > { %2687 = vsyncadd (%p2841_p12), %s315_s20, 4294967168 }
  0x4c   : > { %2689 = dma.done.wait (%p48_p1), [#allocation7], 512  }
  0x4d   : > { %2691 = vsyncadd (%p48_p1), [#allocation7], 4294966784 }
  0x4e   : > { %2693 = dma.done.wait (%p48_p1), [#allocation5], 32  }
  0x4f   : > { %2695 = vsyncadd (%p48_p1), [#allocation5], 4294967264 }
  0x50   : > { %2697 = dma.done.wait (%p48_p1), [#allocation10], 16  }
  0x51   : > { %2699 = vsyncadd (%p48_p1), [#allocation10], 4294967280 }
  0x52   : > { %339 = sfence }
  0x53   : > { %v369_v0 = vld [vmem:[%s318_s1] sm:$0xff]  ;;  %v2725_v1 = vmov 0   ;;  %s4316_s3 = sld [smem:[#allocation30_spill]]  ;;  %vm384_vm0 = vcmask 1043456   ;;  %vm380_vm1 = vcmask 31744   ;;  %s4272_s10 = smov 16   ;;  %v445_v15 = vlaneseq }
  0x54   : > { %377 = vst [vmem:[#allocation1] ss:$2 sm:$0xff] %v369_v0  ;;  %2544 = vset.pattern.permute.xlu0 %v2725_v1  ;;  %2545 = vset.pattern.permute.xlu2 %v2725_v1  ;;  %s4317_s2 = sld [smem:[#allocation29_spill]]  ;;  %s4270_s26 = smov 17   ;;  %v3000_v23 = vld [vmem:[#allocation6] sm:$0xff]  ;;  %v3002_v24 = vld [vmem:[#allocation6 + $0x8] sm:$0xff] }
  0x55   : > { %s4268_s14 = smov 15   ;;  %s4262_s21 = smov 1   ;;  %v2996_v22 = vand.u32 127, %v445_v15  ;;  %v3033_v37 = vperm.slane %v3000_v23, 0  ;;  %v3036_v38 = vperm.slane %v3002_v24, 0  ;;  %v3044_v42 = vperm.slane %v3000_v23, 1 }
  0x56   : > { %s4264_s19 = smov 127   ;;  %s4258_s22 = smov 113   ;;  %v3047_v43 = vperm.slane %v3002_v24, 1  ;;  %v3055_v48 = vperm.slane %v3000_v23, 2  ;;  %v3058_v49 = vperm.slane %v3002_v24, 2  ;;  %v3066_v55 = vperm.slane %v3000_v23, 3 }
  0x57   : > { %s4260_s23 = smov 112   ;;  %s4266_s20 = smov 111   ;;  %vm447_vm2 = vcmp.lt.s32.totalorder %v2996_v22, 17  ;;  %vm494_vm3 = vcmp.lt.s32.totalorder %v2996_v22, 16  ;;  %vm541_vm4 = vcmp.lt.s32.totalorder %v2996_v22, 15  ;;  %v3069_v56 = vperm.slane %v3002_v24, 3 }
  0x58   : > { %s2944_s1 = sld [smem:[#allocation8 + $0x10]]  ;;  %v3084_v0 = vperm.slane %v3000_v23, 5  ;;  %v3087_v1 = vperm.slane %v3002_v24, 5  ;;  %vm588_vm5 = vcmp.lt.s32.totalorder %v2996_v22, 1  ;;  %vm671_vm6 = vcmp.lt.s32.totalorder %v2996_v22, 127 }
  0x59   : > { %v370_v2 = vld [vmem:[%s4316_s3] sm:$0xf]  ;;  %s2946_s4 = sld [smem:[#allocation8 + $0x12]]  ;;  %vm718_vm7 = vcmp.lt.s32.totalorder %v2996_v22, 113  ;;  %vm765_vm8 = vcmp.lt.s32.totalorder %v2996_v22, 112  ;;  %vm812_vm9 = vcmp.lt.s32.totalorder %v2996_v22, 111 }
  0x5a   : > { %373 = vperm.xlu0 %2544, %v370_v2   ;;  %v368_v3 = vld [vmem:[%s4317_s2] sm:$0xf]  ;;  %s2312_s13 = sld [smem:[#allocation8 + $0x11]]  ;;  %vm865_vm10 = vcmask 1040384   ;;  %vm2090_vm11 = vcmask 1041408  }
  0x5b   : > { %v378_v4 = vld.sshfl [vmem:[#allocation1] sm:$0xff pattern:$0x75316420]  ;;  %v379_v5 = vld.sshfl [vmem:[#allocation1 + $0x8] sm:$0xff pattern:$0x75316420] }
  0x5c   : > { %2291 = vmatpush.msk.msra.mxu0 %vm384_vm0, %v378_v4  ;;  %2293 = vmatpush.msk.msra.mxu1 %vm384_vm0, %v379_v5  ;;  %s2314_s11 = sld [smem:[#allocation8 + $0x13]] }
  0x5d   : > { %2292 = vmatmul.msk.f32.vlgmr.msra.gmra.mxu0 %vm380_vm1, %v368_v3  ;;  %2294 = vmatmul.msk.f32.vlgmr.msra.gmra.mxu1 %vm380_vm1, %v368_v3  ;;  %s2948_s24 = sld [smem:[#allocation8]] }
  0x5e   : > { %s2950_s25 = sld [smem:[#allocation8 + $0x1]]  ;;  %v632_v16 = vstv %s2944_s1 }
  0x5f   : > { %s2968_s0 = sld [smem:[#allocation8 + $0x8]]  ;;  %v650_v17 = vstv %s2946_s4 }
  0x60   : > { %s2970_s2 = sld [smem:[#allocation8 + $0x9]]  ;;  %v638_v13 = vstv %s2312_s13 }
  0x61   : > { %s2972_s3 = sld [smem:[#allocation8 + $0xa]] }
  0x62   : > { %v656_v14 = vstv %s2314_s11  ;;  %s2974_s5 = sld [smem:[#allocation8 + $0xb]] }
  0x63   : > { %s2976_s16 = sld [smem:[#allocation8 + $0xc]]  ;;  %v455_v34 = vstv %s2948_s24  ;;  %s4330_s24 = smov 127  }
  0x64   : > { %s2979_s29 = sld [smem:[#allocation8 + $0xd]]  ;;  %v461_v39 = vstv %s2950_s25 }
  0x65   : > { %s2991_s13 = sld [smem:[#allocation8 + $0xe]]  ;;  %v549_v50 = vstv %s2968_s0 }
  0x66   : > { %s2998_s1 = sld [smem:[#allocation8 + $0xf]]  ;;  %v555_v51 = vstv %s2970_s2 }
  0x67   : > { %s3013_s4 = sld [smem:[#allocation8 + $0x14]]  ;;  %v567_v53 = vstv %s2972_s3 }
  0x68   : > { %s3020_s11 = sld [smem:[#allocation8 + $0x15]]  ;;  %v573_v54 = vstv %s2974_s5 }
  0x69   : > { %s3026_s28 = sld [smem:[#allocation8 + $0x16]]  ;;  %v596_v58 = vstv %s2976_s16 }
  0x6a   : > { %s3071_s25 = sld [smem:[#allocation8 + $0x18]]  ;;  %v602_v59 = vstv %s2979_s29 }
  0x6b   : > { %v614_v60 = vstv %s2991_s13  ;;  %s3210_s0 = sld [smem:[#allocation8 + $0x1c]]  ;;  %s4331_s13 = smov 1  }
  0x6c   : > { %v620_v61 = vstv %s2998_s1  ;;  %s3220_s2 = sld [smem:[#allocation8 + $0x1d]]  ;;  %s4332_s1 = smov 113  }
  0x6d   : > { %v679_v4 = vstv %s3013_s4  ;;  %s3222_s3 = sld [smem:[#allocation8 + $0x1e]]  ;;  %s4333_s4 = smov 111  }
  0x6e   : > { %s3228_s5 = sld [smem:[#allocation8 + $0x1f]] }
  0x6f   : > { %s3258_s29 = sld [smem:[#allocation8 + $0x21]] }
  0x70   : > { %s3262_s16 = sld [smem:[#allocation8 + $0x22]] }
  0x71   : > { %s3328_s9 = sld [smem:[#allocation8 + $0x2b]] }
  0x72   : > { %s3330_s30 = sld [smem:[#allocation8 + $0x2c]] }
  0x73   : > { %s3332_s18 = sld [smem:[#allocation8 + $0x2d]] }
  0x74   : > { %s3334_s27 = sld [smem:[#allocation8 + $0x2e]] }
  0x75   : > { %s3336_s15 = sld [smem:[#allocation8 + $0x2f]] }
  0x76   : > { %s3338_s8 = sld [smem:[#allocation8 + $0x30]] }
  0x77   : > { %s3340_s17 = sld [smem:[#allocation8 + $0x31]] }
  0x78   : > { %s3344_s6 = sld [smem:[#allocation8 + $0x32]] }
  0x79   : > { %s3636_s12 = sld [smem:[#allocation8 + $0x57]] }
  0x7a   : > { %s3640_s7 = sld [smem:[#allocation8 + $0x60]] }
  0xcc   : > { %v374_v6 = vpop.permute.xlu0 %373 }
  0xda   : > { %v406_v7 = vpop.f32.mrf.mxu0  ;;  %v426_v8 = vpop.f32.mrf.mxu1 }
  0xdb   : > { %v407_v9 = vadd.f32 %v406_v7, %v374_v6  ;;  %v427_v10 = vadd.f32 %v426_v8, %v374_v6  ;;  %v3096_v8 = vperm.slane %v3000_v23, 6 }
  0xdd   : > { %v2908_v11 = vmax.f32 %v407_v9, 0.0  ;;  %v2910_v12 = vmax.f32 %v427_v10, 0.0  ;;  %v3099_v9 = vperm.slane %v3002_v24, 6 }
  0xdf   : > { %492 = vrot.lane.b32.xlu2 %v2910_v12, %s4272_s10  ;;  %443 = vrot.lane.b32.xlu1 %v2910_v12, %s4270_s26  ;;  %v2983_v18 = vmul.f32 %v638_v13, %v2910_v12  ;;  %v2986_v19 = vmul.f32 %v656_v14, %v2910_v12  ;;  %v2989_v20 = vmul.f32 %v638_v13, %v2908_v11 }
  0xe0   : > { %441 = vrot.lane.b32.xlu0 %v2908_v11, %s4270_s26  ;;  %s2964_s26 = sld [smem:[#allocation8 + $0x6]]  ;;  %v2994_v21 = vmul.f32 %v656_v14, %v2908_v11  ;;  %v3005_v25 = vmul.f32 %v632_v16, %v2910_v12  ;;  %v3008_v26 = vmul.f32 %v650_v17, %v2910_v12  ;;  %v3011_v27 = vmul.f32 %v632_v16, %v2908_v11 }
  0xe1   : > { %v3016_v28 = vmul.f32 %v650_v17, %v2908_v11  ;;  %v643_v31 = vrot.slane %v2989_v20, 1 }
  0xe6   : > { %v520_v46 = vstv %s2964_s26  ;;  %s4327_s26 = smov 16  }
  0xe7   : > { %537 = vrot.lane.b32.xlu2 %v2908_v11, %s4268_s14  ;;  %490 = vrot.lane.b32.xlu1 %v2908_v11, %s4272_s10  ;;  %s2966_s10 = sld [smem:[#allocation8 + $0x7]] }
  0xe8   : > { %539 = vrot.lane.b32.xlu0 %v2910_v12, %s4268_s14  ;;  %s2962_s14 = sld [smem:[#allocation8 + $0x5]] }
  0xed   : > { %v526_v47 = vstv %s2966_s10  ;;  %s3267_s10 = sld [smem:[#allocation8 + $0x23]] }
  0xee   : > { %v508_v45 = vstv %s2962_s14  ;;  %s3138_s14 = sld [smem:[#allocation8 + $0x1b]] }
  0xef   : > { %586 = vrot.lane.b32.xlu2 %v2910_v12, %s4262_s21  ;;  %584 = vrot.lane.b32.xlu1 %v2908_v11, %s4262_s21  ;;  %s2956_s21 = sld [smem:[#allocation8 + $0x2]] }
  0xf0   : > { %667 = vrot.lane.b32.xlu0 %v2908_v11, %s4264_s19 }
  0xf5   : > { %v473_v40 = vstv %s2956_s21  ;;  %s3077_s21 = sld [smem:[#allocation8 + $0x19]] }
  0xf7   : > { %714 = vrot.lane.b32.xlu2 %v2908_v11, %s4258_s22  ;;  %669 = vrot.lane.b32.xlu1 %v2910_v12, %s4264_s19  ;;  %s2958_s19 = sld [smem:[#allocation8 + $0x3]] }
  0xf8   : > { %716 = vrot.lane.b32.xlu0 %v2910_v12, %s4258_s22  ;;  %s2952_s22 = sld [smem:[#allocation9]] }
  0xfd   : > { %v479_v41 = vstv %s2958_s19  ;;  %s3136_s19 = sld [smem:[#allocation8 + $0x1a]] }
  0xfe   : > { %v436_v32 = vstv %s2952_s22  ;;  %s3039_s22 = sld [smem:[#allocation8 + $0x17]] }
  0xff   : > { %763 = vrot.lane.b32.xlu2 %v2910_v12, %s4260_s23  ;;  %761 = vrot.lane.b32.xlu1 %v2908_v11, %s4260_s23  ;;  %s2954_s23 = sld [smem:[#allocation9 + $0x1]] }
 0x100   : > { %808 = vrot.lane.b32.xlu0 %v2908_v11, %s4266_s20 }
 0x105   : > { %v439_v33 = vstv %s2954_s23  ;;  %s4328_s23 = smov 17  }
 0x107   : > { %810 = vrot.lane.b32.xlu1 %v2910_v12, %s4266_s20  ;;  %s2960_s20 = sld [smem:[#allocation8 + $0x4]] }
 0x10d   : > { %v502_v44 = vstv %s2960_s20  ;;  %s4329_s20 = smov 15  }
 0x139   : > { %v3029_v36 = vpop.permute.xlu2 %492 }
 0x141   : > { %v538_v16 = vpop.permute.xlu2 %537 }
 0x151   : > { %v444_v52 = vpop.permute.xlu1 %443 }
 0x152   : > { %v442_v57 = vpop.permute.xlu0 %441 }
 0x153   : > { %v448_v62 = vsel %vm447_vm2, %v442_v57, %v444_v52  ;;  %v449_v63 = vsel %vm447_vm2, %v444_v52, %v442_v57 }
 0x154   : > { %v452_v2 = vmul.f32 %v3033_v37, %v449_v63  ;;  %v453_v3 = vmul.f32 %v3036_v38, %v448_v62 }
 0x156   : > { %v456_v10 = vmul.f32 %v455_v34, %v452_v2  ;;  %v457_v13 = vmul.f32 %v455_v34, %v453_v3  ;;  %v462_v14 = vmul.f32 %v461_v39, %v452_v2  ;;  %v463_v15 = vmul.f32 %v461_v39, %v453_v3 }
 0x157   : > { %v474_v17 = vmul.f32 %v473_v40, %v452_v2  ;;  %v475_v52 = vmul.f32 %v473_v40, %v453_v3  ;;  %v480_v57 = vmul.f32 %v479_v41, %v452_v2  ;;  %v481_v62 = vmul.f32 %v479_v41, %v453_v3 }
 0x158   : > { %v458_v63 = vadd.f32 %v456_v10, %v436_v32  ;;  %v459_v7 = vadd.f32 %v457_v13, %v436_v32  ;;  %v466_v6 = vrot.slane %v462_v14, 1  ;;  %v467_v30 = vrot.slane %v463_v15, 1 }
 0x159   : > { %v476_v35 = vadd.f32 %v474_v17, %v439_v33  ;;  %v477_v5 = vadd.f32 %v475_v52, %v439_v33  ;;  %v484_v34 = vrot.slane %v480_v57, 1  ;;  %v485_v39 = vrot.slane %v481_v62, 1  ;;  %v491_v29 = vpop.permute.xlu1 %490 }
 0x15a   : > { %v495_v40 = vsel %vm494_vm3, %v491_v29, %v3029_v36  ;;  %v496_v32 = vsel %vm494_vm3, %v3029_v36, %v491_v29  ;;  %v540_v41 = vpop.permute.xlu0 %539  ;;  %v726_v2 = vstv %s3071_s25  ;;  %v732_v33 = vstv %s3077_s21  ;;  %s3308_s25 = sld [smem:[#allocation8 + $0x36]] }
 0x15b   : > { %v470_v3 = vadd.f32 %v466_v6, %v458_v63  ;;  %v471_v10 = vadd.f32 %v467_v30, %v459_v7  ;;  %v499_v13 = vmul.f32 %v3044_v42, %v496_v32  ;;  %v500_v14 = vmul.f32 %v3047_v43, %v495_v40  ;;  %s2350_s21 = sld [smem:[#allocation8 + $0x35]] }
 0x15c   : > { %v488_v15 = vadd.f32 %v484_v34, %v476_v35  ;;  %v489_v17 = vadd.f32 %v485_v39, %v477_v5  ;;  %v542_v52 = vsel %vm541_vm4, %v538_v16, %v540_v41  ;;  %v543_v29 = vsel %vm541_vm4, %v540_v41, %v538_v16 }
 0x15d   : > { %v503_v36 = vmul.f32 %v502_v44, %v499_v13  ;;  %v504_v57 = vmul.f32 %v502_v44, %v500_v14  ;;  %v509_v62 = vmul.f32 %v508_v45, %v499_v13  ;;  %v510_v30 = vmul.f32 %v508_v45, %v500_v14 }
 0x15e   : > { %v521_v6 = vmul.f32 %v520_v46, %v499_v13  ;;  %v522_v7 = vmul.f32 %v520_v46, %v500_v14  ;;  %v527_v35 = vmul.f32 %v526_v47, %v499_v13  ;;  %v528_v5 = vmul.f32 %v526_v47, %v500_v14  ;;  %v587_v46 = vpop.permute.xlu2 %586 }
 0x15f   : > { %v505_v63 = vadd.f32 %v503_v36, %v470_v3  ;;  %v506_v34 = vadd.f32 %v504_v57, %v471_v10  ;;  %v513_v39 = vrot.slane %v509_v62, 1  ;;  %v514_v16 = vrot.slane %v510_v30, 1 }
 0x160   : > { %v523_v40 = vadd.f32 %v521_v6, %v488_v15  ;;  %v524_v44 = vadd.f32 %v522_v7, %v489_v17  ;;  %v531_v32 = vrot.slane %v527_v35, 1  ;;  %v532_v45 = vrot.slane %v528_v5, 1 }
 0x161   : > { %v517_v41 = vadd.f32 %v513_v39, %v505_v63  ;;  %v518_v47 = vadd.f32 %v514_v16, %v506_v34  ;;  %v546_v3 = vmul.f32 %v3055_v48, %v543_v29  ;;  %v547_v10 = vmul.f32 %v3058_v49, %v542_v52  ;;  %v585_v13 = vpop.permute.xlu1 %584 }
 0x162   : > { %v535_v14 = vadd.f32 %v531_v32, %v523_v40  ;;  %v536_v15 = vadd.f32 %v532_v45, %v524_v44  ;;  %v589_v17 = vsel %vm588_vm5, %v585_v13, %v587_v46  ;;  %v590_v36 = vsel %vm588_vm5, %v587_v46, %v585_v13  ;;  %v668_v57 = vpop.permute.xlu0 %667 }
 0x163   : > { %v550_v62 = vmul.f32 %v549_v50, %v546_v3  ;;  %v551_v30 = vmul.f32 %v549_v50, %v547_v10  ;;  %v556_v29 = vmul.f32 %v555_v51, %v546_v3  ;;  %v557_v52 = vmul.f32 %v555_v51, %v547_v10 }
 0x164   : > { %v568_v6 = vmul.f32 %v567_v53, %v546_v3  ;;  %v569_v7 = vmul.f32 %v567_v53, %v547_v10  ;;  %v574_v35 = vmul.f32 %v573_v54, %v546_v3  ;;  %v575_v5 = vmul.f32 %v573_v54, %v547_v10 }
 0x165   : > { %v552_v63 = vadd.f32 %v550_v62, %v517_v41  ;;  %v553_v34 = vadd.f32 %v551_v30, %v518_v47  ;;  %v560_v50 = vrot.slane %v556_v29, 1  ;;  %v561_v39 = vrot.slane %v557_v52, 1 }
 0x166   : > { %v570_v51 = vadd.f32 %v568_v6, %v535_v14  ;;  %v571_v16 = vadd.f32 %v569_v7, %v536_v15  ;;  %v578_v53 = vrot.slane %v574_v35, 1  ;;  %v579_v40 = vrot.slane %v575_v5, 1 }
 0x167   : > { %v564_v54 = vadd.f32 %v560_v50, %v552_v63  ;;  %v565_v44 = vadd.f32 %v561_v39, %v553_v34  ;;  %v593_v32 = vmul.f32 %v3066_v55, %v590_v36  ;;  %v594_v45 = vmul.f32 %v3069_v56, %v589_v17 }
 0x168   : > { %v582_v46 = vadd.f32 %v578_v53, %v570_v51  ;;  %v583_v41 = vadd.f32 %v579_v40, %v571_v16  ;;  %v744_v47 = vstv %s3136_s19  ;;  %v750_v3 = vstv %s3138_s14  ;;  %v715_v51 = vpop.permute.xlu2 %714  ;;  %s2352_s19 = sld [smem:[#allocation8 + $0x37]] }
 0x169   : > { %v597_v10 = vmul.f32 %v596_v58, %v593_v32  ;;  %v598_v13 = vmul.f32 %v596_v58, %v594_v45  ;;  %v603_v14 = vmul.f32 %v602_v59, %v593_v32  ;;  %v604_v15 = vmul.f32 %v602_v59, %v594_v45  ;;  %v670_v29 = vpop.permute.xlu1 %669  ;;  %s3310_s14 = sld [smem:[#allocation9 + $0x2]] }
 0x16a   : > { %v615_v62 = vmul.f32 %v614_v60, %v593_v32  ;;  %v616_v30 = vmul.f32 %v614_v60, %v594_v45  ;;  %v621_v36 = vmul.f32 %v620_v61, %v593_v32  ;;  %v622_v17 = vmul.f32 %v620_v61, %v594_v45  ;;  %v717_v50 = vpop.permute.xlu0 %716 }
 0x16b   : > { %v599_v52 = vadd.f32 %v597_v10, %v564_v54  ;;  %v600_v6 = vadd.f32 %v598_v13, %v565_v44  ;;  %v607_v7 = vrot.slane %v603_v14, 1  ;;  %v608_v35 = vrot.slane %v604_v15, 1 }
 0x16c   : > { %v617_v5 = vadd.f32 %v615_v62, %v582_v46  ;;  %v618_v63 = vadd.f32 %v616_v30, %v583_v41  ;;  %v625_v58 = vrot.slane %v621_v36, 1  ;;  %v626_v34 = vrot.slane %v622_v17, 1 }
 0x16d   : > { %v611_v59 = vadd.f32 %v607_v7, %v599_v52  ;;  %v612_v39 = vadd.f32 %v608_v35, %v600_v6  ;;  %v672_v60 = vsel %vm671_vm6, %v668_v57, %v670_v29  ;;  %v673_v61 = vsel %vm671_vm6, %v670_v29, %v668_v57 }
 0x16e   : > { %v629_v16 = vadd.f32 %v625_v58, %v617_v5  ;;  %v630_v53 = vadd.f32 %v626_v34, %v618_v63  ;;  %v676_v40 = vmul.f32 %v3084_v0, %v672_v60  ;;  %v677_v54 = vmul.f32 %v3087_v1, %v673_v61 }
 0x16f   : > { %v635_v44 = vadd.f32 %v3011_v27, %v611_v59  ;;  %v636_v32 = vadd.f32 %v3005_v25, %v612_v39  ;;  %v719_v45 = vsel %vm718_vm7, %v715_v51, %v717_v50  ;;  %v720_v57 = vsel %vm718_vm7, %v717_v50, %v715_v51 }
 0x170   : > { %v653_v46 = vadd.f32 %v3016_v28, %v629_v16  ;;  %v654_v41 = vadd.f32 %v3008_v26, %v630_v53  ;;  %v680_v10 = vmul.f32 %v679_v4, %v676_v40  ;;  %v681_v13 = vmul.f32 %v679_v4, %v677_v54 }
 0x171   : > { %v647_v27 = vadd.f32 %v643_v31, %v635_v44  ;;  %v4318_v14 = vrot.slane %v2983_v18, 1  ;;  %v4319_v15 = vstv %s3020_s11  ;;  %v4321_v26 = vrot.slane %v2994_v21, 1  ;;  %s4334_s11 = smov 112  }
 0x172   : > { %v686_v62 = vmul.f32 %v4319_v15, %v676_v40  ;;  %v4320_v30 = vmov %v4319_v15  ;;  %v4322_v17 = vrot.slane %v2986_v19, 1  ;;  %v4323_v29 = vstv %s3026_s28  ;;  %s3252_s28 = sld [smem:[#allocation8 + $0x20]]  ;;  %v764_v15 = vpop.permute.xlu2 %763 }
 0x173   : > { %v648_v25 = vadd.f32 %v4318_v14, %v636_v32  ;;  %v687_v36 = vmul.f32 %v4320_v30, %v677_v54  ;;  %v665_v28 = vadd.f32 %v4321_v26, %v653_v46  ;;  %v698_v20 = vmul.f32 %v4323_v29, %v676_v40  ;;  %v762_v32 = vpop.permute.xlu1 %761 }
 0x174   : > { %v666_v4 = vadd.f32 %v4322_v17, %v654_v41  ;;  %v4324_v31 = vmov %v4323_v29  ;;  %v682_v18 = vadd.f32 %v680_v10, %v647_v27  ;;  %v690_v7 = vrot.slane %v686_v62, 1 }
 0x175   : > { %v699_v52 = vmul.f32 %v4324_v31, %v677_v54  ;;  %v683_v6 = vadd.f32 %v681_v13, %v648_v25  ;;  %v691_v35 = vrot.slane %v687_v36, 1  ;;  %v700_v21 = vadd.f32 %v698_v20, %v665_v28 }
 0x176   : > { %v4325_v19 = vstv %s3039_s22  ;;  %v694_v50 = vadd.f32 %v690_v7, %v682_v18  ;;  %v723_v39 = vmul.f32 %v3096_v8, %v719_v45  ;;  %v724_v60 = vmul.f32 %v3099_v9, %v720_v57  ;;  %s3306_s22 = sld [smem:[#allocation8 + $0x34]] }
 0x177   : > { %v701_v5 = vadd.f32 %v699_v52, %v666_v4  ;;  %v704_v63 = vmul.f32 %v4325_v19, %v676_v40  ;;  %v4326_v58 = vmov %v4325_v19  ;;  %v695_v59 = vadd.f32 %v691_v35, %v683_v6 }
 0x178   : > { %v705_v34 = vmul.f32 %v4326_v58, %v677_v54  ;;  %v3234_v16 = vperm.slane %v3000_v23, 7  ;;  %v727_v53 = vmul.f32 %v726_v2, %v723_v39  ;;  %v728_v40 = vmul.f32 %v726_v2, %v724_v60 }
 0x179   : > { %v708_v61 = vrot.slane %v704_v63, 1  ;;  %v733_v54 = vmul.f32 %v732_v33, %v723_v39  ;;  %v734_v44 = vmul.f32 %v732_v33, %v724_v60  ;;  %v745_v46 = vmul.f32 %v744_v47, %v723_v39 }
 0x17a   : > { %v709_v51 = vrot.slane %v705_v34, 1  ;;  %v746_v23 = vmul.f32 %v744_v47, %v724_v60  ;;  %v729_v41 = vadd.f32 %v727_v53, %v694_v50  ;;  %v730_v10 = vadd.f32 %v728_v40, %v695_v59 }
 0x17b   : > { %v712_v45 = vadd.f32 %v708_v61, %v700_v21  ;;  %v3249_v13 = vperm.slane %v3002_v24, 7  ;;  %v773_v2 = vstv %s3210_s0  ;;  %v751_v14 = vmul.f32 %v750_v3, %v723_v39  ;;  %v811_v61 = vpop.permute.xlu1 %810  ;;  %s3312_s0 = sld [smem:[#allocation9 + $0x3]] }
 0x17c   : > { %v713_v57 = vadd.f32 %v709_v51, %v701_v5  ;;  %v752_v25 = vmul.f32 %v750_v3, %v724_v60  ;;  %v737_v62 = vrot.slane %v733_v54, 1  ;;  %v738_v47 = vrot.slane %v734_v44, 1  ;;  %v3274_v60 = vld [vmem:[#allocation6 + $0x10] ss:$0 sm:$0xff]  ;;  %v3276_v44 = vld [vmem:[#allocation6 + $0x18] ss:$0 sm:$0xff] }
 0x17d   : > { %v747_v27 = vadd.f32 %v745_v46, %v712_v45  ;;  %v779_v30 = vstv %s3220_s2  ;;  %v791_v36 = vstv %s3222_s3  ;;  %v755_v24 = vrot.slane %v751_v14, 1  ;;  %s3314_s2 = sld [smem:[#allocation8 + $0x24]] }
 0x17e   : > { %v748_v33 = vadd.f32 %v746_v23, %v713_v57  ;;  %v756_v26 = vrot.slane %v752_v25, 1  ;;  %v797_v28 = vstv %s3228_s5  ;;  %v766_v17 = vsel %vm765_vm8, %v762_v32, %v764_v15  ;;  %s3316_s3 = sld [smem:[#allocation8 + $0x25]] }
 0x17f   : > { %v741_v4 = vadd.f32 %v737_v62, %v729_v41  ;;  %v742_v29 = vadd.f32 %v738_v47, %v730_v10  ;;  %v767_v3 = vsel %vm765_vm8, %v764_v15, %v762_v32  ;;  %v770_v20 = vmul.f32 %v3234_v16, %v766_v17  ;;  %v809_v32 = vpop.permute.xlu0 %808  ;;  %s3318_s5 = sld [smem:[#allocation8 + $0x26]] }
 0x180   : > { %v759_v31 = vadd.f32 %v755_v24, %v747_v27  ;;  %v760_v52 = vadd.f32 %v756_v26, %v748_v33  ;;  %v771_v18 = vmul.f32 %v3249_v13, %v767_v3  ;;  %v820_v45 = vstv %s3252_s28  ;;  %s3320_s28 = sld [smem:[#allocation8 + $0x27]] }
 0x181   : > { %v774_v6 = vmul.f32 %v773_v2, %v770_v20  ;;  %v780_v7 = vmul.f32 %v779_v30, %v770_v20  ;;  %v792_v35 = vmul.f32 %v791_v36, %v770_v20  ;;  %v798_v21 = vmul.f32 %v797_v28, %v770_v20 }
 0x182   : > { %v775_v5 = vmul.f32 %v773_v2, %v771_v18  ;;  %v781_v19 = vmul.f32 %v779_v30, %v771_v18  ;;  %v793_v63 = vmul.f32 %v791_v36, %v771_v18  ;;  %v799_v58 = vmul.f32 %v797_v28, %v771_v18 }
 0x183   : > { %v776_v34 = vadd.f32 %v774_v6, %v741_v4  ;;  %v784_v50 = vrot.slane %v780_v7, 1  ;;  %v794_v59 = vadd.f32 %v792_v35, %v759_v31  ;;  %v802_v39 = vrot.slane %v798_v21, 1 }
 0x184   : > { %v777_v51 = vadd.f32 %v775_v5, %v742_v29  ;;  %v785_v53 = vrot.slane %v781_v19, 1  ;;  %v795_v40 = vadd.f32 %v793_v63, %v760_v52  ;;  %v803_v54 = vrot.slane %v799_v58, 1 }
 0x185   : > { %v826_v57 = vstv %s3258_s29  ;;  %v838_v46 = vstv %s3262_s16  ;;  %v844_v23 = vstv %s3267_s10  ;;  %v813_v41 = vsel %vm812_vm9, %v809_v32, %v811_v61  ;;  %s3322_s29 = sld [smem:[#allocation8 + $0x28]] }
 0x186   : > { %v788_v10 = vadd.f32 %v784_v50, %v776_v34  ;;  %v814_v2 = vsel %vm812_vm9, %v811_v61, %v809_v32  ;;  %v817_v27 = vmul.f32 %v3274_v60, %v813_v41  ;;  %v789_v33 = vadd.f32 %v785_v53, %v777_v51  ;;  %s3324_s16 = sld [smem:[#allocation8 + $0x29]] }
 0x187   : > { %v806_v14 = vadd.f32 %v802_v39, %v794_v59  ;;  %v807_v25 = vadd.f32 %v803_v54, %v795_v40  ;;  %v818_v15 = vmul.f32 %v3276_v44, %v814_v2  ;;  %s3326_s10 = sld [smem:[#allocation8 + $0x2a]]  ;;  %v1057_v51 = vstv %s2350_s21 }
 0x188   : > { %v821_v62 = vmul.f32 %v820_v45, %v817_v27  ;;  %v827_v47 = vmul.f32 %v826_v57, %v817_v27  ;;  %v839_v30 = vmul.f32 %v838_v46, %v817_v27  ;;  %v845_v36 = vmul.f32 %v844_v23, %v817_v27  ;;  %s3354_s21 = sld [smem:[#allocation8 + $0x33]] }
 0x189   : > { %v822_v24 = vmul.f32 %v820_v45, %v818_v15  ;;  %v828_v26 = vmul.f32 %v826_v57, %v818_v15  ;;  %v840_v28 = vmul.f32 %v838_v46, %v818_v15  ;;  %v846_v17 = vmul.f32 %v844_v23, %v818_v15 }
 0x18a   : > { %v823_v4 = vadd.f32 %v821_v62, %v788_v10  ;;  %v831_v29 = vrot.slane %v827_v47, 1  ;;  %v841_v3 = vadd.f32 %v839_v30, %v806_v14  ;;  %v849_v20 = vrot.slane %v845_v36, 1 }
 0x18b   : > { %v824_v31 = vadd.f32 %v822_v24, %v789_v33  ;;  %v832_v52 = vrot.slane %v828_v26, 1  ;;  %v842_v18 = vadd.f32 %v840_v28, %v807_v25  ;;  %v850_v6 = vrot.slane %v846_v17, 1 }
 0x18c   : > { %v835_v7 = vadd.f32 %v831_v29, %v823_v4  ;;  %v853_v35 = vadd.f32 %v849_v20, %v841_v3  ;;  %v1075_v53 = vstv %s2352_s19  ;;  %v1051_v54 = vstv %s3306_s22  ;;  %s3356_s22 = sld [smem:[#allocation8 + $0x38]] }
 0x18d   : > { %v836_v21 = vadd.f32 %v832_v52, %v824_v31  ;;  %v854_v5 = vadd.f32 %v850_v6, %v842_v18  ;;  %v1069_v32 = vstv %s3308_s25  ;;  %s3366_s25 = sld [smem:[#allocation8 + $0x39]]  ;;  %v869_v62 = vstv %s3310_s14 }
 0x18e   : > { %v857_v19 = vmax.f32 %v853_v35, 0.0  ;;  %v855_v58 = vmax.f32 %v835_v7, 0.0  ;;  %v872_v47 = vstv %s3312_s0  ;;  %v883_v30 = vstv %s3314_s2  ;;  %s3406_s19 = sld [smem:[#allocation8 + $0x3b]] }
 0x18f   : > { %v858_v63 = vmax.f32 %v854_v5, 0.0  ;;  %v856_v50 = vmax.f32 %v836_v21, 0.0  ;;  %v889_v36 = vstv %s3316_s3  ;;  %v901_v24 = vstv %s3318_s5  ;;  %s3408_s14 = sld [smem:[#allocation8 + $0x3c]] }
 0x190   : > { %v861_v34 = vrot.slane %v857_v19, 7  ;;  %v907_v26 = vstv %s3320_s28  ;;  %v927_v28 = vstv %s3322_s29  ;;  %v933_v17 = vstv %s3324_s16  ;;  %s3410_s0 = sld [smem:[#allocation8 + $0x3d]] }
 0x191   : > { %v862_v59 = vrot.slane %v858_v63, 7  ;;  %v945_v4 = vstv %s3326_s10  ;;  %v951_v29 = vstv %s3328_s9  ;;  %v971_v3 = vstv %s3330_s30  ;;  %s3404_s9 = sld [smem:[#allocation8 + $0x3a]] }
 0x192   : > { %v866_v39 = vsel %vm865_vm10, %v855_v58, %v861_v34  ;;  %v977_v20 = vstv %s3332_s18  ;;  %s3412_s2 = sld [smem:[#allocation8 + $0x3e]] }
 0x193   : > { %v867_v61 = vsel %vm865_vm10, %v856_v50, %v862_v59  ;;  %918 = vrot.lane.b32.xlu1 %v866_v39, %s4327_s26  ;;  %874 = vrot.lane.b32.xlu2 %v866_v39, %s4328_s23  ;;  %v3350_v46 = vmul.f32 %v1057_v51, %v866_v39  ;;  %v3352_v23 = vmul.f32 %v1075_v53, %v866_v39  ;;  %s3418_s3 = sld [smem:[#allocation8 + $0x3f]] }
 0x194   : > { %876 = vrot.lane.b32.xlu0 %v867_v61, %s4328_s23  ;;  %v3346_v45 = vmul.f32 %v1057_v51, %v867_v61  ;;  %v3348_v57 = vmul.f32 %v1075_v53, %v867_v61  ;;  %v3358_v41 = vmul.f32 %v1051_v54, %v867_v61  ;;  %v3360_v10 = vmul.f32 %v1069_v32, %v867_v61  ;;  %s3510_s30 = sld [smem:[#allocation8 + $0x43]] }
 0x195   : > { %v3362_v2 = vmul.f32 %v1051_v54, %v866_v39  ;;  %v3364_v27 = vmul.f32 %v1069_v32, %v866_v39  ;;  %s3516_s18 = sld [smem:[#allocation8 + $0x45]] }
 0x196   : > { %s3538_s5 = sld [smem:[#allocation8 + $0x47]] }
 0x197   : > { %s3598_s28 = sld [smem:[#allocation8 + $0x58]] }
 0x198   : > { %s3600_s29 = sld [smem:[#allocation8 + $0x5a]] }
 0x199   : > { %s2388_s16 = sld [smem:[#allocation8 + $0x59]] }
 0x19a   : > { %s2390_s10 = sld [smem:[#allocation8 + $0x5b]] }
 0x19b   : > { %964 = vrot.lane.b32.xlu1 %v867_v61, %s4329_s20  ;;  %920 = vrot.lane.b32.xlu2 %v867_v61, %s4327_s26 }
 0x19c   : > { %962 = vrot.lane.b32.xlu0 %v866_v39, %s4329_s20 }
 0x1a3   : > { %1086 = vrot.lane.b32.xlu1 %v866_v39, %s4330_s24  ;;  %1006 = vrot.lane.b32.xlu2 %v866_v39, %s4331_s13 }
 0x1a4   : > { %1008 = vrot.lane.b32.xlu0 %v867_v61, %s4331_s13 }
 0x1ab   : > { %1132 = vrot.lane.b32.xlu1 %v867_v61, %s4332_s1  ;;  %1088 = vrot.lane.b32.xlu2 %v867_v61, %s4330_s24 }
 0x1ac   : > { %1130 = vrot.lane.b32.xlu0 %v866_v39, %s4332_s1 }
 0x1b3   : > { %1218 = vrot.lane.b32.xlu1 %v866_v39, %s4333_s4  ;;  %1174 = vrot.lane.b32.xlu2 %v866_v39, %s4334_s11 }
 0x1b4   : > { %1176 = vrot.lane.b32.xlu0 %v867_v61, %s4334_s11 }
 0x1bb   : > { %1220 = vrot.lane.b32.xlu2 %v867_v61, %s4333_s4 }
 0x1ed   : > { %v875_v40 = vpop.permute.xlu2 %874 }
 0x1f5   : > { %v921_v31 = vpop.permute.xlu2 %920 }
 0x205   : > { %v919_v52 = vpop.permute.xlu1 %918 }
 0x206   : > { %v877_v21 = vpop.permute.xlu0 %876  ;;  %v922_v5 = vsel %vm494_vm3, %v919_v52, %v921_v31  ;;  %v923_v19 = vsel %vm494_vm3, %v921_v31, %v919_v52 }
 0x207   : > { %v878_v34 = vsel %vm447_vm2, %v875_v40, %v877_v21  ;;  %v879_v50 = vsel %vm447_vm2, %v877_v21, %v875_v40  ;;  %v924_v59 = vmul.f32 %v923_v19, %v3044_v42  ;;  %v925_v39 = vmul.f32 %v922_v5, %v3047_v43 }
 0x208   : > { %v880_v61 = vmul.f32 %v879_v50, %v3033_v37  ;;  %v881_v51 = vmul.f32 %v878_v34, %v3036_v38 }
 0x209   : > { %v928_v32 = vmul.f32 %v927_v28, %v924_v59  ;;  %v929_v31 = vmul.f32 %v927_v28, %v925_v39  ;;  %v934_v52 = vmul.f32 %v933_v17, %v924_v59  ;;  %v935_v14 = vmul.f32 %v933_v17, %v925_v39 }
 0x20a   : > { %v884_v15 = vmul.f32 %v883_v30, %v880_v61  ;;  %v885_v33 = vmul.f32 %v883_v30, %v881_v51  ;;  %v890_v25 = vmul.f32 %v889_v36, %v880_v61  ;;  %v891_v40 = vmul.f32 %v889_v36, %v881_v51 }
 0x20b   : > { %v902_v21 = vmul.f32 %v901_v24, %v880_v61  ;;  %v903_v5 = vmul.f32 %v901_v24, %v881_v51  ;;  %v908_v19 = vmul.f32 %v907_v26, %v880_v61  ;;  %v909_v50 = vmul.f32 %v907_v26, %v881_v51 }
 0x20c   : > { %v886_v34 = vadd.f32 %v884_v15, %v869_v62  ;;  %v887_v54 = vadd.f32 %v885_v33, %v869_v62  ;;  %v894_v53 = vrot.slane %v890_v25, 1  ;;  %v895_v28 = vrot.slane %v891_v40, 1  ;;  %v1007_v25 = vpop.permute.xlu2 %1006 }
 0x20d   : > { %v904_v17 = vadd.f32 %v902_v21, %v872_v47  ;;  %v905_v58 = vadd.f32 %v903_v5, %v872_v47  ;;  %v912_v63 = vrot.slane %v908_v19, 1  ;;  %v913_v30 = vrot.slane %v909_v50, 1  ;;  %v965_v35 = vpop.permute.xlu1 %964 }
 0x20e   : > { %v898_v36 = vadd.f32 %v894_v53, %v886_v34  ;;  %v899_v7 = vadd.f32 %v895_v28, %v887_v54  ;;  %v938_v6 = vrot.slane %v934_v52, 1  ;;  %v939_v18 = vrot.slane %v935_v14, 1  ;;  %v963_v24 = vpop.permute.xlu0 %962 }
 0x20f   : > { %v916_v61 = vadd.f32 %v912_v63, %v904_v17  ;;  %v917_v26 = vadd.f32 %v913_v30, %v905_v58  ;;  %v946_v51 = vmul.f32 %v945_v4, %v924_v59  ;;  %v947_v33 = vmul.f32 %v945_v4, %v925_v39 }
 0x210   : > { %v930_v15 = vadd.f32 %v928_v32, %v898_v36  ;;  %v931_v62 = vadd.f32 %v929_v31, %v899_v7  ;;  %v952_v40 = vmul.f32 %v951_v29, %v924_v59  ;;  %v953_v21 = vmul.f32 %v951_v29, %v925_v39 }
 0x211   : > { %v948_v47 = vadd.f32 %v946_v51, %v916_v61  ;;  %v949_v53 = vadd.f32 %v947_v33, %v917_v26  ;;  %v966_v14 = vsel %vm541_vm4, %v963_v24, %v965_v35  ;;  %v967_v63 = vsel %vm541_vm4, %v965_v35, %v963_v24 }
 0x212   : > { %v956_v4 = vrot.slane %v952_v40, 1  ;;  %v957_v29 = vrot.slane %v953_v21, 1  ;;  %v1113_v7 = vstv %s3404_s9  ;;  %v1119_v58 = vstv %s3406_s19  ;;  %s3608_s9 = sld [smem:[#allocation8 + $0x49]] }
 0x213   : > { %v942_v59 = vadd.f32 %v938_v6, %v930_v15  ;;  %v943_v39 = vadd.f32 %v939_v18, %v931_v62  ;;  %v968_v54 = vmul.f32 %v967_v63, %v3055_v48  ;;  %v969_v32 = vmul.f32 %v966_v14, %v3058_v49  ;;  %s3610_s19 = sld [smem:[#allocation8 + $0x4a]] }
 0x214   : > { %v960_v31 = vadd.f32 %v956_v4, %v948_v47  ;;  %v961_v35 = vadd.f32 %v957_v29, %v949_v53  ;;  %v1139_v52 = vstv %s3408_s14  ;;  %v1145_v5 = vstv %s3410_s0  ;;  %s3612_s14 = sld [smem:[#allocation8 + $0x4b]] }
 0x215   : > { %v972_v19 = vmul.f32 %v971_v3, %v968_v54  ;;  %v973_v50 = vmul.f32 %v971_v3, %v969_v32  ;;  %v978_v34 = vmul.f32 %v977_v20, %v968_v54  ;;  %v979_v28 = vmul.f32 %v977_v20, %v969_v32  ;;  %v1087_v17 = vpop.permute.xlu1 %1086  ;;  %s3614_s0 = sld [smem:[#allocation8 + $0x50]] }
 0x216   : > { %v4335_v6 = vstv %s3334_s27  ;;  %v4337_v24 = vstv %s3336_s15  ;;  %v1009_v33 = vpop.permute.xlu0 %1008  ;;  %v1157_v4 = vstv %s3412_s2  ;;  %v1163_v29 = vstv %s3418_s3  ;;  %s3504_s27 = sld [smem:[#allocation8 + $0x42]] }
 0x217   : > { %v990_v18 = vmul.f32 %v4335_v6, %v968_v54  ;;  %v4336_v30 = vmov %v4335_v6  ;;  %v996_v61 = vmul.f32 %v4337_v24, %v968_v54  ;;  %v4338_v26 = vmov %v4337_v24  ;;  %s3514_s15 = sld [smem:[#allocation8 + $0x44]] }
 0x218   : > { %v991_v36 = vmul.f32 %v4336_v30, %v969_v32  ;;  %v997_v51 = vmul.f32 %v4338_v26, %v969_v32  ;;  %v974_v15 = vadd.f32 %v972_v19, %v942_v59  ;;  %v975_v62 = vadd.f32 %v973_v50, %v943_v39  ;;  %v1089_v59 = vpop.permute.xlu2 %1088  ;;  %s3616_s2 = sld [smem:[#allocation8 + $0x51]] }
 0x219   : > { %v982_v40 = vrot.slane %v978_v34, 1  ;;  %v983_v3 = vrot.slane %v979_v28, 1  ;;  %v992_v21 = vadd.f32 %v990_v18, %v960_v31  ;;  %v1000_v20 = vrot.slane %v996_v61, 1  ;;  %s3618_s3 = sld [smem:[#allocation8 + $0x52]] }
 0x21a   : > { %v993_v47 = vadd.f32 %v991_v36, %v961_v35  ;;  %v1001_v53 = vrot.slane %v997_v51, 1  ;;  %v1010_v14 = vsel %vm588_vm5, %v1007_v25, %v1009_v33  ;;  %v1011_v63 = vsel %vm588_vm5, %v1009_v33, %v1007_v25 }
 0x21b   : > { %v986_v39 = vadd.f32 %v982_v40, %v974_v15  ;;  %v987_v54 = vadd.f32 %v983_v3, %v975_v62  ;;  %v1012_v32 = vmul.f32 %v1011_v63, %v3066_v55  ;;  %v1013_v31 = vmul.f32 %v1010_v14, %v3069_v56 }
 0x21c   : > { %v1004_v35 = vadd.f32 %v1000_v20, %v992_v21  ;;  %v1005_v19 = vadd.f32 %v1001_v53, %v993_v47  ;;  %v1090_v50 = vsel %vm671_vm6, %v1087_v17, %v1089_v59  ;;  %v1091_v25 = vsel %vm671_vm6, %v1089_v59, %v1087_v17 }
 0x21d   : > { %v4339_v34 = vstv %s3338_s8  ;;  %v4341_v30 = vstv %s3340_s17  ;;  %v4343_v26 = vstv %s3344_s6  ;;  %v4345_v62 = vstv %s3354_s21  ;;  %v1133_v63 = vpop.permute.xlu1 %1132  ;;  %s3488_s6 = sld [smem:[#allocation8 + $0x40]] }
 0x21e   : > { %v1016_v28 = vmul.f32 %v4339_v34, %v1012_v32  ;;  %v4340_v6 = vmov %v4339_v34  ;;  %v1022_v36 = vmul.f32 %v4341_v30, %v1012_v32  ;;  %v4342_v24 = vmov %v4341_v30  ;;  %v1131_v14 = vpop.permute.xlu0 %1130  ;;  %s3498_s8 = sld [smem:[#allocation8 + $0x41]] }
 0x21f   : > { %v1017_v18 = vmul.f32 %v4340_v6, %v1013_v31  ;;  %v1023_v61 = vmul.f32 %v4342_v24, %v1013_v31  ;;  %v1034_v51 = vmul.f32 %v4343_v26, %v1012_v32  ;;  %v4344_v33 = vmov %v4343_v26  ;;  %s3534_s17 = sld [smem:[#allocation8 + $0x46]] }
 0x220   : > { %v1035_v15 = vmul.f32 %v4344_v33, %v1013_v31  ;;  %v1040_v40 = vmul.f32 %v4345_v62, %v1012_v32  ;;  %v4346_v3 = vmov %v4345_v62  ;;  %v1018_v47 = vadd.f32 %v1016_v28, %v986_v39  ;;  %s3602_s21 = sld [smem:[#allocation9 + $0x4]] }
 0x221   : > { %v1041_v21 = vmul.f32 %v4346_v3, %v1013_v31  ;;  %v1019_v20 = vadd.f32 %v1017_v18, %v987_v54  ;;  %v1026_v53 = vrot.slane %v1022_v36, 1  ;;  %v1027_v17 = vrot.slane %v1023_v61, 1 }
 0x222   : > { %v1036_v59 = vadd.f32 %v1034_v51, %v1004_v35  ;;  %v1037_v34 = vadd.f32 %v1035_v15, %v1005_v19  ;;  %v1044_v6 = vrot.slane %v1040_v40, 1  ;;  %v1092_v32 = vmul.f32 %v1090_v50, %v3084_v0 }
 0x223   : > { %v1045_v30 = vrot.slane %v1041_v21, 1  ;;  %v1030_v24 = vadd.f32 %v1026_v53, %v1018_v47  ;;  %v1031_v26 = vadd.f32 %v1027_v17, %v1019_v20  ;;  %v1093_v31 = vmul.f32 %v1091_v25, %v3087_v1 }
 0x224   : > { %v1048_v39 = vadd.f32 %v1044_v6, %v1036_v59  ;;  %v1134_v28 = vsel %vm718_vm7, %v1131_v14, %v1133_v63  ;;  %v1135_v35 = vsel %vm718_vm7, %v1133_v63, %v1131_v14  ;;  %v4347_v36 = vstv %s3356_s22  ;;  %s3604_s22 = sld [smem:[#allocation9 + $0x5]] }
 0x225   : > { %v1049_v54 = vadd.f32 %v1045_v30, %v1037_v34  ;;  %v1054_v19 = vadd.f32 %v3362_v2, %v1030_v24  ;;  %v1055_v18 = vadd.f32 %v3358_v41, %v1031_v26  ;;  %v1096_v61 = vmul.f32 %v4347_v36, %v1092_v32 }
 0x226   : > { %v4348_v51 = vmov %v4347_v36  ;;  %v1072_v25 = vadd.f32 %v3364_v27, %v1048_v39  ;;  %v4349_v15 = vstv %s3366_s25  ;;  %v4351_v2 = vrot.slane %v3350_v46, 1  ;;  %s3606_s25 = sld [smem:[#allocation8 + $0x48]] }
 0x227   : > { %v1097_v50 = vmul.f32 %v4348_v51, %v1093_v31  ;;  %v1073_v33 = vadd.f32 %v3360_v10, %v1049_v54  ;;  %v1102_v62 = vmul.f32 %v4349_v15, %v1092_v32  ;;  %v4350_v40 = vmov %v4349_v15 }
 0x228   : > { %v1103_v3 = vmul.f32 %v4350_v40, %v1093_v31  ;;  %v1066_v21 = vadd.f32 %v4351_v2, %v1054_v19  ;;  %v4352_v41 = vrot.slane %v3346_v45, 1  ;;  %v1114_v20 = vmul.f32 %v1113_v7, %v1092_v32  ;;  %v1175_v19 = vpop.permute.xlu2 %1174 }
 0x229   : > { %v1115_v27 = vmul.f32 %v1113_v7, %v1093_v31  ;;  %v4353_v10 = vrot.slane %v3352_v23, 1  ;;  %v4354_v17 = vrot.slane %v3348_v57, 1  ;;  %v1106_v63 = vrot.slane %v1102_v62, 1 }
 0x22a   : > { %v1067_v47 = vadd.f32 %v4352_v41, %v1055_v18  ;;  %v1107_v59 = vrot.slane %v1103_v3, 1  ;;  %v1098_v46 = vadd.f32 %v1096_v61, %v1066_v21  ;;  %v1120_v34 = vmul.f32 %v1119_v58, %v1092_v32 }
 0x22b   : > { %v1084_v53 = vadd.f32 %v4353_v10, %v1072_v25  ;;  %v1085_v14 = vadd.f32 %v4354_v17, %v1073_v33  ;;  %v1121_v7 = vmul.f32 %v1119_v58, %v1093_v31  ;;  %v1136_v57 = vmul.f32 %v1134_v28, %v3096_v8 }
 0x22c   : > { %v1099_v45 = vadd.f32 %v1097_v50, %v1067_v47  ;;  %v1137_v30 = vmul.f32 %v1135_v35, %v3099_v9  ;;  %v1110_v24 = vadd.f32 %v1106_v63, %v1098_v46  ;;  %v1124_v39 = vrot.slane %v1120_v34, 1 }
 0x22d   : > { %v1116_v23 = vadd.f32 %v1114_v20, %v1084_v53  ;;  %v1117_v6 = vadd.f32 %v1115_v27, %v1085_v14  ;;  %v1125_v54 = vrot.slane %v1121_v7, 1  ;;  %v1140_v58 = vmul.f32 %v1139_v52, %v1136_v57 }
 0x22e   : > { %v1111_v26 = vadd.f32 %v1107_v59, %v1099_v45  ;;  %v1141_v32 = vmul.f32 %v1139_v52, %v1137_v30  ;;  %v1146_v31 = vmul.f32 %v1145_v5, %v1136_v57  ;;  %v1147_v28 = vmul.f32 %v1145_v5, %v1137_v30  ;;  %v1177_v52 = vpop.permute.xlu0 %1176 }
 0x22f   : > { %v1128_v35 = vadd.f32 %v1124_v39, %v1116_v23  ;;  %v1129_v18 = vadd.f32 %v1125_v54, %v1117_v6  ;;  %v1158_v36 = vmul.f32 %v1157_v4, %v1136_v57  ;;  %v1159_v61 = vmul.f32 %v1157_v4, %v1137_v30 }
 0x230   : > { %v1142_v51 = vadd.f32 %v1140_v58, %v1110_v24  ;;  %v1143_v50 = vadd.f32 %v1141_v32, %v1111_v26  ;;  %v1150_v25 = vrot.slane %v1146_v31, 1  ;;  %v1151_v33 = vrot.slane %v1147_v28, 1  ;;  %v1219_v26 = vpop.permute.xlu1 %1218  ;;  %v1221_v31 = vpop.permute.xlu2 %1220 }
 0x231   : > { %v1160_v15 = vadd.f32 %v1158_v36, %v1128_v35  ;;  %v1161_v62 = vadd.f32 %v1159_v61, %v1129_v18  ;;  %v1164_v5 = vmul.f32 %v1163_v29, %v1136_v57  ;;  %v1165_v40 = vmul.f32 %v1163_v29, %v1137_v30 }
 0x232   : > { %v1154_v3 = vadd.f32 %v1150_v25, %v1142_v51  ;;  %v1155_v2 = vadd.f32 %v1151_v33, %v1143_v50  ;;  %v1183_v4 = vstv %s3488_s6  ;;  %v1189_v21 = vstv %s3498_s8  ;;  %s3620_s6 = sld [smem:[#allocation8 + $0x53]] }
 0x233   : > { %v1168_v41 = vrot.slane %v1164_v5, 1  ;;  %v1169_v47 = vrot.slane %v1165_v40, 1  ;;  %v1178_v20 = vsel %vm765_vm8, %v1175_v19, %v1177_v52  ;;  %v1179_v27 = vsel %vm765_vm8, %v1177_v52, %v1175_v19  ;;  %s3622_s8 = sld [smem:[#allocation8 + $0x4c]] }
 0x234   : > { %v1201_v10 = vstv %s3504_s27  ;;  %v1207_v29 = vstv %s3510_s30  ;;  %v1180_v53 = vmul.f32 %v1178_v20, %v3234_v16  ;;  %v1181_v17 = vmul.f32 %v1179_v27, %v3249_v13  ;;  %s3624_s27 = sld [smem:[#allocation8 + $0x4d]] }
 0x235   : > { %v1172_v14 = vadd.f32 %v1168_v41, %v1160_v15  ;;  %v1173_v63 = vadd.f32 %v1169_v47, %v1161_v62  ;;  %v1227_v59 = vstv %s3514_s15  ;;  %v1233_v46 = vstv %s3516_s18  ;;  %s3626_s30 = sld [smem:[#allocation8 + $0x4e]] }
 0x236   : > { %v1184_v45 = vmul.f32 %v1183_v4, %v1180_v53  ;;  %v1185_v34 = vmul.f32 %v1183_v4, %v1181_v17  ;;  %v1190_v7 = vmul.f32 %v1189_v21, %v1180_v53  ;;  %v1191_v23 = vmul.f32 %v1189_v21, %v1181_v17  ;;  %s3628_s15 = sld [smem:[#allocation8 + $0x4f]] }
 0x237   : > { %v1202_v6 = vmul.f32 %v1201_v10, %v1180_v53  ;;  %v1203_v57 = vmul.f32 %v1201_v10, %v1181_v17  ;;  %v1208_v30 = vmul.f32 %v1207_v29, %v1180_v53  ;;  %v1209_v24 = vmul.f32 %v1207_v29, %v1181_v17  ;;  %s3630_s18 = sld [smem:[#allocation8 + $0x54]] }
 0x238   : > { %v1186_v39 = vadd.f32 %v1184_v45, %v1154_v3  ;;  %v1187_v54 = vadd.f32 %v1185_v34, %v1155_v2  ;;  %v1194_v58 = vrot.slane %v1190_v7, 1  ;;  %v1195_v32 = vrot.slane %v1191_v23, 1 }
 0x239   : > { %v1204_v28 = vadd.f32 %v1202_v6, %v1172_v14  ;;  %v1205_v19 = vadd.f32 %v1203_v57, %v1173_v63  ;;  %v1212_v35 = vrot.slane %v1208_v30, 1  ;;  %v1213_v18 = vrot.slane %v1209_v24, 1 }
 0x23a   : > { %v1245_v36 = vstv %s3534_s17  ;;  %v1251_v61 = vstv %s3538_s5  ;;  %v1222_v51 = vsel %vm812_vm9, %v1219_v26, %v1221_v31  ;;  %v1223_v50 = vsel %vm812_vm9, %v1221_v31, %v1219_v26  ;;  %s3632_s17 = sld [smem:[#allocation8 + $0x55]] }
 0x23b   : > { %v1198_v25 = vadd.f32 %v1194_v58, %v1186_v39  ;;  %v1199_v33 = vadd.f32 %v1195_v32, %v1187_v54  ;;  %v1224_v52 = vmul.f32 %v3274_v60, %v1222_v51  ;;  %v1225_v15 = vmul.f32 %v3276_v44, %v1223_v50  ;;  %s3634_s5 = sld [smem:[#allocation8 + $0x56]] }
 0x23c   : > { %v1216_v62 = vadd.f32 %v1212_v35, %v1204_v28  ;;  %v1217_v5 = vadd.f32 %v1213_v18, %v1205_v19  ;;  %v1465_v58 = vstv %s2388_s16  ;;  %v1483_v32 = vstv %s2390_s10  ;;  %s3684_s16 = sld [smem:[#allocation8 + $0x5c]] }
 0x23d   : > { %v1228_v40 = vmul.f32 %v1227_v59, %v1224_v52  ;;  %v1229_v3 = vmul.f32 %v1227_v59, %v1225_v15  ;;  %v1234_v2 = vmul.f32 %v1233_v46, %v1224_v52  ;;  %v1235_v4 = vmul.f32 %v1233_v46, %v1225_v15  ;;  %s3690_s10 = sld [smem:[#allocation8 + $0x5d]] }
 0x23e   : > { %v1246_v21 = vmul.f32 %v1245_v36, %v1224_v52  ;;  %v1247_v41 = vmul.f32 %v1245_v36, %v1225_v15  ;;  %v1252_v47 = vmul.f32 %v1251_v61, %v1224_v52  ;;  %v1253_v20 = vmul.f32 %v1251_v61, %v1225_v15 }
 0x23f   : > { %v1230_v27 = vadd.f32 %v1228_v40, %v1198_v25  ;;  %v1231_v10 = vadd.f32 %v1229_v3, %v1199_v33  ;;  %v1238_v29 = vrot.slane %v1234_v2, 1  ;;  %v1239_v53 = vrot.slane %v1235_v4, 1 }
 0x240   : > { %v1248_v17 = vadd.f32 %v1246_v21, %v1216_v62  ;;  %v1249_v14 = vadd.f32 %v1247_v41, %v1217_v5  ;;  %v1256_v63 = vrot.slane %v1252_v47, 1  ;;  %v1257_v60 = vrot.slane %v1253_v20, 1 }
 0x241   : > { %v1242_v45 = vadd.f32 %v1238_v29, %v1230_v27  ;;  %v1243_v44 = vadd.f32 %v1239_v53, %v1231_v10  ;;  %v1459_v31 = vstv %s3598_s28  ;;  %v1477_v28 = vstv %s3600_s29  ;;  %s3656_s28 = sld [smem:[#allocation8 + $0x62]] }
 0x242   : > { %v1260_v34 = vadd.f32 %v1256_v63, %v1248_v17  ;;  %v1261_v7 = vadd.f32 %v1257_v60, %v1249_v14  ;;  %s3664_s29 = sld [smem:[#allocation8 + $0x63]]  ;;  %v1277_v62 = vstv %s3602_s21  ;;  %v1280_v5 = vstv %s3604_s22 }
 0x243   : > { %v1262_v6 = vmax.f32 %v1242_v45, 0.0  ;;  %v1263_v46 = vmax.f32 %v1243_v44, 0.0  ;;  %v1291_v2 = vstv %s3606_s25  ;;  %v1297_v4 = vstv %s3608_s9  ;;  %s3696_s21 = sld [smem:[#allocation8 + $0x5e]] }
 0x244   : > { %v1264_v23 = vmax.f32 %v1260_v34, 0.0  ;;  %v1265_v59 = vmax.f32 %v1261_v7, 0.0  ;;  %v1309_v21 = vstv %s3610_s19  ;;  %v1315_v41 = vstv %s3612_s14  ;;  %s3704_s22 = sld [smem:[#allocation8 + $0x5f]] }
 0x245   : > { %v1379_v20 = vstv %s3614_s0  ;;  %v1385_v27 = vstv %s3616_s2  ;;  %v1397_v10 = vstv %s3618_s3  ;;  %v1403_v29 = vstv %s3620_s6  ;;  %s3730_s25 = sld [smem:[#allocation8 + $0x64]] }
 0x246   : > { %v1268_v57 = vrot.slane %v1264_v23, 7  ;;  %v1269_v30 = vrot.slane %v1265_v59, 7  ;;  %v1335_v17 = vstv %s3622_s8  ;;  %v1341_v14 = vstv %s3624_s27  ;;  %s3738_s9 = sld [smem:[#allocation8 + $0x65]] }
 0x247   : > { %v1353_v63 = vstv %s3626_s30  ;;  %v1359_v60 = vstv %s3628_s15  ;;  %s3764_s19 = sld [smem:[#allocation8 + $0x66]] }
 0x248   : > { %v1272_v24 = vsel %vm865_vm10, %v1262_v6, %v1268_v57  ;;  %v1273_v26 = vsel %vm865_vm10, %v1263_v46, %v1269_v30  ;;  %s3768_s14 = sld [smem:[#allocation8 + $0x67]] }
 0x249   : > { %v3561_v39 = vadd.f32 %v1272_v24, %v2908_v11  ;;  %v3564_v54 = vadd.f32 %v1273_v26, %v2910_v12  ;;  %s3863_s0 = sld [smem:[#allocation8 + $0x6b]] }
 0x24a   : > { %s2426_s2 = sld [smem:[#allocation8 + $0x7d]] }
 0x24b   : > { %1284 = vrot.lane.b32.xlu1 %v3564_v54, %s4328_s23  ;;  %1326 = vrot.lane.b32.xlu2 %v3561_v39, %s4327_s26  ;;  %v3643_v19 = vmul.f32 %v1465_v58, %v3564_v54  ;;  %v3646_v35 = vmul.f32 %v1483_v32, %v3564_v54  ;;  %v3651_v18 = vmul.f32 %v1465_v58, %v3561_v39  ;;  %s3915_s3 = sld [smem:[#allocation8 + $0x6c]] }
 0x24c   : > { %1282 = vrot.lane.b32.xlu0 %v3561_v39, %s4328_s23  ;;  %v3654_v36 = vmul.f32 %v1483_v32, %v3561_v39  ;;  %v3659_v61 = vmul.f32 %v1459_v31, %v3564_v54  ;;  %v3662_v51 = vmul.f32 %v1477_v28, %v3564_v54  ;;  %v3669_v25 = vmul.f32 %v1459_v31, %v3561_v39  ;;  %s3917_s6 = sld [smem:[#allocation9 + $0x6]] }
 0x24d   : > { %v3672_v33 = vmul.f32 %v1477_v28, %v3561_v39  ;;  %s3923_s8 = sld [smem:[#allocation8 + $0x6e]] }
 0x24e   : > { %s3927_s27 = sld [smem:[#allocation8 + $0x74]] }
 0x24f   : > { %s3929_s30 = sld [smem:[#allocation8 + $0x75]] }
 0x250   : > { %s3931_s15 = sld [smem:[#allocation8 + $0x76]] }
 0x253   : > { %1370 = vrot.lane.b32.xlu1 %v3561_v39, %s4329_s20  ;;  %1372 = vrot.lane.b32.xlu2 %v3564_v54, %s4329_s20 }
 0x254   : > { %1328 = vrot.lane.b32.xlu0 %v3564_v54, %s4327_s26 }
 0x25b   : > { %1416 = vrot.lane.b32.xlu1 %v3564_v54, %s4331_s13  ;;  %1494 = vrot.lane.b32.xlu2 %v3561_v39, %s4330_s24 }
 0x25c   : > { %1414 = vrot.lane.b32.xlu0 %v3561_v39, %s4331_s13 }
 0x263   : > { %1538 = vrot.lane.b32.xlu1 %v3561_v39, %s4332_s1  ;;  %1540 = vrot.lane.b32.xlu2 %v3564_v54, %s4332_s1 }
 0x264   : > { %1496 = vrot.lane.b32.xlu0 %v3564_v54, %s4330_s24 }
 0x26b   : > { %1584 = vrot.lane.b32.xlu1 %v3564_v54, %s4334_s11  ;;  %1626 = vrot.lane.b32.xlu2 %v3561_v39, %s4333_s4 }
 0x26c   : > { %1582 = vrot.lane.b32.xlu0 %v3561_v39, %s4334_s11 }
 0x274   : > { %1628 = vrot.lane.b32.xlu0 %v3564_v54, %s4333_s4  ;;  %s3648_s4 = sld [smem:[#allocation8 + $0x61]] }
 0x2a5   : > { %v3666_v50 = vpop.permute.xlu2 %1326 }
 0x2ad   : > { %v1373_v40 = vpop.permute.xlu2 %1372 }
 0x2bd   : > { %v1285_v47 = vpop.permute.xlu1 %1284 }
 0x2be   : > { %v1283_v53 = vpop.permute.xlu0 %1282 }
 0x2bf   : > { %v1286_v45 = vsel %vm447_vm2, %v1283_v53, %v1285_v47  ;;  %v1287_v44 = vsel %vm447_vm2, %v1285_v47, %v1283_v53 }
 0x2c0   : > { %v1288_v23 = vmul.f32 %v1287_v44, %v3033_v37  ;;  %v1289_v59 = vmul.f32 %v1286_v45, %v3036_v38 }
 0x2c2   : > { %v1292_v58 = vmul.f32 %v1291_v2, %v1288_v23  ;;  %v1293_v32 = vmul.f32 %v1291_v2, %v1289_v59  ;;  %v1298_v31 = vmul.f32 %v1297_v4, %v1288_v23  ;;  %v1299_v28 = vmul.f32 %v1297_v4, %v1289_v59 }
 0x2c3   : > { %v1310_v3 = vmul.f32 %v1309_v21, %v1288_v23  ;;  %v1311_v47 = vmul.f32 %v1309_v21, %v1289_v59  ;;  %v1316_v53 = vmul.f32 %v1315_v41, %v1288_v23  ;;  %v1317_v15 = vmul.f32 %v1315_v41, %v1289_v59 }
 0x2c4   : > { %v1294_v44 = vadd.f32 %v1292_v58, %v1277_v62  ;;  %v1295_v45 = vadd.f32 %v1293_v32, %v1277_v62  ;;  %v1302_v52 = vrot.slane %v1298_v31, 1  ;;  %v1303_v57 = vrot.slane %v1299_v28, 1 }
 0x2c5   : > { %v1312_v30 = vadd.f32 %v1310_v3, %v1280_v5  ;;  %v1313_v24 = vadd.f32 %v1311_v47, %v1280_v5  ;;  %v1320_v26 = vrot.slane %v1316_v53, 1  ;;  %v1321_v46 = vrot.slane %v1317_v15, 1  ;;  %v1371_v2 = vpop.permute.xlu1 %1370 }
 0x2c6   : > { %v1374_v4 = vsel %vm541_vm4, %v1371_v2, %v1373_v40  ;;  %v1375_v21 = vsel %vm541_vm4, %v1373_v40, %v1371_v2  ;;  %v1329_v23 = vpop.permute.xlu0 %1328  ;;  %v1306_v3 = vadd.f32 %v1302_v52, %v1294_v44  ;;  %v1307_v15 = vadd.f32 %v1303_v57, %v1295_v45 }
 0x2c7   : > { %v1376_v58 = vmul.f32 %v1375_v21, %v3055_v48  ;;  %v1377_v62 = vmul.f32 %v1374_v4, %v3058_v49  ;;  %v1330_v31 = vsel %vm494_vm3, %v3666_v50, %v1329_v23  ;;  %v1331_v40 = vsel %vm494_vm3, %v1329_v23, %v3666_v50 }
 0x2c8   : > { %v1324_v28 = vadd.f32 %v1320_v26, %v1312_v30  ;;  %v1325_v47 = vadd.f32 %v1321_v46, %v1313_v24  ;;  %v1332_v46 = vmul.f32 %v1331_v40, %v3044_v42 }
 0x2c9   : > { %v1386_v53 = vmul.f32 %v1385_v27, %v1376_v58  ;;  %v1387_v2 = vmul.f32 %v1385_v27, %v1377_v62  ;;  %v1380_v4 = vmul.f32 %v1379_v20, %v1376_v58  ;;  %v1381_v21 = vmul.f32 %v1379_v20, %v1377_v62 }
 0x2ca   : > { %v1404_v52 = vmul.f32 %v1403_v29, %v1376_v58  ;;  %v1405_v57 = vmul.f32 %v1403_v29, %v1377_v62  ;;  %v1398_v44 = vmul.f32 %v1397_v10, %v1376_v58  ;;  %v1399_v50 = vmul.f32 %v1397_v10, %v1377_v62  ;;  %v3748_v62 = vpop.permute.xlu2 %1494 }
 0x2cb   : > { %v1333_v27 = vmul.f32 %v1330_v31, %v3047_v43  ;;  %v1390_v20 = vrot.slane %v1386_v53, 1  ;;  %v1391_v30 = vrot.slane %v1387_v2, 1  ;;  %v1336_v26 = vmul.f32 %v1335_v17, %v1332_v46 }
 0x2cc   : > { %v1408_v24 = vrot.slane %v1404_v52, 1  ;;  %v1409_v29 = vrot.slane %v1405_v57, 1  ;;  %v1342_v23 = vmul.f32 %v1341_v14, %v1332_v46  ;;  %v1354_v40 = vmul.f32 %v1353_v63, %v1332_v46 }
 0x2cd   : > { %v1337_v45 = vmul.f32 %v1335_v17, %v1333_v27  ;;  %v1343_v10 = vmul.f32 %v1341_v14, %v1333_v27  ;;  %v1417_v58 = vpop.permute.xlu1 %1416  ;;  %v1355_v31 = vmul.f32 %v1353_v63, %v1333_v27  ;;  %v1360_v53 = vmul.f32 %v1359_v60, %v1332_v46 }
 0x2ce   : > { %v1361_v2 = vmul.f32 %v1359_v60, %v1333_v27  ;;  %v1415_v52 = vpop.permute.xlu0 %1414  ;;  %v1338_v57 = vadd.f32 %v1336_v26, %v1306_v3  ;;  %v1346_v32 = vrot.slane %v1342_v23, 1  ;;  %v1356_v59 = vadd.f32 %v1354_v40, %v1324_v28 }
 0x2cf   : > { %v1339_v5 = vadd.f32 %v1337_v45, %v1307_v15  ;;  %v1347_v17 = vrot.slane %v1343_v10, 1  ;;  %v1357_v14 = vadd.f32 %v1355_v31, %v1325_v47  ;;  %v1364_v41 = vrot.slane %v1360_v53, 1 }
 0x2d0   : > { %v1365_v6 = vrot.slane %v1361_v2, 1  ;;  %v1350_v7 = vadd.f32 %v1346_v32, %v1338_v57  ;;  %v1418_v63 = vsel %vm588_vm5, %v1415_v52, %v1417_v58  ;;  %v1419_v60 = vsel %vm588_vm5, %v1417_v58, %v1415_v52 }
 0x2d1   : > { %v1351_v34 = vadd.f32 %v1347_v17, %v1339_v5  ;;  %v1368_v3 = vadd.f32 %v1364_v41, %v1356_v59  ;;  %v1420_v28 = vmul.f32 %v1419_v60, %v3066_v55  ;;  %v1421_v47 = vmul.f32 %v1418_v63, %v3069_v56 }
 0x2d2   : > { %v1369_v15 = vadd.f32 %v1365_v6, %v1357_v14  ;;  %v1382_v32 = vadd.f32 %v1380_v4, %v1350_v7  ;;  %v1591_v46 = vstv %s3730_s25  ;;  %v1597_v27 = vstv %s3738_s9  ;;  %s3953_s25 = sld [smem:[#allocation8 + $0x84]] }
 0x2d3   : > { %v1383_v5 = vadd.f32 %v1381_v21, %v1351_v34  ;;  %v1400_v26 = vadd.f32 %v1398_v44, %v1368_v3  ;;  %v4355_v41 = vstv %s3630_s18  ;;  %v4357_v40 = vstv %s3632_s17  ;;  %s3933_s18 = sld [smem:[#allocation8 + $0x77]] }
 0x2d4   : > { %v1401_v45 = vadd.f32 %v1399_v50, %v1369_v15  ;;  %v1424_v59 = vmul.f32 %v4355_v41, %v1420_v28  ;;  %v4356_v6 = vmov %v4355_v41  ;;  %v1394_v10 = vadd.f32 %v1390_v20, %v1382_v32  ;;  %v1541_v20 = vpop.permute.xlu2 %1540  ;;  %s3935_s17 = sld [smem:[#allocation8 + $0x70]] }
 0x2d5   : > { %v1425_v23 = vmul.f32 %v4356_v6, %v1421_v47  ;;  %v1395_v58 = vadd.f32 %v1391_v30, %v1383_v5  ;;  %v1430_v31 = vmul.f32 %v4357_v40, %v1420_v28  ;;  %v4358_v53 = vmov %v4357_v40  ;;  %v1539_v34 = vpop.permute.xlu1 %1538  ;;  %s3959_s9 = sld [smem:[#allocation8 + $0x85]] }
 0x2d6   : > { %v1431_v7 = vmul.f32 %v4358_v53, %v1421_v47  ;;  %v1412_v4 = vadd.f32 %v1408_v24, %v1400_v26  ;;  %v1413_v21 = vadd.f32 %v1409_v29, %v1401_v45  ;;  %v4359_v2 = vstv %s3634_s5  ;;  %v1497_v50 = vpop.permute.xlu0 %1496  ;;  %s3937_s5 = sld [smem:[#allocation8 + $0x71]] }
 0x2d7   : > { %v1442_v52 = vmul.f32 %v4359_v2, %v1420_v28  ;;  %v4360_v57 = vmov %v4359_v2  ;;  %v1426_v17 = vadd.f32 %v1424_v59, %v1394_v10  ;;  %v1427_v14 = vadd.f32 %v1425_v23, %v1395_v58 }
 0x2d8   : > { %v1443_v44 = vmul.f32 %v4360_v57, %v1421_v47  ;;  %v1434_v63 = vrot.slane %v1430_v31, 1  ;;  %v1435_v60 = vrot.slane %v1431_v7, 1  ;;  %v4361_v15 = vstv %s3636_s12  ;;  %s3818_s12 = sld [smem:[#allocation8 + $0x68]] }
 0x2d9   : > { %v1444_v30 = vadd.f32 %v1442_v52, %v1412_v4  ;;  %v1448_v32 = vmul.f32 %v4361_v15, %v1420_v28  ;;  %v4362_v5 = vmov %v4361_v15  ;;  %v1542_v26 = vsel %vm718_vm7, %v1539_v34, %v1541_v20 }
 0x2da   : > { %v1445_v3 = vadd.f32 %v1443_v44, %v1413_v21  ;;  %v1449_v41 = vmul.f32 %v4362_v5, %v1421_v47  ;;  %v1438_v24 = vadd.f32 %v1434_v63, %v1426_v17  ;;  %v1439_v29 = vadd.f32 %v1435_v60, %v1427_v14 }
 0x2db   : > { %v1543_v45 = vsel %vm718_vm7, %v1541_v20, %v1539_v34  ;;  %v1452_v59 = vrot.slane %v1448_v32, 1  ;;  %v1544_v23 = vmul.f32 %v1542_v26, %v3096_v8  ;;  %v1609_v58 = vstv %s3764_s19  ;;  %s3965_s19 = sld [smem:[#allocation8 + $0x86]] }
 0x2dc   : > { %v1453_v6 = vrot.slane %v1449_v41, 1  ;;  %v1545_v28 = vmul.f32 %v1543_v45, %v3099_v9  ;;  %v1462_v47 = vadd.f32 %v3669_v25, %v1438_v24  ;;  %v1463_v10 = vadd.f32 %v3659_v61, %v1439_v29 }
 0x2dd   : > { %v1615_v40 = vstv %s3768_s14  ;;  %v1456_v31 = vadd.f32 %v1452_v59, %v1444_v30  ;;  %v1498_v7 = vsel %vm671_vm6, %v3748_v62, %v1497_v50  ;;  %v1499_v34 = vsel %vm671_vm6, %v1497_v50, %v3748_v62  ;;  %s3971_s14 = sld [smem:[#allocation8 + $0x87]] }
 0x2de   : > { %v1457_v53 = vadd.f32 %v1453_v6, %v1445_v3  ;;  %v4363_v4 = vstv %s3640_s7  ;;  %v4365_v52 = vstv %s3648_s4  ;;  %v4367_v63 = vstv %s3664_s29  ;;  %v1585_v3 = vpop.permute.xlu1 %1584  ;;  %v1583_v15 = vpop.permute.xlu0 %1582  ;;  %s3824_s7 = sld [smem:[#allocation8 + $0x69]] }
 0x2df   : > { %v1548_v21 = vmul.f32 %v4363_v4, %v1544_v23  ;;  %v4364_v2 = vmov %v4363_v4  ;;  %v1554_v61 = vmul.f32 %v4365_v52, %v1544_v23  ;;  %v4366_v57 = vmov %v4365_v52  ;;  %s3859_s4 = sld [smem:[#allocation8 + $0x6a]] }
 0x2e0   : > { %v1549_v25 = vmul.f32 %v4364_v2, %v1545_v28  ;;  %v1555_v44 = vmul.f32 %v4366_v57, %v1545_v28  ;;  %v1480_v17 = vadd.f32 %v3672_v33, %v1456_v31  ;;  %v1481_v14 = vadd.f32 %v3662_v51, %v1457_v53  ;;  %s3941_s29 = sld [smem:[#allocation8 + $0x73]] }
 0x2e1   : > { %v3814_v60 = vmul.f32 %v4367_v63, %v1544_v23  ;;  %v4368_v20 = vmov %v4367_v63  ;;  %v1558_v62 = vrot.slane %v1554_v61, 1  ;;  %v4369_v32 = vstv %s3656_s28  ;;  %s3939_s28 = sld [smem:[#allocation8 + $0x72]] }
 0x2e2   : > { %v1573_v30 = vmul.f32 %v4368_v20, %v1545_v28  ;;  %v1559_v50 = vrot.slane %v1555_v44, 1  ;;  %v1566_v5 = vmul.f32 %v4369_v32, %v1544_v23  ;;  %v4370_v41 = vmov %v4369_v32 }
 0x2e3   : > { %v1567_v24 = vmul.f32 %v4370_v41, %v1545_v28  ;;  %v1576_v51 = vrot.slane %v3814_v60, 1  ;;  %v4371_v29 = vrot.slane %v3643_v19, 1  ;;  %v4372_v45 = vrot.slane %v3651_v18, 1 }
 0x2e4   : > { %v1577_v33 = vrot.slane %v1573_v30, 1  ;;  %v1500_v6 = vmul.f32 %v1498_v7, %v3084_v0  ;;  %v1501_v23 = vmul.f32 %v1499_v34, %v3087_v1  ;;  %v1586_v28 = vsel %vm765_vm8, %v1583_v15, %v1585_v3 }
 0x2e5   : > { %v1475_v26 = vadd.f32 %v4371_v29, %v1463_v10  ;;  %v1474_v59 = vadd.f32 %v4372_v45, %v1462_v47  ;;  %v1587_v31 = vsel %vm765_vm8, %v1585_v3, %v1583_v15  ;;  %v4373_v53 = vrot.slane %v3646_v35, 1 }
 0x2e6   : > { %v4374_v10 = vrot.slane %v3654_v36, 1  ;;  %v1588_v18 = vmul.f32 %v1586_v28, %v3234_v16  ;;  %v1589_v47 = vmul.f32 %v1587_v31, %v3249_v13  ;;  %v4375_v2 = vstv %s3684_s16  ;;  %s3943_s16 = sld [smem:[#allocation8 + $0x78]] }
 0x2e7   : > { %v1493_v19 = vadd.f32 %v4373_v53, %v1481_v14  ;;  %v1504_v7 = vmul.f32 %v4375_v2, %v1500_v6  ;;  %v4376_v52 = vmov %v4375_v2  ;;  %v4377_v61 = vstv %s3690_s10  ;;  %s3945_s10 = sld [smem:[#allocation8 + $0x79]] }
 0x2e8   : > { %v1492_v4 = vadd.f32 %v4374_v10, %v1480_v17  ;;  %v1505_v34 = vmul.f32 %v4376_v52, %v1501_v23  ;;  %v1510_v57 = vmul.f32 %v4377_v61, %v1500_v6  ;;  %v4378_v44 = vmov %v4377_v61 }
 0x2e9   : > { %v1511_v63 = vmul.f32 %v4378_v44, %v1501_v23  ;;  %v4379_v60 = vstv %s3696_s21  ;;  %v4381_v36 = vstv %s3704_s22  ;;  %v1506_v15 = vadd.f32 %v1504_v7, %v1474_v59  ;;  %s3947_s21 = sld [smem:[#allocation8 + $0x7a]] }
 0x2ea   : > { %v1522_v20 = vmul.f32 %v4379_v60, %v1500_v6  ;;  %v4380_v35 = vmov %v4379_v60  ;;  %v1528_v17 = vmul.f32 %v4381_v36, %v1500_v6  ;;  %v4382_v30 = vmov %v4381_v36  ;;  %s3949_s22 = sld [smem:[#allocation8 + $0x7b]] }
 0x2eb   : > { %v1523_v14 = vmul.f32 %v4380_v35, %v1501_v23  ;;  %v1529_v3 = vmul.f32 %v4382_v30, %v1501_v23  ;;  %v1507_v32 = vadd.f32 %v1505_v34, %v1475_v26  ;;  %v1514_v41 = vrot.slane %v1510_v57, 1 }
 0x2ec   : > { %v1515_v29 = vrot.slane %v1511_v63, 1  ;;  %v1524_v45 = vadd.f32 %v1522_v20, %v1492_v4  ;;  %v1532_v31 = vrot.slane %v1528_v17, 1  ;;  %v1635_v2 = vstv %s3818_s12  ;;  %s3987_s12 = sld [smem:[#allocation8 + $0x80]] }
 0x2ed   : > { %v1525_v28 = vadd.f32 %v1523_v14, %v1493_v19  ;;  %v1533_v53 = vrot.slane %v1529_v3, 1  ;;  %v1518_v10 = vadd.f32 %v1514_v41, %v1506_v15  ;;  %v1641_v23 = vstv %s3824_s7  ;;  %s3993_s7 = sld [smem:[#allocation8 + $0x81]] }
 0x2ee   : > { %v1519_v6 = vadd.f32 %v1515_v29, %v1507_v32  ;;  %v1536_v26 = vadd.f32 %v1532_v31, %v1524_v45  ;;  %v1598_v4 = vmul.f32 %v1597_v27, %v1588_v18  ;;  %v1599_v19 = vmul.f32 %v1597_v27, %v1589_v47  ;;  %v1629_v27 = vpop.permute.xlu0 %1628 }
 0x2ef   : > { %v1537_v59 = vadd.f32 %v1533_v53, %v1525_v28  ;;  %v1550_v7 = vadd.f32 %v1548_v21, %v1518_v10  ;;  %v1592_v34 = vmul.f32 %v1591_v46, %v1588_v18  ;;  %v1593_v61 = vmul.f32 %v1591_v46, %v1589_v47  ;;  %v1627_v46 = vpop.permute.xlu2 %1626 }
 0x2f0   : > { %v1551_v52 = vadd.f32 %v1549_v25, %v1519_v6  ;;  %v1568_v57 = vadd.f32 %v1566_v5, %v1536_v26  ;;  %v1610_v63 = vmul.f32 %v1609_v58, %v1588_v18  ;;  %v1611_v60 = vmul.f32 %v1609_v58, %v1589_v47 }
 0x2f1   : > { %v1569_v44 = vadd.f32 %v1567_v24, %v1537_v59  ;;  %v1562_v35 = vadd.f32 %v1558_v62, %v1550_v7  ;;  %v1616_v14 = vmul.f32 %v1615_v40, %v1588_v18  ;;  %v1617_v36 = vmul.f32 %v1615_v40, %v1589_v47  ;;  %v3887_v47 = vld [vmem:[#allocation6 + $0x10] ss:$0 sm:$0xff] }
 0x2f2   : > { %v1563_v20 = vadd.f32 %v1559_v50, %v1551_v52  ;;  %v1580_v25 = vadd.f32 %v1576_v51, %v1568_v57  ;;  %v1602_v17 = vrot.slane %v1598_v4, 1  ;;  %v1603_v30 = vrot.slane %v1599_v19, 1 }
 0x2f3   : > { %v1581_v21 = vadd.f32 %v1577_v33, %v1569_v44  ;;  %v1594_v5 = vadd.f32 %v1592_v34, %v1562_v35  ;;  %v1620_v3 = vrot.slane %v1616_v14, 1  ;;  %v1621_v15 = vrot.slane %v1617_v36, 1  ;;  %v3890_v33 = vld [vmem:[#allocation6 + $0x18] ss:$0 sm:$0xff] }
 0x2f4   : > { %v1595_v24 = vadd.f32 %v1593_v61, %v1563_v20  ;;  %v1612_v32 = vadd.f32 %v1610_v63, %v1580_v25  ;;  %v1630_v62 = vsel %vm812_vm9, %v1627_v46, %v1629_v27  ;;  %v1631_v50 = vsel %vm812_vm9, %v1629_v27, %v1627_v46 }
 0x2f5   : > { %v1613_v58 = vadd.f32 %v1611_v60, %v1581_v21  ;;  %v1653_v40 = vstv %s3859_s4  ;;  %v1659_v18 = vstv %s3863_s0  ;;  %v1632_v51 = vmul.f32 %v3887_v47, %v1630_v62  ;;  %s3999_s4 = sld [smem:[#allocation8 + $0x82]] }
 0x2f6   : > { %v1633_v41 = vmul.f32 %v3890_v33, %v1631_v50  ;;  %v1606_v29 = vadd.f32 %v1602_v17, %v1594_v5  ;;  %v1607_v45 = vadd.f32 %v1603_v30, %v1595_v24  ;;  %v1624_v28 = vadd.f32 %v1620_v3, %v1612_v32  ;;  %s4007_s0 = sld [smem:[#allocation8 + $0x83]] }
 0x2f7   : > { %v1625_v31 = vadd.f32 %v1621_v15, %v1613_v58  ;;  %v1636_v53 = vmul.f32 %v1635_v2, %v1632_v51  ;;  %v1642_v6 = vmul.f32 %v1641_v23, %v1632_v51  ;;  %v1654_v59 = vmul.f32 %v1653_v40, %v1632_v51 }
 0x2f8   : > { %v1637_v10 = vmul.f32 %v1635_v2, %v1633_v41  ;;  %v1643_v26 = vmul.f32 %v1641_v23, %v1633_v41  ;;  %v1655_v4 = vmul.f32 %v1653_v40, %v1633_v41  ;;  %v1660_v19 = vmul.f32 %v1659_v18, %v1632_v51 }
 0x2f9   : > { %v1661_v7 = vmul.f32 %v1659_v18, %v1633_v41  ;;  %v1638_v52 = vadd.f32 %v1636_v53, %v1606_v29  ;;  %v1646_v61 = vrot.slane %v1642_v6, 1  ;;  %v1656_v44 = vadd.f32 %v1654_v59, %v1624_v28 }
 0x2fa   : > { %v1639_v34 = vadd.f32 %v1637_v10, %v1607_v45  ;;  %v1647_v57 = vrot.slane %v1643_v26, 1  ;;  %v1657_v63 = vadd.f32 %v1655_v4, %v1625_v31  ;;  %v1664_v60 = vrot.slane %v1660_v19, 1 }
 0x2fb   : > { %v1665_v20 = vrot.slane %v1661_v7, 1  ;;  %v1650_v35 = vadd.f32 %v1646_v61, %v1638_v52  ;;  %v1871_v24 = vstv %s2426_s2  ;;  %v1683_v53 = vstv %s3917_s6  ;;  %s4069_s2 = sld [smem:[#allocation8 + $0x8b]] }
 0x2fc   : > { %v1651_v14 = vadd.f32 %v1647_v57, %v1639_v34  ;;  %v1668_v36 = vadd.f32 %v1664_v60, %v1656_v44  ;;  %v1697_v59 = vstv %s3915_s3  ;;  %v1715_v19 = vstv %s3923_s8  ;;  %s4130_s3 = sld [smem:[#allocation8 + $0x8d]] }
 0x2fd   : > { %v1669_v27 = vadd.f32 %v1665_v20, %v1657_v63  ;;  %v1670_v25 = vmax.f32 %v1650_v35, 0.0  ;;  %v1785_v34 = vstv %s3927_s27  ;;  %v1791_v61 = vstv %s3929_s30  ;;  %s4169_s8 = sld [smem:[#allocation8 + $0x8e]] }
 0x2fe   : > { %v1672_v21 = vmax.f32 %v1668_v36, 0.0  ;;  %v1671_v23 = vmax.f32 %v1651_v14, 0.0  ;;  %v1803_v57 = vstv %s3931_s15  ;;  %v1809_v44 = vstv %s3933_s18  ;;  %s4405_s27 = sld [smem:[#allocation21_spill]] }
 0x2ff   : > { %v1673_v2 = vmax.f32 %v1669_v27, 0.0  ;;  %v1741_v60 = vstv %s3935_s17  ;;  %v1747_v20 = vstv %s3937_s5  ;;  %v1759_v35 = vstv %s3939_s28  ;;  %s4406_s18 = sld [smem:[#allocation33_spill]] }
 0x300   : > { %v1676_v17 = vrot.slane %v1672_v21, 7  ;;  %v1765_v14 = vstv %s3941_s29  ;;  %v1829_v21 = vstv %s3943_s16  ;;  %s4407_s17 = sld [smem:[#allocation26_spill]] }
 0x301   : > { %v1677_v30 = vrot.slane %v1673_v2, 7  ;;  %s4408_s16 = sld [smem:[#allocation35_spill]] }
 0x302   : > { %v1680_v46 = vsel %vm865_vm10, %v1670_v25, %v1676_v17  ;;  %v1847_v17 = vstv %s3947_s21 }
 0x303   : > { %v1681_v5 = vsel %vm865_vm10, %v1671_v23, %v1677_v30  ;;  %1732 = vrot.lane.b32.xlu0 %v1680_v46, %s4327_s26  ;;  %1688 = vrot.lane.b32.xlu1 %v1680_v46, %s4328_s23  ;;  %v3961_v40 = vmul.f32 %v1871_v24, %v1680_v46 }
 0x304   : > { %1690 = vrot.lane.b32.xlu2 %v1681_v5, %s4328_s23  ;;  %s4383_s23 = smov 111   ;;  %v3955_v58 = vmul.f32 %v1871_v24, %v1681_v5  ;;  %s2455_s5 = sshll.u32 %s4405_s27, 3 }
 0x30b   : > { %1778 = vrot.lane.b32.xlu0 %v1681_v5, %s4329_s20  ;;  %1734 = vrot.lane.b32.xlu1 %v1681_v5, %s4327_s26  ;;  %s3911_s26 = sld [smem:[#allocation8 + $0x7c]] }
 0x30c   : > { %1776 = vrot.lane.b32.xlu2 %v1680_v46, %s4329_s20  ;;  %s3913_s20 = sld [smem:[#allocation8 + $0x7e]] }
 0x311   : > { %v1865_v15 = vstv %s3911_s26  ;;  %s4039_s26 = sld [smem:[#allocation8 + $0x89]] }
 0x312   : > { %v1883_v32 = vstv %s3913_s20  ;;  %v3967_v51 = vmul.f32 %v1865_v15, %v1681_v5  ;;  %v3973_v29 = vmul.f32 %v1865_v15, %v1680_v46  ;;  %s4065_s20 = sld [smem:[#allocation8 + $0x8a]] }
 0x313   : > { %1900 = vrot.lane.b32.xlu0 %v1680_v46, %s4330_s24  ;;  %1820 = vrot.lane.b32.xlu1 %v1680_v46, %s4331_s13  ;;  %v3969_v41 = vmul.f32 %v1883_v32, %v1681_v5  ;;  %v3975_v45 = vmul.f32 %v1883_v32, %v1680_v46 }
 0x314   : > { %1822 = vrot.lane.b32.xlu2 %v1681_v5, %s4331_s13  ;;  %s2428_s13 = sld [smem:[#allocation8 + $0x7f]] }
 0x31a   : > { %v1889_v3 = vstv %s2428_s13  ;;  %s4123_s13 = sld [smem:[#allocation8 + $0x8c]] }
 0x31b   : > { %1946 = vrot.lane.b32.xlu0 %v1681_v5, %s4332_s1  ;;  %1902 = vrot.lane.b32.xlu1 %v1681_v5, %s4330_s24  ;;  %s3921_s24 = sld [smem:[#allocation8 + $0x6d]]  ;;  %v3957_v62 = vmul.f32 %v1889_v3, %v1681_v5  ;;  %v3963_v18 = vmul.f32 %v1889_v3, %v1680_v46 }
 0x31c   : > { %1944 = vrot.lane.b32.xlu2 %v1680_v46, %s4332_s1  ;;  %s3919_s1 = sld [smem:[#allocation9 + $0x7]] }
 0x321   : > { %v1703_v4 = vstv %s3921_s24  ;;  %s4398_s24 = sld [smem:[#allocation34_spill]] }
 0x322   : > { %v1686_v10 = vstv %s3919_s1 }
 0x323   : > { %2032 = vrot.lane.b32.xlu0 %v1680_v46, %s4383_s23  ;;  %1988 = vrot.lane.b32.xlu1 %v1680_v46, %s4334_s11 }
 0x324   : > { %1990 = vrot.lane.b32.xlu2 %v1681_v5, %s4334_s11  ;;  %s3925_s11 = sld [smem:[#allocation8 + $0x6f]] }
 0x32a   : > { %v1721_v7 = vstv %s3925_s11  ;;  %s4173_s11 = sld [smem:[#allocation8 + $0x8f]] }
 0x32b   : > { %2034 = vrot.lane.b32.xlu1 %v1681_v5, %s4383_s23  ;;  %s4031_s23 = sld [smem:[#allocation8 + $0x88]] }
 0x35e   : > { %v1691_v50 = vpop.permute.xlu2 %1690 }
 0x366   : > { %v1777_v46 = vpop.permute.xlu2 %1776 }
 0x375   : > { %v1733_v52 = vpop.permute.xlu0 %1732  ;;  %v1689_v63 = vpop.permute.xlu1 %1688 }
 0x376   : > { %v1692_v36 = vsel %vm447_vm2, %v1689_v63, %v1691_v50  ;;  %v1693_v27 = vsel %vm447_vm2, %v1691_v50, %v1689_v63 }
 0x377   : > { %v1694_v25 = vmul.f32 %v1693_v27, %v3033_v37  ;;  %v1695_v23 = vmul.f32 %v1692_v36, %v3036_v38 }
 0x379   : > { %v1698_v32 = vmul.f32 %v1697_v59, %v1694_v25  ;;  %v1699_v26 = vmul.f32 %v1697_v59, %v1695_v23  ;;  %v1704_v31 = vmul.f32 %v1703_v4, %v1694_v25  ;;  %v1705_v6 = vmul.f32 %v1703_v4, %v1695_v23 }
 0x37a   : > { %v1716_v50 = vmul.f32 %v1715_v19, %v1694_v25  ;;  %v1717_v63 = vmul.f32 %v1715_v19, %v1695_v23  ;;  %v1722_v28 = vmul.f32 %v1721_v7, %v1694_v25  ;;  %v1723_v2 = vmul.f32 %v1721_v7, %v1695_v23 }
 0x37b   : > { %v1700_v37 = vadd.f32 %v1698_v32, %v1683_v53  ;;  %v1701_v38 = vadd.f32 %v1699_v26, %v1683_v53  ;;  %v1708_v36 = vrot.slane %v1704_v31, 1  ;;  %v1709_v27 = vrot.slane %v1705_v6, 1 }
 0x37c   : > { %v1718_v5 = vadd.f32 %v1716_v50, %v1686_v10  ;;  %v1719_v24 = vadd.f32 %v1717_v63, %v1686_v10  ;;  %v1726_v3 = vrot.slane %v1722_v28, 1  ;;  %v1727_v15 = vrot.slane %v1723_v2, 1 }
 0x37d   : > { %v1779_v30 = vpop.permute.xlu0 %1778  ;;  %v1735_v19 = vpop.permute.xlu1 %1734  ;;  %v1909_v25 = vstv %s3987_s12  ;;  %v1915_v7 = vstv %s3993_s7  ;;  %v1712_v28 = vadd.f32 %v1708_v36, %v1700_v37  ;;  %v1713_v10 = vadd.f32 %v1709_v27, %v1701_v38 }
 0x37e   : > { %v1780_v59 = vsel %vm541_vm4, %v1777_v46, %v1779_v30  ;;  %v1781_v4 = vsel %vm541_vm4, %v1779_v30, %v1777_v46  ;;  %v1736_v26 = vsel %vm494_vm3, %v1733_v52, %v1735_v19  ;;  %v1737_v2 = vsel %vm494_vm3, %v1735_v19, %v1733_v52  ;;  %v1823_v37 = vpop.permute.xlu2 %1822 }
 0x37f   : > { %v1782_v23 = vmul.f32 %v1781_v4, %v3055_v48  ;;  %v1783_v53 = vmul.f32 %v1780_v59, %v3058_v49  ;;  %v1730_v30 = vadd.f32 %v1726_v3, %v1718_v5  ;;  %v1731_v46 = vadd.f32 %v1727_v15, %v1719_v24 }
 0x380   : > { %v1739_v5 = vmul.f32 %v1736_v26, %v3047_v43 }
 0x381   : > { %v1792_v32 = vmul.f32 %v1791_v61, %v1782_v23  ;;  %v1793_v50 = vmul.f32 %v1791_v61, %v1783_v53  ;;  %v1786_v48 = vmul.f32 %v1785_v34, %v1782_v23  ;;  %v1787_v49 = vmul.f32 %v1785_v34, %v1783_v53 }
 0x382   : > { %v1810_v63 = vmul.f32 %v1809_v44, %v1782_v23  ;;  %v1811_v59 = vmul.f32 %v1809_v44, %v1783_v53  ;;  %v1804_v38 = vmul.f32 %v1803_v57, %v1782_v23  ;;  %v1805_v52 = vmul.f32 %v1803_v57, %v1783_v53 }
 0x383   : > { %v1738_v61 = vmul.f32 %v1737_v2, %v3044_v42  ;;  %v1796_v34 = vrot.slane %v1792_v32, 1  ;;  %v1797_v24 = vrot.slane %v1793_v50, 1  ;;  %v1743_v36 = vmul.f32 %v1741_v60, %v1739_v5 }
 0x384   : > { %v1814_v44 = vrot.slane %v1810_v63, 1  ;;  %v1815_v3 = vrot.slane %v1811_v59, 1  ;;  %v1749_v4 = vmul.f32 %v1747_v20, %v1739_v5  ;;  %v1761_v43 = vmul.f32 %v1759_v35, %v1739_v5 }
 0x385   : > { %v1742_v15 = vmul.f32 %v1741_v60, %v1738_v61  ;;  %v1748_v27 = vmul.f32 %v1747_v20, %v1738_v61  ;;  %v4049_v57 = vpop.permute.xlu0 %1900  ;;  %v1760_v42 = vmul.f32 %v1759_v35, %v1738_v61  ;;  %v1766_v19 = vmul.f32 %v1765_v14, %v1738_v61  ;;  %v1821_v53 = vpop.permute.xlu1 %1820 }
 0x386   : > { %v1767_v23 = vmul.f32 %v1765_v14, %v1739_v5  ;;  %v1745_v2 = vadd.f32 %v1743_v36, %v1713_v10  ;;  %v1753_v50 = vrot.slane %v1749_v4, 1  ;;  %v1763_v63 = vadd.f32 %v1761_v43, %v1731_v46 }
 0x387   : > { %v1744_v26 = vadd.f32 %v1742_v15, %v1712_v28  ;;  %v1752_v32 = vrot.slane %v1748_v27, 1  ;;  %v1762_v60 = vadd.f32 %v1760_v42, %v1730_v30  ;;  %v1770_v20 = vrot.slane %v1766_v19, 1 }
 0x388   : > { %v1771_v59 = vrot.slane %v1767_v23, 1  ;;  %v1757_v31 = vadd.f32 %v1753_v50, %v1745_v2  ;;  %v1824_v35 = vsel %vm588_vm5, %v1821_v53, %v1823_v37  ;;  %v1825_v14 = vsel %vm588_vm5, %v1823_v37, %v1821_v53 }
 0x389   : > { %v1756_v6 = vadd.f32 %v1752_v32, %v1744_v26  ;;  %v1774_v28 = vadd.f32 %v1770_v20, %v1762_v60  ;;  %v1826_v61 = vmul.f32 %v1825_v14, %v3066_v55  ;;  %v1827_v30 = vmul.f32 %v1824_v35, %v3069_v56  ;;  %v1945_v55 = vpop.permute.xlu2 %1944 }
 0x38a   : > { %v1775_v10 = vadd.f32 %v1771_v59, %v1763_v63  ;;  %v1789_v5 = vadd.f32 %v1787_v49, %v1757_v31  ;;  %v1997_v15 = vstv %s4031_s23  ;;  %v2003_v36 = vstv %s4039_s26  ;;  %s2660_s23 = scalar_lea.hbm %s4408_s16, 16 }
 0x38b   : > { %v1788_v46 = vadd.f32 %v1786_v48, %v1756_v6  ;;  %v1806_v27 = vadd.f32 %v1804_v38, %v1774_v28  ;;  %v1830_v4 = vmul.f32 %v1829_v21, %v1826_v61  ;;  %v1831_v42 = vmul.f32 %v1829_v21, %v1827_v30 }
 0x38c   : > { %v1807_v37 = vadd.f32 %v1805_v52, %v1775_v10  ;;  %v1801_v56 = vadd.f32 %v1797_v24, %v1789_v5  ;;  %v4384_v19 = vstv %s3945_s10  ;;  %v1848_v53 = vmul.f32 %v1847_v17, %v1826_v61  ;;  %s2169_s10 = scalar_lea.hbm %s4408_s16, %s2455_s5 }
 0x38d   : > { %v1800_v43 = vadd.f32 %v1796_v34, %v1788_v46  ;;  %v1836_v6 = vmul.f32 %v4384_v19, %v1826_v61  ;;  %v4385_v48 = vmov %v4384_v19  ;;  %v1818_v49 = vadd.f32 %v1814_v44, %v1806_v27  ;;  %v1947_v52 = vpop.permute.xlu0 %1946  ;;  %v1903_v26 = vpop.permute.xlu1 %1902 }
 0x38e   : > { %v1837_v31 = vmul.f32 %v4385_v48, %v1827_v30  ;;  %v1819_v23 = vadd.f32 %v1815_v3, %v1807_v37  ;;  %v1849_v38 = vmul.f32 %v1847_v17, %v1827_v30  ;;  %v1833_v32 = vadd.f32 %v1831_v42, %v1801_v56 }
 0x38f   : > { %v1832_v2 = vadd.f32 %v1830_v4, %v1800_v43  ;;  %v1840_v21 = vrot.slane %v1836_v6, 1  ;;  %v1850_v24 = vadd.f32 %v1848_v53, %v1818_v49  ;;  %v4386_v60 = vstv %s3949_s22  ;;  %s4410_s22 = sshll.u32 %s4407_s17, 3 }
 0x390   : > { %v1841_v34 = vrot.slane %v1837_v31, 1  ;;  %v1851_v50 = vadd.f32 %v1849_v38, %v1819_v23  ;;  %v1854_v63 = vmul.f32 %v4386_v60, %v1826_v61  ;;  %v4387_v20 = vmov %v4386_v60 }
 0x391   : > { %v1855_v59 = vmul.f32 %v4387_v20, %v1827_v30  ;;  %v1844_v44 = vadd.f32 %v1840_v21, %v1832_v2  ;;  %v1948_v17 = vsel %vm718_vm7, %v1945_v55, %v1947_v52  ;;  %v1949_v35 = vsel %vm718_vm7, %v1947_v52, %v1945_v55 }
 0x392   : > { %v1845_v3 = vadd.f32 %v1841_v34, %v1833_v32  ;;  %v1858_v14 = vrot.slane %v1854_v63, 1  ;;  %v1950_v10 = vmul.f32 %v1948_v17, %v3096_v8  ;;  %v1951_v61 = vmul.f32 %v1949_v35, %v3099_v9 }
 0x393   : > { %v1859_v28 = vrot.slane %v1855_v59, 1  ;;  %v1868_v30 = vadd.f32 %v3973_v29, %v1844_v44  ;;  %v2015_v5 = vstv %s4065_s20  ;;  %v2021_v27 = vstv %s4069_s2 }
 0x394   : > { %v1869_v46 = vadd.f32 %v3967_v51, %v1845_v3  ;;  %v1862_v37 = vadd.f32 %v1858_v14, %v1850_v24  ;;  %v1904_v42 = vsel %vm671_vm6, %v4049_v57, %v1903_v26  ;;  %v1905_v8 = vsel %vm671_vm6, %v1903_v26, %v4049_v57 }
 0x395   : > { %v1863_v4 = vadd.f32 %v1859_v28, %v1851_v50  ;;  %v4388_v9 = vstv %s3953_s25  ;;  %v4390_v56 = vstv %s3959_s9  ;;  %v4392_v49 = vstv %s3971_s14  ;;  %v1989_v57 = vpop.permute.xlu1 %1988  ;;  %s367_s25 = scalar_lea.vmem [#allocation11], %s4410_s22  ;;  %s2158_s14 = scalar_lea.sflag [#allocation4], %s4407_s17 }
 0x396   : > { %v1954_v55 = vmul.f32 %v4388_v9, %v1950_v10  ;;  %v4389_v43 = vmov %v4388_v9  ;;  %v4109_v51 = vmul.f32 %v4390_v56, %v1950_v10  ;;  %v4391_v19 = vmov %v4390_v56  ;;  %s2171_s9 = sshll.u32 %s367_s25, 4  ;;  %s2172_s9 = int_to_ptr.vmem [resolvable:$true] %s2171_s9 }
 0x397   : > { %v1955_v29 = vmul.f32 %v4389_v43, %v1951_v61  ;;  %v1961_v6 = vmul.f32 %v4391_v19, %v1951_v61  ;;  %v1886_v48 = vadd.f32 %v3975_v45, %v1862_v37  ;;  %v1887_v31 = vadd.f32 %v3969_v41, %v1863_v4  ;;  %v1991_v41 = vpop.permute.xlu2 %1990 }
 0x398   : > { %v4117_v23 = vmul.f32 %v4392_v49, %v1950_v10  ;;  %v4393_v53 = vmov %v4392_v49  ;;  %v1964_v52 = vrot.slane %v4109_v51, 1  ;;  %v4394_v2 = vstv %s3965_s19  ;;  %s2173_s19 = sshll.u32 %s2169_s10, 4  ;;  %s2174_s19 = int_to_ptr.hbm [resolvable:$true] %s2173_s19 }
 0x399   : > { %v4121_v38 = vmul.f32 %v4393_v53, %v1951_v61  ;;  %v1965_v26 = vrot.slane %v1961_v6, 1  ;;  %v1972_v32 = vmul.f32 %v4394_v2, %v1950_v10  ;;  %v4395_v21 = vmov %v4394_v2  ;;  %s2654_s12 = sshra.s32 %s2174_s19, 4  ;;  %s2655_s12 = int_to_ptr.hbm [resolvable:$true] %s2654_s12 }
 0x39a   : > { %v1973_v34 = vmul.f32 %v4395_v21, %v1951_v61  ;;  %v1982_v45 = vrot.slane %v4117_v23, 1  ;;  %v4396_v50 = vrot.slane %v3955_v58, 1  ;;  %v4397_v63 = vrot.slane %v3961_v40, 1  ;;  %v2094_v58 = vld [vmem:[%s4398_s24] sm:$0xf]  ;;  %s2656_s7 = scalar_lea.hbm %s2655_s12, 8  ;;  %p2661_p12 = scmp.lt.s32.totalorder %s2655_s12, %s4408_s16 }
 0x39b   : > { %v1983_v24 = vrot.slane %v4121_v38, 1  ;;  %v1906_v59 = vmul.f32 %v1904_v42, %v3084_v0  ;;  %v1907_v44 = vmul.f32 %v1905_v8, %v3087_v1  ;;  %v1992_v3 = vsel %vm765_vm8, %v1989_v57, %v1991_v41  ;;  %2097 = vperm.xlu2 %2545, %v2094_v58   ;;  %p2657_p1 = scmp.ne.s32.totalorder %s2655_s12, %s2656_s7  ;;  %p2662_p8 = scmp.lt.s32.totalorder %s2660_s23, %s2656_s7 }
 0x39c   : > { %v1881_v60 = vadd.f32 %v4396_v50, %v1869_v46  ;;  %v1880_v20 = vadd.f32 %v4397_v63, %v1868_v30  ;;  %v1993_v17 = vsel %vm765_vm8, %v1991_v41, %v1989_v57  ;;  %v4399_v40 = vrot.slane %v3957_v62, 1 }
 0x39d   : > { %v4400_v14 = vrot.slane %v3963_v18, 1  ;;  %v1994_v28 = vmul.f32 %v1992_v3, %v3234_v16  ;;  %v1995_v1 = vmul.f32 %v1993_v17, %v3249_v13  ;;  %v1910_v10 = vmul.f32 %v1909_v25, %v1906_v59  ;;  %p2658_p3 = pnand %p2657_p1, %p2845_p13  ;;  %p2663_p7 = por %p2662_p8, %p2661_p12 }
 0x39e   : > { %v1899_v35 = vadd.f32 %v4399_v40, %v1887_v31  ;;  %v1911_v61 = vmul.f32 %v1909_v25, %v1907_v44  ;;  %v1916_v30 = vmul.f32 %v1915_v7, %v1906_v59  ;;  %v1917_v46 = vmul.f32 %v1915_v7, %v1907_v44 }
 0x39f   : > { %v1898_v0 = vadd.f32 %v4400_v14, %v1886_v48  ;;  %v4401_v37 = vstv %s3999_s4  ;;  %v4403_v42 = vstv %s4007_s0  ;;  %v1912_v13 = vadd.f32 %v1910_v10, %v1880_v20  ;;  %p2659_p5 = pneg %p2658_p3 }
 0x3a0   : > { %v1928_v62 = vmul.f32 %v4401_v37, %v1906_v59  ;;  %v4402_v4 = vmov %v4401_v37  ;;  %v1934_v8 = vmul.f32 %v4403_v42, %v1906_v59  ;;  %v4404_v16 = vmov %v4403_v42 }
 0x3a1   : > { %v1929_v18 = vmul.f32 %v4402_v4, %v1907_v44  ;;  %v1935_v9 = vmul.f32 %v4404_v16, %v1907_v44  ;;  %v1913_v43 = vadd.f32 %v1911_v61, %v1881_v60  ;;  %v1920_v56 = vrot.slane %v1916_v30, 1  ;;  %p2664_p9 = pnand %p2663_p7, %p2659_p5 }
 0x3a2   : > { %v1921_v25 = vrot.slane %v1917_v46, 1  ;;  %v1930_v51 = vadd.f32 %v1928_v62, %v1898_v0  ;;  %v1938_v7 = vrot.slane %v1934_v8, 1  ;;  %v2041_v49 = vstv %s4123_s13 }
 0x3a3   : > { %v1931_v19 = vadd.f32 %v1929_v18, %v1899_v35  ;;  %v1939_v6 = vrot.slane %v1935_v9, 1  ;;  %v1924_v48 = vadd.f32 %v1920_v56, %v1912_v13  ;;  %v2047_v23 = vstv %s4130_s3 }
 0x3a4   : > { %v1925_v31 = vadd.f32 %v1921_v25, %v1913_v43  ;;  %v1942_v53 = vadd.f32 %v1938_v7, %v1930_v51  ;;  %v2004_v57 = vmul.f32 %v2003_v36, %v1994_v28  ;;  %v2005_v2 = vmul.f32 %v2003_v36, %v1995_v1  ;;  %v2035_v36 = vpop.permute.xlu1 %2034 }
 0x3a5   : > { %v1943_v38 = vadd.f32 %v1939_v6, %v1931_v19  ;;  %v1956_v21 = vadd.f32 %v1954_v55, %v1924_v48  ;;  %v1998_v50 = vmul.f32 %v1997_v15, %v1994_v28  ;;  %v1999_v60 = vmul.f32 %v1997_v15, %v1995_v1  ;;  %v2033_v15 = vpop.permute.xlu0 %2032 }
 0x3a6   : > { %v1957_v41 = vadd.f32 %v1955_v29, %v1925_v31  ;;  %v1974_v63 = vadd.f32 %v1972_v32, %v1942_v53  ;;  %v2016_v59 = vmul.f32 %v2015_v5, %v1994_v28  ;;  %v2017_v44 = vmul.f32 %v2015_v5, %v1995_v1 }
 0x3a7   : > { %v1975_v20 = vadd.f32 %v1973_v34, %v1943_v38  ;;  %v1968_v17 = vadd.f32 %v1964_v52, %v1956_v21  ;;  %v2022_v58 = vmul.f32 %v2021_v27, %v1994_v28  ;;  %v2023_v40 = vmul.f32 %v2021_v27, %v1995_v1 }
 0x3a8   : > { %v1969_v3 = vadd.f32 %v1965_v26, %v1957_v41  ;;  %v1986_v29 = vadd.f32 %v1982_v45, %v1974_v63  ;;  %v2008_v35 = vrot.slane %v2004_v57, 1  ;;  %v2009_v14 = vrot.slane %v2005_v2, 1  ;;  %v2093_v63 = vld [vmem:[%s4406_s18] sm:$0xf] }
 0x3a9   : > { %v1987_v55 = vadd.f32 %v1983_v24, %v1975_v20  ;;  %v2000_v32 = vadd.f32 %v1998_v50, %v1968_v17  ;;  %v2026_v0 = vrot.slane %v2022_v58, 1  ;;  %v2027_v10 = vrot.slane %v2023_v40, 1 }
 0x3aa   : > { %v2001_v34 = vadd.f32 %v1999_v60, %v1969_v3  ;;  %v2018_v61 = vadd.f32 %v2016_v59, %v1986_v29  ;;  %v2036_v52 = vsel %vm812_vm9, %v2033_v15, %v2035_v36  ;;  %v2037_v26 = vsel %vm812_vm9, %v2035_v36, %v2033_v15 }
 0x3ab   : > { %v2019_v5 = vadd.f32 %v2017_v44, %v1987_v55  ;;  %v2059_v27 = vstv %s4169_s8  ;;  %v2065_v28 = vstv %s4173_s11  ;;  %v2038_v24 = vmul.f32 %v3887_v47, %v2036_v52 }
 0x3ac   : > { %v2039_v45 = vmul.f32 %v3890_v33, %v2037_v26  ;;  %v2012_v1 = vadd.f32 %v2008_v35, %v2000_v32  ;;  %v2013_v30 = vadd.f32 %v2009_v14, %v2001_v34  ;;  %v2030_v46 = vadd.f32 %v2026_v0, %v2018_v61 }
 0x3ad   : > { %v2031_v37 = vadd.f32 %v2027_v10, %v2019_v5  ;;  %v2042_v62 = vmul.f32 %v2041_v49, %v2038_v24  ;;  %v2048_v18 = vmul.f32 %v2047_v23, %v2038_v24  ;;  %v2060_v8 = vmul.f32 %v2059_v27, %v2038_v24 }
 0x3ae   : > { %v2043_v4 = vmul.f32 %v2041_v49, %v2039_v45  ;;  %v2049_v42 = vmul.f32 %v2047_v23, %v2039_v45  ;;  %v2061_v16 = vmul.f32 %v2059_v27, %v2039_v45  ;;  %v2066_v9 = vmul.f32 %v2065_v28, %v2038_v24 }
 0x3af   : > { %v2067_v13 = vmul.f32 %v2065_v28, %v2039_v45  ;;  %v2044_v22 = vadd.f32 %v2042_v62, %v2012_v1  ;;  %v2052_v56 = vrot.slane %v2048_v18, 1  ;;  %v2062_v51 = vadd.f32 %v2060_v8, %v2030_v46 }
 0x3b0   : > { %v2045_v43 = vadd.f32 %v2043_v4, %v2013_v30  ;;  %v2053_v25 = vrot.slane %v2049_v42, 1  ;;  %v2063_v47 = vadd.f32 %v2061_v16, %v2031_v37  ;;  %v2070_v19 = vrot.slane %v2066_v9, 1 }
 0x3b1   : > { %v2071_v33 = vrot.slane %v2067_v13, 1  ;;  %v2056_v7 = vadd.f32 %v2052_v56, %v2044_v22 }
 0x3b2   : > { %v2074_v6 = vadd.f32 %v2070_v19, %v2062_v51  ;;  %v2057_v48 = vadd.f32 %v2053_v25, %v2045_v43 }
 0x3b3   : > { %v2075_v31 = vadd.f32 %v2071_v33, %v2063_v47  ;;  %v2076_v38 = vmax.f32 %v2056_v7, 0.0 }
 0x3b4   : > { %v2078_v53 = vmax.f32 %v2074_v6, 0.0  ;;  %v2077_v57 = vmax.f32 %v2057_v48, 0.0 }
 0x3b5   : > { %v2079_v49 = vmax.f32 %v2075_v31, 0.0 }
 0x3b6   : > { %v2082_v23 = vrot.slane %v2078_v53, 7 }
 0x3b7   : > { %v2083_v2 = vrot.slane %v2079_v49, 7 }
 0x3b8   : > { %v2086_v21 = vsel %vm865_vm10, %v2076_v38, %v2082_v23 }
 0x3b9   : > { %v2087_v41 = vsel %vm865_vm10, %v2077_v57, %v2083_v2  ;;  %v2088_v50 = vadd.f32 %v2086_v21, %v3561_v39 }
 0x3ba   : > { %v2089_v60 = vadd.f32 %v2087_v41, %v3564_v54 }
 0x3bb   : > { %v2091_v20 = vsel %vm2090_vm11, %v2088_v50, %v2908_v11 }
 0x3bc   : > { %v2092_v59 = vsel %vm2090_vm11, %v2089_v60, %v2910_v12  ;;  %2445 = vmatpush.msk.msra.mxu2 %vm384_vm0, %v2091_v20 }
 0x3bd   : > { %2447 = vmatpush.msk.msra.mxu3 %vm384_vm0, %v2092_v59  ;;  %2446 = vmatmul.msk.f32.vlgmr.msra.gmra.mxu2 %vm380_vm1, %v2093_v63 }
 0x3be   : > { %2448 = vmatmul.msk.f32.vlgmr.msra.gmra.mxu3 %vm380_vm1, %v2093_v63 }
 0x3f5   : > { %v2098_v39 = vpop.permute.xlu2 %2097 }
 0x440   : > { %v2126_v54 = vpop.f32.mrf.mxu2 }
 0x441   : > { %v2146_v44 = vpop.f32.mrf.mxu3  ;;  %v2127_v11 = vadd.f32 %v2126_v54, %v2098_v39 }
 0x442   : > { %v2147_v3 = vadd.f32 %v2146_v44, %v2098_v39 }
 0x443   : > { %v2149_v17 = vmax.f32 %v2127_v11, 0.0 }
 0x444   : > { %v2150_v12 = vmax.f32 %v2147_v3, 0.0 }
 0x446   : > { %v2153_v58 = vrot.slane %v2150_v12, 4 }
 0x448   : > { %v2154_v40 = vsel %vm384_vm0, %v2149_v17, %v2153_v58 }
 0x449   : > { %2156 = vst [vmem:[%s367_s25] sm:$0xff] %v2154_v40 }
 0x44a   : > { %2667 = shalt.err (!%p2664_p9)
}
 0x44b   : > { %2470 = dma.vmem_to_hbm [thread:$0]  (%p2845_p13), %s2172_s9, 128, %s2174_s19, %s2158_s14  }
 0x44c PF: > { %s4411_s2 = sld [smem:[#allocation17_spill]] }
 0x44d   : > { %s4413_s3 = sld [smem:[#allocation20_spill]] }
 0x452   : > { %s2185_s6 = sand.u32 1, %s4411_s2  }
 0x453   : > { %p4414_p10 = scmp.ge.s32.totalorder %s4413_s3, 2  ;;  %s2186_s1 = scalar_lea.sflag [#allocation4], %s2185_s6 }
 0x455   : > { %p2487_p11 = pnand %p4414_p10, %p2850_p4 }
 0x457   : > { %p2488_p0 = pneg %p2487_p11 }
 0x459   : > { %2701 = dma.done.wait (%p2488_p0), %s2186_s1, 128  }
 0x45a   : > { %2703 = vsyncadd (%p2488_p0), %s2186_s1, 4294967168  ;;  %s4415_s30 = sld [smem:[#allocation22_spill]] }
 0x45b   : > { %s4416_s27 = sld [smem:[#allocation18_spill]] }
 0x45c   : > { %s4417_s28 = sld [smem:[#allocation19_spill]] }
 0x45d   : > { %s4418_s29 = sld [smem:[#allocation23_spill]] }
 0x460   : > { %p24_p2 = scmp.ge.s32.totalorder %s4415_s30, 4  }
 0x462   :  { %26 = sbr.rel (!%p24_p2) target bundleno = 18 (0x12), region = 110 }
 0x467   :  { %2192 = vsyncpa [#allocation3], 1 }
 0x468   :  { %2194 = vsyncpa [#allocation3 + $0x1], 1 }
 0x469   :  { %2195 = vsyncpa [#allocation7], 1 }
 0x46a   :  { %2196 = vsyncpa [#allocation4], 1 }
 0x46b   :  { %2198 = vsyncpa [#allocation4 + $0x1], 1 }
 0x46c   :  { %2199 = vsyncpa [#allocation5], 1 }
 0x46d   :  { %2201 = vsyncpa [#allocation5 + $0x1], 1 }
 0x46e   :  { %2202 = vsyncpa [#allocation10], 1 }

</bundles_post_ra>
